<compile_context>
chip_gen: v6e
topology: v6e:2x2x1
jax: 0.10.0
libtpu: 0.0.40
codegen_flags: <defaults>
</compile_context>

<pallas_src>
from functools import partial

import numpy as np
import jax
import jax.numpy as jnp
from jax.experimental import pallas as pl
from jax.experimental.pallas import tpu as pltpu


def _relu_conv3x3_kernel(x_ref, w_ref, m_ref, o_ref, xr_ref, col_ref, *, H, W, Cin):
    # x_ref  : (Cin, H*W)        f32   channel-major flat input (VMEM)
    # w_ref  : (Cout, 9*Cin)     bf16  weight, cols ordered (kh, kw, ci) (VMEM)
    # m_ref  : (9, H*W)          bf16  per-tap 0/1 edge masks (VMEM)
    # o_ref  : (Cout, H*W)       f32   output, NCHW-flat (VMEM)
    # xr_ref : (Cin, H*W + 2*PAD) bf16 scratch: ReLU'd input, zero-extended on both ends
    # col_ref: (9*Cin, H*W)      bf16 scratch: im2col in (K, H*W) orientation
    HW = H * W
    PAD = W + 1  # max |flat lane shift| for a 3x3, pad-1 conv

    # Zero only the two halo strips, then one streaming ReLU + bf16 cast pass.
    xr_ref[:, :PAD] = jnp.zeros((Cin, PAD), jnp.bfloat16)
    xr_ref[:, PAD + HW:] = jnp.zeros((Cin, PAD), jnp.bfloat16)
    xr_ref[:, PAD:PAD + HW] = jnp.maximum(x_ref[...], 0.0).astype(jnp.bfloat16)

    # im2col: each tap slab is a constant lane-shifted window of xr, masked at the
    # image borders (mask also kills the row-wrap reads). Slab rows start at
    # tap*Cin (sublane-aligned), so the stores are unmasked along sublanes.
    for kh in range(3):
        for kw in range(3):
            tap = kh * 3 + kw
            s = (kh - 1) * W + (kw - 1)          # flat lane shift of this tap
            col_ref[tap * Cin:(tap + 1) * Cin, :] = (
                xr_ref[:, PAD + s:PAD + s + HW] * m_ref[tap:tap + 1, :])

    # Single MXU matmul: (Cout, 9*Cin) x (9*Cin, H*W) -> (Cout, H*W), f32 accumulation.
    o_ref[...] = jnp.dot(w_ref[...], col_ref[...],
                         preferred_element_type=jnp.float32).astype(o_ref.dtype)


def prepare_weight(w_oihw):
    """One-time transform of the constant conv weight OIHW -> (Cout, 9*Cin) bf16,
    columns ordered (kh, kw, ci) to match the kernel's im2col row layout."""
    Cout, Cin, KH, KW = w_oihw.shape
    return (jnp.transpose(w_oihw, (0, 2, 3, 1))
            .reshape(Cout, KH * KW * Cin)
            .astype(jnp.bfloat16))


def prepare_masks(H, W):
    """One-time 0/1 edge masks, shape (9, H*W): mask[tap, h*W+w] = 1 iff the tap's
    source pixel (h+kh-1, w+kw-1) is inside the image (pad-1 border -> 0)."""
    m = np.zeros((9, H * W), np.float32)
    for kh in range(3):
        for kw in range(3):
            hh = np.arange(H)[:, None] + (kh - 1)
            ww = np.arange(W)[None, :] + (kw - 1)
            valid = ((hh >= 0) & (hh < H) & (ww >= 0) & (ww < W)).astype(np.float32)
            m[kh * 3 + kw] = valid.reshape(-1)
    return jnp.asarray(m, dtype=jnp.bfloat16)


@jax.jit
def relu_conv2d(x_nchw, w2, masks):
    """x_nchw: (1, Cin, H, W) f32; w2 = prepare_weight(w); masks = prepare_masks(H, W).
    Returns (1, Cout, H, W) f32 = Conv2d(ReLU(x))."""
    N, Cin, H, W = x_nchw.shape
    assert N == 1, "kernel written for batch 1 (matches the reference module)"
    Cout = w2.shape[0]
    HW = H * W
    PAD = W + 1

    # Free bitcast: NCHW with N == 1 is already channel-major flat.
    x_cm = x_nchw.reshape(Cin, HW)

    kernel = partial(_relu_conv3x3_kernel, H=H, W=W, Cin=Cin)
    cost = pl.CostEstimate(
        flops=2 * Cout * HW * 9 * Cin,
        transcendentals=0,
        bytes_accessed=(Cin * HW * 4                 # input
                        + Cout * 9 * Cin * 2         # weight (bf16)
                        + 9 * HW * 2                 # masks
                        + Cout * HW * 4              # output
                        + 2 * Cin * (HW + 2 * PAD) * 2   # xr scratch write + reads
                        + 2 * 9 * Cin * HW * 2),         # col scratch write + read
    )

    out = pl.pallas_call(
        kernel,
        out_shape=jax.ShapeDtypeStruct((Cout, HW), x_nchw.dtype),
        in_specs=[pl.BlockSpec(memory_space=pltpu.MemorySpace.VMEM),
                  pl.BlockSpec(memory_space=pltpu.MemorySpace.VMEM),
                  pl.BlockSpec(memory_space=pltpu.MemorySpace.VMEM)],
        out_specs=pl.BlockSpec(memory_space=pltpu.MemorySpace.VMEM),
        scratch_shapes=[pltpu.VMEM((Cin, HW + 2 * PAD), jnp.bfloat16),
                        pltpu.VMEM((9 * Cin, HW), jnp.bfloat16)],
        cost_estimate=cost,
    )(x_cm, w2, masks)

    # Free bitcast: (Cout, H*W) is already NCHW-flat.
    return out.reshape(1, Cout, H, W)


if __name__ == "__main__":
    key = jax.random.PRNGKey(0)
    kx, kw = jax.random.split(key)

    # Shapes implied by the module: input (1, 192, 14, 14), weight (48, 192, 3, 3).
    x = jax.random.normal(kx, (1, 192, 14, 14), dtype=jnp.float32)
    w = jax.random.normal(kw, (48, 192, 3, 3), dtype=jnp.float32) * 0.02

    w2 = prepare_weight(w)          # constants: done once, outside the hot path
    masks = prepare_masks(14, 14)

    out = jax.block_until_ready(relu_conv2d(x, w2, masks))

    # Reference check against XLA f32 conv of relu(x).
    ref = jax.lax.conv_general_dilated(
        jnp.maximum(x, 0.0), w, window_strides=(1, 1),
        padding=((1, 1), (1, 1)),
        dimension_numbers=("NCHW", "OIHW", "NCHW"))
    assert out.shape == (1, 48, 14, 14)
    max_err = jnp.max(jnp.abs(out - ref))
    # bf16 operands with f32 accumulation over K = 1728 -> ~1e-3..1e-2 abs error expected.
    assert jnp.allclose(out, ref, atol=5e-2, rtol=5e-2), f"max abs err {max_err}"

    print("KERNEL_OK")
</pallas_src>

<mosaic_0001>
module attributes {stable_mosaic.version = 11 : i64} {
  func.func @_relu_conv3x3_kernel(%arg0: memref<192x196xf32, #tpu.memory_space<vmem>>, %arg1: memref<48x1728xbf16, #tpu.memory_space<vmem>>, %arg2: memref<9x196xbf16, #tpu.memory_space<vmem>>, %arg3: memref<48x196xf32, #tpu.memory_space<vmem>>, %arg4: memref<192x226xbf16, #tpu.memory_space<vmem>>, %arg5: memref<1728x196xbf16, #tpu.memory_space<vmem>>) attributes {dimension_semantics = [], scalar_prefetch = 0 : i64, scratch_operands = 2 : i64, tpu.core_type = #tpu.core_type<tc>} {
    %cst = arith.constant 0.000000e+00 : bf16
    %0 = vector.broadcast %cst : bf16 to vector<192x15xbf16>
    %c0 = arith.constant 0 : index
    %c0_0 = arith.constant 0 : index
    %1 = vector.load %arg4[%c0, %c0_0] : memref<192x226xbf16, #tpu.memory_space<vmem>>, vector<192x15xbf16>
    tpu.vector_store %arg4[%c0, %c0_0], %0 {strides = array<i32>} : memref<192x226xbf16, #tpu.memory_space<vmem>>, vector<192x15xbf16>,
    %cst_1 = arith.constant 0.000000e+00 : bf16
    %2 = vector.broadcast %cst_1 : bf16 to vector<192x15xbf16>
    %c0_2 = arith.constant 0 : index
    %c211 = arith.constant 211 : index
    %3 = vector.load %arg4[%c0_2, %c211] : memref<192x226xbf16, #tpu.memory_space<vmem>>, vector<192x15xbf16>
    tpu.vector_store %arg4[%c0_2, %c211], %2 {strides = array<i32>} : memref<192x226xbf16, #tpu.memory_space<vmem>>, vector<192x15xbf16>,
    %c0_3 = arith.constant 0 : index
    %c0_4 = arith.constant 0 : index
    %4 = vector.load %arg0[%c0_3, %c0_4] : memref<192x196xf32, #tpu.memory_space<vmem>>, vector<192x196xf32>
    %cst_5 = arith.constant 0.000000e+00 : f32
    %5 = vector.broadcast %cst_5 : f32 to vector<192x196xf32>
    %6 = arith.maximumf %4, %5 : vector<192x196xf32>
    %7 = arith.truncf %6 : vector<192x196xf32> to vector<192x196xbf16>
    %c0_6 = arith.constant 0 : index
    %c15 = arith.constant 15 : index
    %8 = vector.load %arg4[%c0_6, %c15] : memref<192x226xbf16, #tpu.memory_space<vmem>>, vector<192x196xbf16>
    tpu.vector_store %arg4[%c0_6, %c15], %7 {strides = array<i32>} : memref<192x226xbf16, #tpu.memory_space<vmem>>, vector<192x196xbf16>,
    %c0_7 = arith.constant 0 : index
    %c0_8 = arith.constant 0 : index
    %9 = vector.load %arg4[%c0_7, %c0_8] : memref<192x226xbf16, #tpu.memory_space<vmem>>, vector<192x196xbf16>
    %c0_9 = arith.constant 0 : index
    %c0_10 = arith.constant 0 : index
    %10 = vector.load %arg2[%c0_9, %c0_10] : memref<9x196xbf16, #tpu.memory_space<vmem>>, vector<1x196xbf16>
    %11 = vector.broadcast %10 : vector<1x196xbf16> to vector<192x196xbf16>
    %12 = arith.mulf %9, %11 : vector<192x196xbf16>
    %c0_11 = arith.constant 0 : index
    %c0_12 = arith.constant 0 : index
    %13 = vector.load %arg5[%c0_11, %c0_12] : memref<1728x196xbf16, #tpu.memory_space<vmem>>, vector<192x196xbf16>
    tpu.vector_store %arg5[%c0_11, %c0_12], %12 {strides = array<i32>} : memref<1728x196xbf16, #tpu.memory_space<vmem>>, vector<192x196xbf16>,
    %c0_13 = arith.constant 0 : index
    %c1 = arith.constant 1 : index
    %14 = vector.load %arg4[%c0_13, %c1] : memref<192x226xbf16, #tpu.memory_space<vmem>>, vector<192x196xbf16>
    %c1_14 = arith.constant 1 : index
    %c0_15 = arith.constant 0 : index
    %15 = vector.load %arg2[%c1_14, %c0_15] : memref<9x196xbf16, #tpu.memory_space<vmem>>, vector<1x196xbf16>
    %16 = vector.broadcast %15 : vector<1x196xbf16> to vector<192x196xbf16>
    %17 = arith.mulf %14, %16 : vector<192x196xbf16>
    %c192 = arith.constant 192 : index
    %c0_16 = arith.constant 0 : index
    %18 = vector.load %arg5[%c192, %c0_16] : memref<1728x196xbf16, #tpu.memory_space<vmem>>, vector<192x196xbf16>
    tpu.vector_store %arg5[%c192, %c0_16], %17 {strides = array<i32>} : memref<1728x196xbf16, #tpu.memory_space<vmem>>, vector<192x196xbf16>,
    %c0_17 = arith.constant 0 : index
    %c2 = arith.constant 2 : index
    %19 = vector.load %arg4[%c0_17, %c2] : memref<192x226xbf16, #tpu.memory_space<vmem>>, vector<192x196xbf16>
    %c2_18 = arith.constant 2 : index
    %c0_19 = arith.constant 0 : index
    %20 = vector.load %arg2[%c2_18, %c0_19] : memref<9x196xbf16, #tpu.memory_space<vmem>>, vector<1x196xbf16>
    %21 = vector.broadcast %20 : vector<1x196xbf16> to vector<192x196xbf16>
    %22 = arith.mulf %19, %21 : vector<192x196xbf16>
    %c384 = arith.constant 384 : index
    %c0_20 = arith.constant 0 : index
    %23 = vector.load %arg5[%c384, %c0_20] : memref<1728x196xbf16, #tpu.memory_space<vmem>>, vector<192x196xbf16>
    tpu.vector_store %arg5[%c384, %c0_20], %22 {strides = array<i32>} : memref<1728x196xbf16, #tpu.memory_space<vmem>>, vector<192x196xbf16>,
    %c0_21 = arith.constant 0 : index
    %c14 = arith.constant 14 : index
    %24 = vector.load %arg4[%c0_21, %c14] : memref<192x226xbf16, #tpu.memory_space<vmem>>, vector<192x196xbf16>
    %c3 = arith.constant 3 : index
    %c0_22 = arith.constant 0 : index
    %25 = vector.load %arg2[%c3, %c0_22] : memref<9x196xbf16, #tpu.memory_space<vmem>>, vector<1x196xbf16>
    %26 = vector.broadcast %25 : vector<1x196xbf16> to vector<192x196xbf16>
    %27 = arith.mulf %24, %26 : vector<192x196xbf16>
    %c576 = arith.constant 576 : index
    %c0_23 = arith.constant 0 : index
    %28 = vector.load %arg5[%c576, %c0_23] : memref<1728x196xbf16, #tpu.memory_space<vmem>>, vector<192x196xbf16>
    tpu.vector_store %arg5[%c576, %c0_23], %27 {strides = array<i32>} : memref<1728x196xbf16, #tpu.memory_space<vmem>>, vector<192x196xbf16>,
    %c0_24 = arith.constant 0 : index
    %c15_25 = arith.constant 15 : index
    %29 = vector.load %arg4[%c0_24, %c15_25] : memref<192x226xbf16, #tpu.memory_space<vmem>>, vector<192x196xbf16>
    %c4 = arith.constant 4 : index
    %c0_26 = arith.constant 0 : index
    %30 = vector.load %arg2[%c4, %c0_26] : memref<9x196xbf16, #tpu.memory_space<vmem>>, vector<1x196xbf16>
    %31 = vector.broadcast %30 : vector<1x196xbf16> to vector<192x196xbf16>
    %32 = arith.mulf %29, %31 : vector<192x196xbf16>
    %c768 = arith.constant 768 : index
    %c0_27 = arith.constant 0 : index
    %33 = vector.load %arg5[%c768, %c0_27] : memref<1728x196xbf16, #tpu.memory_space<vmem>>, vector<192x196xbf16>
    tpu.vector_store %arg5[%c768, %c0_27], %32 {strides = array<i32>} : memref<1728x196xbf16, #tpu.memory_space<vmem>>, vector<192x196xbf16>,
    %c0_28 = arith.constant 0 : index
    %c16 = arith.constant 16 : index
    %34 = vector.load %arg4[%c0_28, %c16] : memref<192x226xbf16, #tpu.memory_space<vmem>>, vector<192x196xbf16>
    %c5 = arith.constant 5 : index
    %c0_29 = arith.constant 0 : index
    %35 = vector.load %arg2[%c5, %c0_29] : memref<9x196xbf16, #tpu.memory_space<vmem>>, vector<1x196xbf16>
    %36 = vector.broadcast %35 : vector<1x196xbf16> to vector<192x196xbf16>
    %37 = arith.mulf %34, %36 : vector<192x196xbf16>
    %c960 = arith.constant 960 : index
    %c0_30 = arith.constant 0 : index
    %38 = vector.load %arg5[%c960, %c0_30] : memref<1728x196xbf16, #tpu.memory_space<vmem>>, vector<192x196xbf16>
    tpu.vector_store %arg5[%c960, %c0_30], %37 {strides = array<i32>} : memref<1728x196xbf16, #tpu.memory_space<vmem>>, vector<192x196xbf16>,
    %c0_31 = arith.constant 0 : index
    %c28 = arith.constant 28 : index
    %39 = vector.load %arg4[%c0_31, %c28] : memref<192x226xbf16, #tpu.memory_space<vmem>>, vector<192x196xbf16>
    %c6 = arith.constant 6 : index
    %c0_32 = arith.constant 0 : index
    %40 = vector.load %arg2[%c6, %c0_32] : memref<9x196xbf16, #tpu.memory_space<vmem>>, vector<1x196xbf16>
    %41 = vector.broadcast %40 : vector<1x196xbf16> to vector<192x196xbf16>
    %42 = arith.mulf %39, %41 : vector<192x196xbf16>
    %c1152 = arith.constant 1152 : index
    %c0_33 = arith.constant 0 : index
    %43 = vector.load %arg5[%c1152, %c0_33] : memref<1728x196xbf16, #tpu.memory_space<vmem>>, vector<192x196xbf16>
    tpu.vector_store %arg5[%c1152, %c0_33], %42 {strides = array<i32>} : memref<1728x196xbf16, #tpu.memory_space<vmem>>, vector<192x196xbf16>,
    %c0_34 = arith.constant 0 : index
    %c29 = arith.constant 29 : index
    %44 = vector.load %arg4[%c0_34, %c29] : memref<192x226xbf16, #tpu.memory_space<vmem>>, vector<192x196xbf16>
    %c7 = arith.constant 7 : index
    %c0_35 = arith.constant 0 : index
    %45 = vector.load %arg2[%c7, %c0_35] : memref<9x196xbf16, #tpu.memory_space<vmem>>, vector<1x196xbf16>
    %46 = vector.broadcast %45 : vector<1x196xbf16> to vector<192x196xbf16>
    %47 = arith.mulf %44, %46 : vector<192x196xbf16>
    %c1344 = arith.constant 1344 : index
    %c0_36 = arith.constant 0 : index
    %48 = vector.load %arg5[%c1344, %c0_36] : memref<1728x196xbf16, #tpu.memory_space<vmem>>, vector<192x196xbf16>
    tpu.vector_store %arg5[%c1344, %c0_36], %47 {strides = array<i32>} : memref<1728x196xbf16, #tpu.memory_space<vmem>>, vector<192x196xbf16>,
    %c0_37 = arith.constant 0 : index
    %c30 = arith.constant 30 : index
    %49 = vector.load %arg4[%c0_37, %c30] : memref<192x226xbf16, #tpu.memory_space<vmem>>, vector<192x196xbf16>
    %c8 = arith.constant 8 : index
    %c0_38 = arith.constant 0 : index
    %50 = vector.load %arg2[%c8, %c0_38] : memref<9x196xbf16, #tpu.memory_space<vmem>>, vector<1x196xbf16>
    %51 = vector.broadcast %50 : vector<1x196xbf16> to vector<192x196xbf16>
    %52 = arith.mulf %49, %51 : vector<192x196xbf16>
    %c1536 = arith.constant 1536 : index
    %c0_39 = arith.constant 0 : index
    %53 = vector.load %arg5[%c1536, %c0_39] : memref<1728x196xbf16, #tpu.memory_space<vmem>>, vector<192x196xbf16>
    tpu.vector_store %arg5[%c1536, %c0_39], %52 {strides = array<i32>} : memref<1728x196xbf16, #tpu.memory_space<vmem>>, vector<192x196xbf16>,
    %c0_40 = arith.constant 0 : index
    %c0_41 = arith.constant 0 : index
    %54 = vector.load %arg1[%c0_40, %c0_41] : memref<48x1728xbf16, #tpu.memory_space<vmem>>, vector<48x1728xbf16>
    %c0_42 = arith.constant 0 : index
    %c0_43 = arith.constant 0 : index
    %55 = vector.load %arg5[%c0_42, %c0_43] : memref<1728x196xbf16, #tpu.memory_space<vmem>>, vector<1728x196xbf16>
    %cst_44 = arith.constant dense<0.000000e+00> : vector<48x196xf32>
    %56 = tpu.matmul %54, %55, %cst_44 {dimension_numbers = #tpu.dot_dimension_numbers<[1], [0], [0], [1], [0, 0, 1, 1], [], []>} : vector<48x1728xbf16>, vector<1728x196xbf16>, vector<48x196xf32> -> vector<48x196xf32>
    %c0_45 = arith.constant 0 : index
    %c0_46 = arith.constant 0 : index
    %57 = vector.load %arg3[%c0_45, %c0_46] : memref<48x196xf32, #tpu.memory_space<vmem>>, vector<48x196xf32>
    tpu.vector_store %arg3[%c0_45, %c0_46], %56 {strides = array<i32>} : memref<48x196xf32, #tpu.memory_space<vmem>>, vector<48x196xf32>,
    return
  }
}

</mosaic_0001>

<bundles_post_ra>
// kernel: relu_conv2d.1
= control target key start
LH: loop header
LB: loop body
LE: loop exit
PB: predicated region body
PF: predicated region fallthrough
CT: control target
= control target key end

     0   :  { %vm15_vm0 = vcmask 117760   ;;  %vm40_vm1 = vcmask 798360   ;;  %v5307_v3 = vmov 0   ;;  %v462_v16 = vlaneseq  ;;  %s5308_s11 = smov 15   ;;  %s5309_s5 = smov 1   ;;  %s7423_s0 = inlined_call_operand.vmem [shape: f32[192,196], index: 0, kind: input, shape index: {}]   ;;  %s7424_s2 = inlined_call_operand.vmem [shape: bf16[9,196], index: 2, kind: input, shape index: {}]   ;;  %s7425_s1 = inlined_call_operand.vmem [shape: bf16[48,1728], index: 1, kind: input, shape index: {}]   ;;  %s7426_s3 = inlined_call_operand.vmem [shape: f32[48,196], index: 3, kind: output, shape index: {}]  }
   0x1   :  { %v5347_v0 = vld [vmem:[%s7423_s0 + $0x160] sm:$0xff]  ;;  %v5352_v1 = vld [vmem:[%s7423_s0 + $0x168] sm:$0xff]  ;;  %38 = vst.msk [vmem:[#allocation2 + $0xb0] sm:$0xf] %vm15_vm0, %v5307_v3  ;;  %16 = vst.msk [vmem:[#allocation2] sm:$0xf] %vm15_vm0, %v5307_v3 }
   0x2   :  { %v5357_v2 = vld [vmem:[%s7423_s0 + $0x140] sm:$0xff]  ;;  %63 = vst.msk [vmem:[#allocation2 + $0xb4] sm:$0xf] %vm40_vm1, %v5307_v3  ;;  %41 = vst.msk [vmem:[#allocation2 + $0x4] sm:$0xf] %vm40_vm1, %v5307_v3  ;;  %v157_v4 = vmax.f32 %v5347_v0, 0.0 }
   0x3   :  { %17 = vst.msk [vmem:[#allocation2 + $0x8] sm:$0xf] %vm15_vm0, %v5307_v3  ;;  %18 = vst.msk [vmem:[#allocation2 + $0x10] sm:$0xf] %vm15_vm0, %v5307_v3  ;;  %v158_v5 = vmax.f32 %v5352_v1, 0.0  ;;  %v106_v6 = vld [vmem:[%s7423_s0 + $0x148] sm:$0xff] }
   0x4   :  { %19 = vst.msk [vmem:[#allocation2 + $0x18] sm:$0xf] %vm15_vm0, %v5307_v3  ;;  %20 = vst.msk [vmem:[#allocation2 + $0x20] sm:$0xf] %vm15_vm0, %v5307_v3  ;;  %v153_v7 = vmax.f32 %v5357_v2, 0.0  ;;  %v111_v8 = vld [vmem:[%s7423_s0 + $0x170] sm:$0xff] }
   0x5   :  { %21 = vst.msk [vmem:[#allocation2 + $0x28] sm:$0xf] %vm15_vm0, %v5307_v3  ;;  %22 = vst.msk [vmem:[#allocation2 + $0x30] sm:$0xf] %vm15_vm0, %v5307_v3  ;;  %v112_v9 = vld [vmem:[%s7423_s0 + $0x178] sm:$0xff]  ;;  %v154_v10 = vmax.f32 %v106_v6, 0.0  ;;  %v4868_v17 = vpack.c.bf16 %v158_v5, %v157_v4 }
   0x6   :  { %23 = vst.msk [vmem:[#allocation2 + $0x38] sm:$0xf] %vm15_vm0, %v5307_v3  ;;  %24 = vst.msk [vmem:[#allocation2 + $0x40] sm:$0xf] %vm15_vm0, %v5307_v3  ;;  %v159_v11 = vmax.f32 %v111_v8, 0.0  ;;  %v160_v12 = vmax.f32 %v112_v9, 0.0 }
   0x7   :  { %25 = vst.msk [vmem:[#allocation2 + $0x48] sm:$0xf] %vm15_vm0, %v5307_v3  ;;  %26 = vst.msk [vmem:[#allocation2 + $0x50] sm:$0xf] %vm15_vm0, %v5307_v3  ;;  %v107_v13 = vld [vmem:[%s7423_s0 + $0x150] sm:$0xff]  ;;  %v108_v14 = vld [vmem:[%s7423_s0 + $0x158] sm:$0xff]  ;;  %v4866_v23 = vpack.c.bf16 %v154_v10, %v153_v7  ;;  %325 = vrot.lane.b32.xlu0 %v4868_v17, %s5308_s11 }
   0x8   :  { %27 = vst.msk [vmem:[#allocation2 + $0x58] sm:$0xf] %vm15_vm0, %v5307_v3  ;;  %28 = vst.msk [vmem:[#allocation2 + $0x60] sm:$0xf] %vm15_vm0, %v5307_v3  ;;  %v103_v15 = vld [vmem:[%s7423_s0 + $0x130] sm:$0xff]  ;;  %v155_v18 = vmax.f32 %v107_v13, 0.0  ;;  %v4869_v26 = vpack.c.bf16 %v160_v12, %v159_v11 }
   0x9   :  { %29 = vst.msk [vmem:[#allocation2 + $0x68] sm:$0xf] %vm15_vm0, %v5307_v3  ;;  %30 = vst.msk [vmem:[#allocation2 + $0x70] sm:$0xf] %vm15_vm0, %v5307_v3  ;;  %v156_v19 = vmax.f32 %v108_v14, 0.0  ;;  %v104_v20 = vld [vmem:[%s7423_s0 + $0x138] sm:$0xff]  ;;  %321 = vrot.lane.b32.xlu1 %v4866_v23, %s5308_s11 }
   0xa   :  { %31 = vst.msk [vmem:[#allocation2 + $0x78] sm:$0xf] %vm15_vm0, %v5307_v3  ;;  %32 = vst.msk [vmem:[#allocation2 + $0x80] sm:$0xf] %vm15_vm0, %v5307_v3  ;;  %v101_v21 = vld [vmem:[%s7423_s0 + $0x120] sm:$0xff]  ;;  %v102_v22 = vld [vmem:[%s7423_s0 + $0x128] sm:$0xff] }
   0xb   :  { %33 = vst.msk [vmem:[#allocation2 + $0x88] sm:$0xf] %vm15_vm0, %v5307_v3  ;;  %34 = vst.msk [vmem:[#allocation2 + $0x90] sm:$0xf] %vm15_vm0, %v5307_v3  ;;  %v151_v24 = vmax.f32 %v103_v15, 0.0  ;;  %v152_v27 = vmax.f32 %v104_v20, 0.0  ;;  %v4867_v30 = vpack.c.bf16 %v156_v19, %v155_v18  ;;  %327 = vrot.lane.b32.xlu0 %v4869_v26, %s5308_s11 }
   0xc   :  { %35 = vst.msk [vmem:[#allocation2 + $0x98] sm:$0xf] %vm15_vm0, %v5307_v3  ;;  %36 = vst.msk [vmem:[#allocation2 + $0xa0] sm:$0xf] %vm15_vm0, %v5307_v3  ;;  %v554_v25 = vld [vmem:[%s7424_s2] sm:$0x11] }
   0xd   :  { %37 = vst.msk [vmem:[#allocation2 + $0xa8] sm:$0xf] %vm15_vm0, %v5307_v3  ;;  %39 = vst.msk [vmem:[#allocation2 + $0xb8] sm:$0xf] %vm15_vm0, %v5307_v3  ;;  %v149_v28 = vmax.f32 %v101_v21, 0.0  ;;  %v150_v29 = vmax.f32 %v102_v22, 0.0  ;;  %v4561_v32 = vcombine.low %v554_v25, %v554_v25  ;;  %v4562_v33 = vcombine.high %v554_v25, %v554_v25  ;;  %323 = vrot.lane.b32.xlu1 %v4867_v30, %s5308_s11 }
   0xe   :  { %42 = vst.msk [vmem:[#allocation2 + $0xc] sm:$0xf] %vm40_vm1, %v5307_v3  ;;  %43 = vst.msk [vmem:[#allocation2 + $0x14] sm:$0xf] %vm40_vm1, %v5307_v3  ;;  %v5442_v31 = vshrl.u32 %v462_v16, 7  ;;  %v97_v34 = vld [vmem:[%s7423_s0 + $0x100] sm:$0xff]  ;;  %v4865_v39 = vpack.c.bf16 %v152_v27, %v151_v24 }
   0xf   :  { %44 = vst.msk [vmem:[#allocation2 + $0x1c] sm:$0xf] %vm40_vm1, %v5307_v3  ;;  %45 = vst.msk [vmem:[#allocation2 + $0x24] sm:$0xf] %vm40_vm1, %v5307_v3  ;;  %v98_v35 = vld [vmem:[%s7423_s0 + $0x108] sm:$0xff]  ;;  %v561_v37 = vshrl.u32 %v4561_v32, 16  ;;  %v4864_v40 = vpack.c.bf16 %v150_v29, %v149_v28 }
  0x10   :  { %46 = vst.msk [vmem:[#allocation2 + $0x2c] sm:$0xf] %vm40_vm1, %v5307_v3  ;;  %47 = vst.msk [vmem:[#allocation2 + $0x34] sm:$0xf] %vm40_vm1, %v5307_v3  ;;  %v5451_v36 = vsub.s32 0, %v5442_v31  ;;  %v569_v38 = vshrl.u32 %v4562_v33, 16 }
  0x11   :  { %48 = vst.msk [vmem:[#allocation2 + $0x3c] sm:$0xf] %vm40_vm1, %v5307_v3  ;;  %49 = vst.msk [vmem:[#allocation2 + $0x44] sm:$0xf] %vm40_vm1, %v5307_v3  ;;  %v562_v41 = vpack.i.b16 %v561_v37, %v561_v37  ;;  %v145_v43 = vmax.f32 %v97_v34, 0.0  ;;  %v146_v44 = vmax.f32 %v98_v35, 0.0  ;;  %317 = vrot.lane.b32.xlu0 %v4864_v40, %s5308_s11  ;;  %319 = vrot.lane.b32.xlu1 %v4865_v39, %s5308_s11 }
  0x12   :  { %50 = vst.msk [vmem:[#allocation2 + $0x4c] sm:$0xf] %vm40_vm1, %v5307_v3  ;;  %51 = vst.msk [vmem:[#allocation2 + $0x54] sm:$0xf] %vm40_vm1, %v5307_v3  ;;  %v570_v42 = vpack.i.b16 %v569_v38, %v569_v38  ;;  %v99_v45 = vld [vmem:[%s7423_s0 + $0x110] sm:$0xff]  ;;  %v100_v46 = vld [vmem:[%s7423_s0 + $0x118] sm:$0xff] }
  0x13   :  { %52 = vst.msk [vmem:[#allocation2 + $0x5c] sm:$0xf] %vm40_vm1, %v5307_v3  ;;  %53 = vst.msk [vmem:[#allocation2 + $0x64] sm:$0xf] %vm40_vm1, %v5307_v3  ;;  %v93_v47 = vld [vmem:[%s7423_s0 + $0xe0] sm:$0xff]  ;;  %v94_v48 = vld [vmem:[%s7423_s0 + $0xe8] sm:$0xff]  ;;  %v567_v49 = vrot.slane %v562_v41, %v5451_v36  ;;  %v4862_v54 = vpack.c.bf16 %v146_v44, %v145_v43 }
  0x14   :  { %54 = vst.msk [vmem:[#allocation2 + $0x6c] sm:$0xf] %vm40_vm1, %v5307_v3  ;;  %55 = vst.msk [vmem:[#allocation2 + $0x74] sm:$0xf] %vm40_vm1, %v5307_v3  ;;  %v575_v50 = vrot.slane %v570_v42, %v5451_v36  ;;  %v147_v51 = vmax.f32 %v99_v45, 0.0  ;;  %v148_v52 = vmax.f32 %v100_v46, 0.0 }
  0x15   :  { %56 = vst.msk [vmem:[#allocation2 + $0x7c] sm:$0xf] %vm40_vm1, %v5307_v3  ;;  %57 = vst.msk [vmem:[#allocation2 + $0x84] sm:$0xf] %vm40_vm1, %v5307_v3  ;;  %v141_v55 = vmax.f32 %v93_v47, 0.0  ;;  %v142_v56 = vmax.f32 %v94_v48, 0.0  ;;  %313 = vrot.lane.b32.xlu1 %v4862_v54, %s5308_s11 }
  0x16   :  { %58 = vst.msk [vmem:[#allocation2 + $0x8c] sm:$0xf] %vm40_vm1, %v5307_v3  ;;  %59 = vst.msk [vmem:[#allocation2 + $0x94] sm:$0xf] %vm40_vm1, %v5307_v3  ;;  %v4563_v53 = vcombine.low %v567_v49, %v575_v50  ;;  %v95_v57 = vld [vmem:[%s7423_s0 + $0xf0] sm:$0xff]  ;;  %v96_v58 = vld [vmem:[%s7423_s0 + $0xf8] sm:$0xff]  ;;  %v4863_v61 = vpack.c.bf16 %v148_v52, %v147_v51 }
  0x17   :  { %60 = vst.msk [vmem:[#allocation2 + $0x9c] sm:$0xf] %vm40_vm1, %v5307_v3  ;;  %61 = vst.msk [vmem:[#allocation2 + $0xa4] sm:$0xf] %vm40_vm1, %v5307_v3  ;;  %v89_v59 = vld [vmem:[%s7423_s0 + $0xc0] sm:$0xff]  ;;  %v90_v60 = vld [vmem:[%s7423_s0 + $0xc8] sm:$0xff]  ;;  %v4860_v1 = vpack.c.bf16 %v142_v56, %v141_v55 }
  0x18   :  { %62 = vst.msk [vmem:[#allocation2 + $0xac] sm:$0xf] %vm40_vm1, %v5307_v3  ;;  %64 = vst.msk [vmem:[#allocation2 + $0xbc] sm:$0xf] %vm40_vm1, %v5307_v3  ;;  %581 = vrot.lane.b32.xlu0 %v4563_v53, %s5309_s5  ;;  %v143_v62 = vmax.f32 %v95_v57, 0.0  ;;  %v144_v63 = vmax.f32 %v96_v58, 0.0 }
  0x19   :  { %v91_v0 = vld [vmem:[%s7423_s0 + $0xd0] sm:$0xff]  ;;  %v137_v2 = vmax.f32 %v89_v59, 0.0  ;;  %v138_v3 = vmax.f32 %v90_v60, 0.0  ;;  %v92_v4 = vld [vmem:[%s7423_s0 + $0xd8] sm:$0xff]  ;;  %v85_v5 = vld [vmem:[%s7423_s0 + $0xa0] sm:$0xff]  ;;  %309 = vrot.lane.b32.xlu1 %v4860_v1, %s5308_s11  ;;  %v5536_v41 = vsub.s32 1, %v5442_v31 }
  0x1a   :  { %v86_v6 = vld [vmem:[%s7423_s0 + $0xa8] sm:$0xff]  ;;  %v139_v7 = vmax.f32 %v91_v0, 0.0  ;;  %v4861_v8 = vpack.c.bf16 %v144_v63, %v143_v62  ;;  %v140_v9 = vmax.f32 %v92_v4, 0.0  ;;  %v133_v10 = vmax.f32 %v85_v5, 0.0  ;;  %v87_v13 = vld [vmem:[%s7423_s0 + $0xb0] sm:$0xff]  ;;  %v88_v14 = vld [vmem:[%s7423_s0 + $0xb8] sm:$0xff] }
  0x1b   :  { %v134_v11 = vmax.f32 %v86_v6, 0.0  ;;  %v4858_v12 = vpack.c.bf16 %v138_v3, %v137_v2  ;;  %v81_v15 = vld [vmem:[%s7423_s0 + $0x80] sm:$0xff]  ;;  %v82_v16 = vld [vmem:[%s7423_s0 + $0x88] sm:$0xff]  ;;  %v135_v20 = vmax.f32 %v87_v13, 0.0  ;;  %v136_v21 = vmax.f32 %v88_v14, 0.0  ;;  %v83_v22 = vld [vmem:[%s7423_s0 + $0x90] sm:$0xff] }
  0x1c   :  { %315 = vrot.lane.b32.xlu0 %v4863_v61, %s5308_s11  ;;  %v804_v17 = vld [vmem:[%s7424_s2] sm:$0x22]  ;;  %v4859_v18 = vpack.c.bf16 %v140_v9, %v139_v7  ;;  %v129_v23 = vmax.f32 %v81_v15, 0.0  ;;  %v130_v24 = vmax.f32 %v82_v16, 0.0  ;;  %v84_v25 = vld [vmem:[%s7423_s0 + $0x98] sm:$0xff]  ;;  %v78_v27 = vld [vmem:[%s7423_s0 + $0x68] sm:$0xff] }
  0x1d   :  { %v4856_v19 = vpack.c.bf16 %v134_v11, %v133_v10  ;;  %305 = vrot.lane.b32.xlu1 %v4858_v12, %s5308_s11  ;;  %v77_v26 = vld [vmem:[%s7423_s0 + $0x60] sm:$0xff]  ;;  %v4564_v28 = vcombine.low %v804_v17, %v804_v17  ;;  %v4565_v29 = vcombine.high %v804_v17, %v804_v17  ;;  %v131_v30 = vmax.f32 %v83_v22, 0.0  ;;  %v79_v38 = vld [vmem:[%s7423_s0 + $0x70] sm:$0xff]  ;;  %v80_v39 = vld [vmem:[%s7423_s0 + $0x78] sm:$0xff]  ;;  %s5310_s13 = smov 2   ;;  %s5312_s16 = smov 16  }
  0x1e   :  { %v4857_v32 = vpack.c.bf16 %v136_v21, %v135_v20  ;;  %v132_v33 = vmax.f32 %v84_v25, 0.0  ;;  %v125_v34 = vmax.f32 %v77_v26, 0.0  ;;  %v126_v35 = vmax.f32 %v78_v27, 0.0  ;;  %v73_v46 = vld [vmem:[%s7423_s0 + $0x40] sm:$0xff]  ;;  %v74_v47 = vld [vmem:[%s7423_s0 + $0x48] sm:$0xff]  ;;  %v75_v51 = vld [vmem:[%s7423_s0 + $0x50] sm:$0xff] }
  0x1f   :  { %v4854_v37 = vpack.c.bf16 %v130_v24, %v129_v23  ;;  %v811_v40 = vpack.i.b16 %v4564_v28, %v4564_v28  ;;  %v818_v42 = vpack.i.b16 %v4565_v29, %v4565_v29  ;;  %v127_v44 = vmax.f32 %v79_v38, 0.0  ;;  %v76_v52 = vld [vmem:[%s7423_s0 + $0x58] sm:$0xff]  ;;  %v1052_v53 = vld [vmem:[%s7424_s2] sm:$0x22]  ;;  %v71_v58 = vld [vmem:[%s7423_s0 + $0x30] sm:$0xff]  ;;  %s5314_s19 = smov 126  }
  0x20   :  { %311 = vrot.lane.b32.xlu0 %v4861_v8, %s5308_s11  ;;  %v4855_v43 = vpack.c.bf16 %v132_v33, %v131_v30  ;;  %v128_v45 = vmax.f32 %v80_v39, 0.0  ;;  %v4852_v48 = vpack.c.bf16 %v126_v35, %v125_v34  ;;  %v121_v54 = vmax.f32 %v73_v46, 0.0  ;;  %v69_v59 = vld [vmem:[%s7423_s0 + $0x20] sm:$0xff]  ;;  %v70_v60 = vld [vmem:[%s7423_s0 + $0x28] sm:$0xff]  ;;  %v72_v3 = vld [vmem:[%s7423_s0 + $0x38] sm:$0xff]  ;;  %s5315_s22 = smov 113  }
  0x21   :  { %301 = vrot.lane.b32.xlu1 %v4856_v19, %s5308_s11  ;;  %v816_v49 = vrot.slane %v811_v40, %v5536_v41  ;;  %v823_v50 = vrot.slane %v818_v42, %v5536_v41  ;;  %v122_v55 = vmax.f32 %v74_v47, 0.0  ;;  %v123_v57 = vmax.f32 %v75_v51, 0.0  ;;  %v1302_v1 = vld [vmem:[%s7424_s2] sm:$0x44]  ;;  %v67_v8 = vld [vmem:[%s7423_s0 + $0x10] sm:$0xff]  ;;  %v66_v10 = vld [vmem:[%s7423_s0 + $0x8] sm:$0xff] }
  0x22   :  { %v4853_v56 = vpack.c.bf16 %v128_v45, %v127_v44  ;;  %v124_v62 = vmax.f32 %v76_v52, 0.0  ;;  %v4567_v63 = vcombine.low %v1052_v53, %v1052_v53  ;;  %v4568_v0 = vcombine.high %v1052_v53, %v1052_v53  ;;  %v1549_v2 = vld [vmem:[%s7424_s2] sm:$0x44]  ;;  %v68_v19 = vld [vmem:[%s7423_s0 + $0x18] sm:$0xff]  ;;  %s5316_s23 = smov 29   ;;  %s5317_s26 = smov 114  }
  0x23   :  { %v4566_v61 = vcombine.low %v816_v49, %v823_v50  ;;  %v4850_v4 = vpack.c.bf16 %v122_v55, %v121_v54  ;;  %v119_v5 = vmax.f32 %v71_v58, 0.0  ;;  %v117_v6 = vmax.f32 %v69_v59, 0.0  ;;  %v65_v9 = vld [vmem:[%s7423_s0] sm:$0xff]  ;;  %s5311_s0 = smov 14   ;;  %s5318_s4 = smov 28  }
  0x24   :  { %307 = vrot.lane.b32.xlu0 %v4859_v18, %s5308_s11  ;;  %v118_v7 = vmax.f32 %v70_v60, 0.0  ;;  %v4570_v11 = vcombine.low %v1302_v1, %v1302_v1  ;;  %v4571_v12 = vcombine.high %v1302_v1, %v1302_v1  ;;  %v4573_v13 = vcombine.low %v1549_v2, %v1549_v2  ;;  %v453_v49 = vld [vmem:[%s7424_s2] sm:$0x11]  ;;  %s5319_s5 = smov 112   ;;  %s5320_s12 = smov 99  }
  0x25   :  { %297 = vrot.lane.b32.xlu1 %v4854_v37, %s5308_s11  ;;  %v4574_v14 = vcombine.high %v1549_v2, %v1549_v2  ;;  %v4851_v15 = vpack.c.bf16 %v124_v62, %v123_v57  ;;  %v120_v16 = vmax.f32 %v72_v3, 0.0  ;;  %v1059_v17 = vshrl.u32 %v4567_v63, 16  ;;  %s5322_s6 = smov 100   ;;  %s5323_s14 = smov 98  }
  0x26   :  { %v1067_v18 = vshrl.u32 %v4568_v0, 16  ;;  %v115_v20 = vmax.f32 %v67_v8, 0.0  ;;  %v4848_v21 = vpack.c.bf16 %v118_v7, %v117_v6  ;;  %v113_v22 = vmax.f32 %v65_v9, 0.0 }
  0x27   :  { %v114_v23 = vmax.f32 %v66_v10, 0.0  ;;  %v1313_v24 = vsub.s32 2, %v5442_v31  ;;  %v1309_v25 = vpack.i.b16 %v4570_v11, %v4570_v11  ;;  %v1316_v26 = vpack.i.b16 %v4571_v12, %v4571_v12  ;;  %v5303_v11 = vld [vmem:[%s7425_s1 + $0x114] ss:$56 sps:$4 sm:$0xff]  }
  0x28   :  { %303 = vrot.lane.b32.xlu0 %v4857_v32, %s5308_s11  ;;  %v1556_v27 = vshrl.u32 %v4573_v13, 16  ;;  %v1564_v28 = vshrl.u32 %v4574_v14, 16  ;;  %v4849_v29 = vpack.c.bf16 %v120_v16, %v119_v5  ;;  %v116_v30 = vmax.f32 %v68_v19, 0.0 }
  0x29   :  { %293 = vrot.lane.b32.xlu1 %v4852_v48, %s5308_s11  ;;  %v1060_v32 = vpack.i.b16 %v1059_v17, %v1059_v17  ;;  %v1068_v33 = vpack.i.b16 %v1067_v18, %v1067_v18  ;;  %v4846_v34 = vpack.c.bf16 %v114_v23, %v113_v22  ;;  %v1314_v35 = vrot.slane %v1309_v25, %v1313_v24 }
  0x2a   :  { %v1321_v37 = vrot.slane %v1316_v26, %v1313_v24  ;;  %v1557_v38 = vpack.i.b16 %v1556_v27, %v1556_v27  ;;  %v1565_v39 = vpack.i.b16 %v1564_v28, %v1564_v28  ;;  %v4847_v40 = vpack.c.bf16 %v116_v30, %v115_v20 }
  0x2b   :  { %v1065_v42 = vrot.slane %v1060_v32, %v5536_v41  ;;  %v4559_v50 = vcombine.high %v453_v49, %v453_v49  ;;  %vm402_vm2 = vcmask 1043576   ;;  %vm403_vm3 = vcmask 678916  }
  0x2c   :  { %299 = vrot.lane.b32.xlu0 %v4855_v43, %s5308_s11  ;;  %v1073_v43 = vrot.slane %v1068_v33, %v5536_v41  ;;  %v4572_v44 = vcombine.low %v1314_v35, %v1321_v37  ;;  %v1562_v45 = vrot.slane %v1557_v38, %v1313_v24  ;;  %v1570_v46 = vrot.slane %v1565_v39, %v1313_v24  ;;  %vm5603_vm5 = vmor %vm403_vm3, %vm402_vm2 }
  0x2d   :  { %829 = vrot.lane.b32.xlu1 %v4566_v61, %s5310_s13  ;;  %v4558_v41 = vcombine.low %v453_v49, %v453_v49  ;;  %v467_v52 = vpack.i.b16 %v4559_v50, %v4559_v50  ;;  %vm353_vm4 = vcmask 121856   ;;  %vm503_vm6 = vcmask 1043456  }
  0x2e   :  { %v4569_v47 = vcombine.low %v1065_v42, %v1073_v43  ;;  %v4575_v48 = vcombine.low %v1562_v45, %v1570_v46  ;;  %vm504_vm7 = vcmask 556036   ;;  %vm584_vm9 = vcmask 7168  }
  0x2f   :  { %v460_v51 = vpack.i.b16 %v4558_v41, %v4558_v41  ;;  %v472_v60 = vrot.slane %v467_v52, %v5451_v36  ;;  %vm5626_vm8 = vmor %vm504_vm7, %vm503_vm6  ;;  %vm832_vm10 = vcmask 15360   ;;  %vm1579_vm11 = vcmask 130048  }
  0x30   :  { %295 = vrot.lane.b32.xlu0 %v4853_v56, %s5308_s11  ;;  %vm1082_vm12 = vcmask 113664   ;;  %vm707_vm13 = vcmask 1039360   ;;  %vm955_vm14 = vcmask 1031168   ;;  %vm1452_vm15 = vcmask 924672  }
  0x31   :  { %291 = vrot.lane.b32.xlu1 %v4851_v15, %s5308_s11  ;;  %v465_v59 = vrot.slane %v460_v51, %v5451_v36  ;;  %vm2077_vm0 = vcmask 236544   ;;  %vm1205_vm1 = vcmask 932864   ;;  %vm1827_vm2 = vcmask 228352  }
  0x32   :  { %vm1702_vm3 = vcmask 916480   ;;  %vm1950_vm6 = vcmask 818176   ;;  %vm2448_vm7 = vcmask 801792  }
  0x33   :  { %v5616_v3 = vcombine.low %v465_v59, %v472_v60 }
  0x34   :  { %289 = vrot.lane.b32.xlu0 %v4850_v4, %s5308_s11 }
  0x35   :  { %287 = vrot.lane.b32.xlu1 %v4849_v29, %s5308_s11 }
  0x38   :  { %285 = vrot.lane.b32.xlu0 %v4848_v21, %s5308_s11 }
  0x39   :  { %283 = vrot.lane.b32.xlu1 %v4847_v40, %s5308_s11 }
  0x3c   :  { %281 = vrot.lane.b32.xlu0 %v4846_v34, %s5308_s11 }
  0x3d   :  { %1079 = vrot.lane.b32.xlu1 %v4569_v47, %s5311_s0 }
  0x40   :  { %1327 = vrot.lane.b32.xlu0 %v4572_v44, %s5308_s11  ;;  %s5313_s11 = smov 127  }
  0x44   :  { %1576 = vrot.lane.b32.xlu0 %v4575_v48, %s5312_s16  ;;  %s5321_s16 = smov 30  }
  0x79   :  { %v326_v53 = vpop.permute.xlu0 %325 }
  0x7a   :  { %v351_v55 = vrot.slane %v326_v53, 4 }
  0x7b   :  { %v322_v56 = vpop.permute.xlu1 %321 }
  0x7c   :  { %v349_v57 = vrot.slane %v322_v56, 4  ;;  %v376_v58 = vsel %vm353_vm4, %v351_v55, %v326_v53 }
  0x7d   :  { %427 = vst.msk [vmem:[#allocation2 + $0xb0] sm:$0xff] %vm5603_vm5, %v376_v58  ;;  %v328_v62 = vpop.permute.xlu0 %327 }
  0x7e   :  { %v374_v61 = vsel %vm353_vm4, %v349_v57, %v322_v56  ;;  %v352_v63 = vrot.slane %v328_v62, 4 }
  0x7f   :  { %425 = vst.msk [vmem:[#allocation2 + $0xa0] sm:$0xff] %vm5603_vm5, %v374_v61  ;;  %v324_v0 = vpop.permute.xlu1 %323 }
  0x80   :  { %v350_v1 = vrot.slane %v324_v0, 4  ;;  %v377_v2 = vsel %vm353_vm4, %v352_v63, %v328_v62 }
  0x81   :  { %428 = vst.msk [vmem:[#allocation2 + $0xb8] sm:$0xff] %vm5603_vm5, %v377_v2 }
  0x82   :  { %v375_v4 = vsel %vm353_vm4, %v350_v1, %v324_v0 }
  0x83   :  { %v318_v5 = vpop.permute.xlu0 %317  ;;  %426 = vst.msk [vmem:[#allocation2 + $0xa8] sm:$0xff] %vm5603_vm5, %v375_v4  ;;  %v320_v6 = vpop.permute.xlu1 %319 }
  0x84   :  { %v347_v7 = vrot.slane %v318_v5, 4  ;;  %v348_v8 = vrot.slane %v320_v6, 4  ;;  %v5623_v9 = vld [vmem:[#allocation2 + $0xb0] sm:$0xff] }
  0x85   :  { %v501_v15 = vmul.bf16 %v5616_v3, %v5623_v9 }
  0x86   :  { %v372_v10 = vsel %vm353_vm4, %v347_v7, %v318_v5  ;;  %v5630_v12 = vld [vmem:[#allocation2 + $0xa0] sm:$0xff]  ;;  %v373_v13 = vsel %vm353_vm4, %v348_v8, %v320_v6 }
  0x87   :  { %423 = vst.msk [vmem:[#allocation2 + $0x90] sm:$0xff] %vm5603_vm5, %v372_v10  ;;  %424 = vst.msk [vmem:[#allocation2 + $0x98] sm:$0xff] %vm5603_vm5, %v373_v13  ;;  %v314_v17 = vpop.permute.xlu1 %313  ;;  %v499_v18 = vmul.bf16 %v5616_v3, %v5630_v12 }
  0x88   :  { %v345_v19 = vrot.slane %v314_v17, 4  ;;  %528 = vst.msk [vmem:[#allocation3 + $0xb0] sm:$0xff] %vm5626_vm8, %v501_v15  ;;  %v5643_v20 = vld [vmem:[#allocation2 + $0xb8] sm:$0xff] }
  0x89   :  { %526 = vst.msk [vmem:[#allocation3 + $0xa0] sm:$0xff] %vm5626_vm8, %v499_v18  ;;  %v502_v29 = vmul.bf16 %v5616_v3, %v5643_v20 }
  0x8a   :  { %v582_v14 = vpop.permute.xlu0 %581  ;;  %v5649_v22 = vld [vmem:[#allocation2 + $0xa8] sm:$0xff]  ;;  %v370_v23 = vsel %vm353_vm4, %v345_v19, %v314_v17 }
  0x8b   :  { %v583_v16 = vrot.slane %v582_v14, 4  ;;  %421 = vst.msk [vmem:[#allocation2 + $0x80] sm:$0xff] %vm5603_vm5, %v370_v23  ;;  %v310_v28 = vpop.permute.xlu1 %309  ;;  %v500_v30 = vmul.bf16 %v5616_v3, %v5649_v22 }
  0x8c   :  { %v343_v32 = vrot.slane %v310_v28, 4  ;;  %529 = vst.msk [vmem:[#allocation3 + $0xb8] sm:$0xff] %vm5626_vm8, %v502_v29 }
  0x8d   :  { %v5645_v21 = vsel %vm584_vm9, %v583_v16, %v582_v14  ;;  %527 = vst.msk [vmem:[#allocation3 + $0xa8] sm:$0xff] %vm5626_vm8, %v500_v30  ;;  %vm4066_vm9 = vcmask 523264  }
  0x8e   :  { %v316_v24 = vpop.permute.xlu0 %315  ;;  %v610_v25 = vmul.bf16 %v5645_v21, %v5643_v20  ;;  %v609_v26 = vmul.bf16 %v5645_v21, %v5623_v9  ;;  %v5664_v33 = vld [vmem:[#allocation2 + $0x90] sm:$0xff]  ;;  %v5671_v35 = vld [vmem:[#allocation2 + $0x98] sm:$0xff]  ;;  %v368_v37 = vsel %vm353_vm4, %v343_v32, %v310_v28  ;;  %v607_v39 = vmul.bf16 %v5645_v21, %v5630_v12 }
  0x8f   :  { %v346_v27 = vrot.slane %v316_v24, 4  ;;  %v608_v40 = vmul.bf16 %v5645_v21, %v5649_v22  ;;  %v497_v42 = vmul.bf16 %v5616_v3, %v5664_v33  ;;  %419 = vst.msk [vmem:[#allocation2 + $0x70] sm:$0xff] %vm5603_vm5, %v368_v37  ;;  %v306_v44 = vpop.permute.xlu1 %305  ;;  %v498_v45 = vmul.bf16 %v5616_v3, %v5671_v35 }
  0x90   :  { %681 = vrot.lane.b32.xlu1 %v610_v25, %s5313_s11  ;;  %679 = vrot.lane.b32.xlu0 %v609_v26, %s5313_s11  ;;  %v341_v46 = vrot.slane %v306_v44, 4  ;;  %v605_v50 = vmul.bf16 %v5645_v21, %v5664_v33  ;;  %v606_v51 = vmul.bf16 %v5645_v21, %v5671_v35 }
  0x91   :  { %v371_v34 = vsel %vm353_vm4, %v346_v27, %v316_v24  ;;  %524 = vst.msk [vmem:[#allocation3 + $0x90] sm:$0xff] %vm5626_vm8, %v497_v42  ;;  %525 = vst.msk [vmem:[#allocation3 + $0x98] sm:$0xff] %vm5626_vm8, %v498_v45 }
  0x92   :  { %422 = vst.msk [vmem:[#allocation2 + $0x88] sm:$0xff] %vm5603_vm5, %v371_v34  ;;  %v312_v38 = vpop.permute.xlu0 %311  ;;  %v445_v48 = vld [vmem:[#allocation2 + $0x80] sm:$0xff]  ;;  %v366_v49 = vsel %vm353_vm4, %v341_v46, %v306_v44 }
  0x93   :  { %v344_v43 = vrot.slane %v312_v38, 4  ;;  %417 = vst.msk [vmem:[#allocation2 + $0x60] sm:$0xff] %vm5603_vm5, %v366_v49  ;;  %v302_v53 = vpop.permute.xlu1 %301  ;;  %v495_v55 = vmul.bf16 %v5616_v3, %v445_v48  ;;  %v603_v62 = vmul.bf16 %v5645_v21, %v445_v48 }
  0x94   :  { %675 = vrot.lane.b32.xlu1 %v607_v39, %s5313_s11  ;;  %677 = vrot.lane.b32.xlu0 %v608_v40, %s5313_s11  ;;  %v339_v56 = vrot.slane %v302_v53, 4 }
  0x95   :  { %v369_v47 = vsel %vm353_vm4, %v344_v43, %v312_v38  ;;  %522 = vst.msk [vmem:[#allocation3 + $0x80] sm:$0xff] %vm5626_vm8, %v495_v55 }
  0x96   :  { %420 = vst.msk [vmem:[#allocation2 + $0x78] sm:$0xff] %vm5603_vm5, %v369_v47  ;;  %v308_v41 = vpop.permute.xlu0 %307  ;;  %v364_v59 = vsel %vm353_vm4, %v339_v56, %v302_v53  ;;  %v5713_v63 = vld [vmem:[#allocation2 + $0x70] sm:$0xff] }
  0x97   :  { %v342_v52 = vrot.slane %v308_v41, 4  ;;  %415 = vst.msk [vmem:[#allocation2 + $0x50] sm:$0xff] %vm5603_vm5, %v364_v59  ;;  %v298_v2 = vpop.permute.xlu1 %297  ;;  %v493_v4 = vmul.bf16 %v5616_v3, %v5713_v63  ;;  %v601_v15 = vmul.bf16 %v5645_v21, %v5713_v63 }
  0x98   :  { %671 = vrot.lane.b32.xlu1 %v605_v50, %s5313_s11  ;;  %673 = vrot.lane.b32.xlu0 %v606_v51, %s5313_s11  ;;  %v337_v5 = vrot.slane %v298_v2, 4 }
  0x99   :  { %v446_v57 = vld [vmem:[#allocation2 + $0x88] sm:$0xff]  ;;  %v367_v58 = vsel %vm353_vm4, %v342_v52, %v308_v41  ;;  %520 = vst.msk [vmem:[#allocation3 + $0x70] sm:$0xff] %vm5626_vm8, %v493_v4 }
  0x9a   :  { %418 = vst.msk [vmem:[#allocation2 + $0x68] sm:$0xff] %vm5603_vm5, %v367_v58  ;;  %v304_v60 = vpop.permute.xlu0 %303  ;;  %v604_v61 = vmul.bf16 %v5645_v21, %v446_v57  ;;  %v496_v0 = vmul.bf16 %v5616_v3, %v446_v57  ;;  %v5729_v8 = vld [vmem:[#allocation2 + $0x60] sm:$0xff]  ;;  %v362_v10 = vsel %vm353_vm4, %v337_v5, %v298_v2 }
  0x9b   :  { %v340_v1 = vrot.slane %v304_v60, 4  ;;  %413 = vst.msk [vmem:[#allocation2 + $0x40] sm:$0xff] %vm5603_vm5, %v362_v10  ;;  %v294_v18 = vpop.permute.xlu1 %293  ;;  %v491_v19 = vmul.bf16 %v5616_v3, %v5729_v8  ;;  %v599_v30 = vmul.bf16 %v5645_v21, %v5729_v8 }
  0x9c   :  { %669 = vrot.lane.b32.xlu1 %v604_v61, %s5313_s11  ;;  %667 = vrot.lane.b32.xlu0 %v603_v62, %s5313_s11  ;;  %523 = vst.msk [vmem:[#allocation3 + $0x88] sm:$0xff] %vm5626_vm8, %v496_v0  ;;  %v335_v23 = vrot.slane %v294_v18, 4 }
  0x9d   :  { %v365_v6 = vsel %vm353_vm4, %v340_v1, %v304_v60  ;;  %v5725_v7 = vld [vmem:[#allocation2 + $0x78] sm:$0xff]  ;;  %518 = vst.msk [vmem:[#allocation3 + $0x60] sm:$0xff] %vm5626_vm8, %v491_v19 }
  0x9e   :  { %416 = vst.msk [vmem:[#allocation2 + $0x58] sm:$0xff] %vm5603_vm5, %v365_v6  ;;  %v300_v13 = vpop.permute.xlu0 %299  ;;  %v602_v14 = vmul.bf16 %v5645_v21, %v5725_v7  ;;  %v494_v16 = vmul.bf16 %v5616_v3, %v5725_v7  ;;  %v5753_v26 = vld [vmem:[#allocation2 + $0x50] sm:$0xff]  ;;  %v360_v27 = vsel %vm353_vm4, %v335_v23, %v294_v18 }
  0x9f   :  { %v338_v17 = vrot.slane %v300_v13, 4  ;;  %411 = vst.msk [vmem:[#allocation2 + $0x30] sm:$0xff] %vm5603_vm5, %v360_v27  ;;  %v830_v37 = vpop.permute.xlu1 %829  ;;  %v489_v38 = vmul.bf16 %v5616_v3, %v5753_v26  ;;  %v597_v46 = vmul.bf16 %v5645_v21, %v5753_v26 }
  0xa0   :  { %665 = vrot.lane.b32.xlu1 %v602_v14, %s5313_s11  ;;  %663 = vrot.lane.b32.xlu0 %v601_v15, %s5313_s11  ;;  %521 = vst.msk [vmem:[#allocation3 + $0x78] sm:$0xff] %vm5626_vm8, %v494_v16  ;;  %v831_v42 = vrot.slane %v830_v37, 4  ;;  %v2577_v43 = vld [vmem:[#allocation3 + $0x70] sm:$0xff] }
  0xa1   :  { %v5748_v24 = vld [vmem:[#allocation2 + $0x68] sm:$0xff]  ;;  %v363_v25 = vsel %vm353_vm4, %v338_v17, %v300_v13  ;;  %516 = vst.msk [vmem:[#allocation3 + $0x50] sm:$0xff] %vm5626_vm8, %v489_v38 }
  0xa2   :  { %414 = vst.msk [vmem:[#allocation2 + $0x48] sm:$0xff] %vm5603_vm5, %v363_v25  ;;  %v296_v28 = vpop.permute.xlu0 %295  ;;  %v600_v29 = vmul.bf16 %v5645_v21, %v5748_v24  ;;  %v492_v32 = vmul.bf16 %v5616_v3, %v5748_v24  ;;  %v5785_v48 = vld [vmem:[#allocation2 + $0x40] sm:$0xff]  ;;  %v5794_v56 = vsel %vm832_vm10, %v831_v42, %v830_v37 }
  0xa3   :  { %v336_v34 = vrot.slane %v296_v28, 4  ;;  %v292_v49 = vpop.permute.xlu1 %291  ;;  %v487_v59 = vmul.bf16 %v5616_v3, %v5785_v48  ;;  %v595_v1 = vmul.bf16 %v5645_v21, %v5785_v48  ;;  %v858_v16 = vmul.bf16 %v5794_v56, %v5643_v20 }
  0xa4   :  { %661 = vrot.lane.b32.xlu1 %v600_v29, %s5313_s11  ;;  %659 = vrot.lane.b32.xlu0 %v599_v30, %s5313_s11  ;;  %519 = vst.msk [vmem:[#allocation3 + $0x68] sm:$0xff] %vm5626_vm8, %v492_v32  ;;  %v334_v52 = vrot.slane %v292_v49, 4  ;;  %v2575_v58 = vld [vmem:[#allocation3 + $0x60] sm:$0xff]  ;;  %v857_v19 = vmul.bf16 %v5794_v56, %v5623_v9  ;;  %v856_v23 = vmul.bf16 %v5794_v56, %v5649_v22 }
  0xa5   :  { %v5772_v39 = vld [vmem:[#allocation2 + $0x58] sm:$0xff]  ;;  %v361_v40 = vsel %vm353_vm4, %v336_v34, %v296_v28  ;;  %514 = vst.msk [vmem:[#allocation3 + $0x40] sm:$0xff] %vm5626_vm8, %v487_v59  ;;  %v855_v25 = vmul.bf16 %v5794_v56, %v5630_v12  ;;  %v850_v29 = vmul.bf16 %v5794_v56, %v5725_v7  ;;  %v849_v30 = vmul.bf16 %v5794_v56, %v5713_v63 }
  0xa6   :  { %412 = vst.msk [vmem:[#allocation2 + $0x38] sm:$0xff] %vm5603_vm5, %v361_v40  ;;  %v290_v44 = vpop.permute.xlu0 %289  ;;  %v598_v45 = vmul.bf16 %v5645_v21, %v5772_v39  ;;  %v490_v47 = vmul.bf16 %v5616_v3, %v5772_v39  ;;  %v5799_v60 = vld [vmem:[#allocation2 + $0x30] sm:$0xff]  ;;  %v359_v61 = vsel %vm353_vm4, %v334_v52, %v292_v49 }
  0xa7   :  { %v333_v41 = vrot.slane %v290_v44, 4  ;;  %v2578_v50 = vld [vmem:[#allocation3 + $0x78] sm:$0xff]  ;;  %410 = vst.msk [vmem:[#allocation2 + $0x28] sm:$0xff] %vm5603_vm5, %v359_v61  ;;  %v288_v4 = vpop.permute.xlu1 %287  ;;  %v485_v13 = vmul.bf16 %v5616_v3, %v5799_v60 }
  0xa8   :  { %v4923_v51 = vld [vmem:[#allocation3 + $0x74] ss:$8 sps:$4 sm:$0xff]   ;;  %657 = vrot.lane.b32.xlu1 %v598_v45, %s5313_s11  ;;  %655 = vrot.lane.b32.xlu0 %v597_v46, %s5313_s11  ;;  %v4641_v53 = vcombine.low %v2577_v43, %v2578_v50  ;;  %517 = vst.msk [vmem:[#allocation3 + $0x58] sm:$0xff] %vm5626_vm8, %v490_v47  ;;  %v332_v14 = vrot.slane %v288_v4, 4  ;;  %v847_v50 = vmul.bf16 %v5794_v56, %v5729_v8 }
  0xa9   :  { %v5791_v55 = vld [vmem:[#allocation2 + $0x48] sm:$0xff]  ;;  %v358_v57 = vsel %vm353_vm4, %v333_v41, %v290_v44  ;;  %4076 = vmatprep.subr.bf16.mxu0 %v4923_v51  ;;  %512 = vst.msk [vmem:[#allocation3 + $0x30] sm:$0xff] %vm5626_vm8, %v485_v13  ;;  %v848_v51 = vmul.bf16 %v5794_v56, %v5748_v24 }
  0xaa   :  { %409 = vst.msk [vmem:[#allocation2 + $0x20] sm:$0xff] %vm5603_vm5, %v358_v57  ;;  %v286_v62 = vpop.permute.xlu0 %285  ;;  %4077 = vmatpush1.bf16.msra.mxu0 %v4641_v53  ;;  %v596_v0 = vmul.bf16 %v5645_v21, %v5791_v55  ;;  %v488_v2 = vmul.bf16 %v5616_v3, %v5791_v55  ;;  %v357_v27 = vsel %vm353_vm4, %v332_v14, %v288_v4 }
  0xab   :  { %v331_v5 = vrot.slane %v286_v62, 4  ;;  %v2576_v6 = vld [vmem:[#allocation3 + $0x68] sm:$0xff]  ;;  %408 = vst.msk [vmem:[#allocation2 + $0x18] sm:$0xff] %vm5603_vm5, %v357_v27  ;;  %v284_v34 = vpop.permute.xlu1 %283 }
  0xac   :  { %v4925_v10 = vld [vmem:[#allocation3 + $0x64] ss:$8 sps:$4 sm:$0xff]   ;;  %653 = vrot.lane.b32.xlu1 %v596_v0, %s5313_s11  ;;  %651 = vrot.lane.b32.xlu0 %v595_v1, %s5313_s11  ;;  %v4639_v15 = vcombine.low %v2575_v58, %v2576_v6  ;;  %515 = vst.msk [vmem:[#allocation3 + $0x48] sm:$0xff] %vm5626_vm8, %v488_v2  ;;  %v330_v44 = vrot.slane %v284_v34, 4  ;;  %v593_v0 = vmul.bf16 %v5645_v21, %v5799_v60 }
  0xad   :  { %v5822_v17 = vld [vmem:[#allocation2 + $0x38] sm:$0xff]  ;;  %v356_v18 = vsel %vm353_vm4, %v331_v5, %v286_v62  ;;  %4078 = vmatprep.subr.bf16.mxu0 %v4925_v10 }
  0xae   :  { %407 = vst.msk [vmem:[#allocation2 + $0x10] sm:$0xff] %vm5603_vm5, %v356_v18  ;;  %v282_v28 = vpop.permute.xlu0 %281  ;;  %4079 = vmatpush1.bf16.msra.mxu0 %v4639_v15  ;;  %v486_v32 = vmul.bf16 %v5616_v3, %v5822_v17  ;;  %v5855_v47 = vld [vmem:[#allocation2 + $0x28] sm:$0xff]  ;;  %v355_v49 = vsel %vm353_vm4, %v330_v44, %v284_v34  ;;  %v594_v1 = vmul.bf16 %v5645_v21, %v5822_v17 }
  0xaf   :  { %v329_v37 = vrot.slane %v282_v28, 4  ;;  %v4927_v38 = vld [vmem:[#allocation3 + $0x54] ss:$8 sps:$4 sm:$0xff]   ;;  %v4929_v40 = vld [vmem:[#allocation3 + $0x50] ss:$8 sps:$4 sm:$0xff]   ;;  %406 = vst.msk [vmem:[#allocation2 + $0x8] sm:$0xff] %vm5603_vm5, %v355_v49  ;;  %v484_v59 = vmul.bf16 %v5616_v3, %v5855_v47 }
  0xb0   :  { %913 = vrot.lane.b32.xlu1 %v850_v29, %s5314_s19  ;;  %911 = vrot.lane.b32.xlu0 %v849_v30, %s5314_s19  ;;  %513 = vst.msk [vmem:[#allocation3 + $0x38] sm:$0xff] %vm5626_vm8, %v486_v32  ;;  %v846_v29 = vmul.bf16 %v5794_v56, %v5772_v39 }
  0xb1   :  { %v5852_v45 = vld [vmem:[#allocation2 + $0x20] sm:$0xff]  ;;  %v354_v46 = vsel %vm353_vm4, %v329_v37, %v282_v28  ;;  %4080 = vmatprep.subr.bf16.mxu0 %v4927_v38  ;;  %511 = vst.msk [vmem:[#allocation3 + $0x28] sm:$0xff] %vm5626_vm8, %v484_v59  ;;  %v845_v28 = vmul.bf16 %v5794_v56, %v5753_v26 }
  0xb2   :  { %405 = vst.msk [vmem:[#allocation2] sm:$0xff] %vm5603_vm5, %v354_v46  ;;  %v1328_v41 = vpop.permute.xlu0 %1327  ;;  %4081 = vmatpush1.bf16.msra.mxu0 %v4929_v40  ;;  %v483_v52 = vmul.bf16 %v5616_v3, %v5852_v45  ;;  %v5881_v54 = vld [vmem:[#allocation2 + $0x18] sm:$0xff]  ;;  %v591_v49 = vmul.bf16 %v5645_v21, %v5852_v45  ;;  %vm2325_vm5 = vcmask 244736  }
  0xb3   :  { %v1329_v53 = vrot.slane %v1328_v41, 4  ;;  %v4930_v57 = vld [vmem:[#allocation3 + $0x44] ss:$8 sps:$4 sm:$0xff]   ;;  %v4932_v58 = vld [vmem:[#allocation3 + $0x40] ss:$8 sps:$4 sm:$0xff]   ;;  %v482_v6 = vmul.bf16 %v5616_v3, %v5881_v54 }
  0xb4   :  { %907 = vrot.lane.b32.xlu1 %v847_v50, %s5314_s19  ;;  %909 = vrot.lane.b32.xlu0 %v848_v51, %s5314_s19  ;;  %510 = vst.msk [vmem:[#allocation3 + $0x20] sm:$0xff] %vm5626_vm8, %v483_v52 }
  0xb5   :  { %v5874_v61 = vld [vmem:[#allocation2 + $0x10] sm:$0xff]  ;;  %v5877_v62 = vsel %vm353_vm4, %v1329_v53, %v1328_v41  ;;  %4082 = vmatprep.subr.bf16.mxu0 %v4930_v57  ;;  %509 = vst.msk [vmem:[#allocation3 + $0x18] sm:$0xff] %vm5626_vm8, %v482_v6  ;;  %v592_v41 = vmul.bf16 %v5645_v21, %v5855_v47  ;;  %vm2200_vm4 = vcmask 809984  }
  0xb6   :  { %4083 = vmatpush1.bf16.msra.mxu0 %v4932_v58  ;;  %v481_v2 = vmul.bf16 %v5616_v3, %v5874_v61  ;;  %v1347_v10 = vmul.bf16 %v5877_v62, %v5725_v7  ;;  %v1346_v13 = vmul.bf16 %v5877_v62, %v5713_v63  ;;  %v1344_v14 = vmul.bf16 %v5877_v62, %v5729_v8  ;;  %v5907_v27 = vld [vmem:[#allocation2 + $0x8] sm:$0xff]  ;;  %v1799_v8 = vld [vmem:[%s7424_s2] sm:$0x88] }
  0xb7   :  { %v4933_v4 = vld [vmem:[#allocation3 + $0x34] ss:$8 sps:$4 sm:$0xff]   ;;  %v4935_v5 = vld [vmem:[#allocation3 + $0x30] ss:$8 sps:$4 sm:$0xff]   ;;  %v1345_v18 = vmul.bf16 %v5877_v62, %v5748_v24  ;;  %v1342_v32 = vmul.bf16 %v5877_v62, %v5753_v26  ;;  %v480_v34 = vmul.bf16 %v5616_v3, %v5907_v27  ;;  %v1343_v37 = vmul.bf16 %v5877_v62, %v5772_v39  ;;  %v5019_v7 = vld [vmem:[%s7425_s1 + $0xc] ss:$56 sps:$4 sm:$0xff]  }
  0xb8   :  { %647 = vrot.lane.b32.xlu1 %v593_v0, %s5313_s11  ;;  %649 = vrot.lane.b32.xlu0 %v594_v1, %s5313_s11  ;;  %508 = vst.msk [vmem:[#allocation3 + $0x10] sm:$0xff] %vm5626_vm8, %v481_v2  ;;  %v1340_v44 = vmul.bf16 %v5877_v62, %v5785_v48  ;;  %v1338_v46 = vmul.bf16 %v5877_v62, %v5799_v60  ;;  %v1577_v2 = vpop.permute.xlu0 %1576 }
  0xb9   :  { %v5901_v15 = vld [vmem:[#allocation2] sm:$0xff]  ;;  %4084 = vmatprep.subr.bf16.mxu0 %v4933_v4  ;;  %507 = vst.msk [vmem:[#allocation3 + $0x8] sm:$0xff] %vm5626_vm8, %v480_v34  ;;  %v1339_v50 = vmul.bf16 %v5877_v62, %v5822_v17  ;;  %v1337_v51 = vmul.bf16 %v5877_v62, %v5855_v47  ;;  %v1336_v52 = vmul.bf16 %v5877_v62, %v5852_v45  ;;  %v1578_v6 = vrot.slane %v1577_v2, 4 }
  0xba   :  { %4085 = vmatpush1.bf16.msra.mxu0 %v4935_v5  ;;  %v479_v30 = vmul.bf16 %v5616_v3, %v5901_v15  ;;  %v1341_v3 = vmul.bf16 %v5877_v62, %v5791_v55  ;;  %v1335_v53 = vmul.bf16 %v5877_v62, %v5881_v54  ;;  %v1334_v57 = vmul.bf16 %v5877_v62, %v5874_v61 }
  0xbb   :  { %v4936_v38 = vld [vmem:[#allocation3 + $0x24] ss:$8 sps:$4 sm:$0xff]   ;;  %v4938_v40 = vld [vmem:[#allocation3 + $0x20] ss:$8 sps:$4 sm:$0xff]   ;;  %v1333_v58 = vmul.bf16 %v5877_v62, %v5907_v27  ;;  %v843_v4 = vmul.bf16 %v5794_v56, %v5785_v48  ;;  %v844_v5 = vmul.bf16 %v5794_v56, %v5791_v55  ;;  %v590_v34 = vmul.bf16 %v5645_v21, %v5881_v54  ;;  %4171 = vmatprep.mubr.bf16.mxu1 %v5019_v7 }
  0xbc   :  { %903 = vrot.lane.b32.xlu1 %v845_v28, %s5314_s19  ;;  %905 = vrot.lane.b32.xlu0 %v846_v29, %s5314_s19  ;;  %506 = vst.msk [vmem:[#allocation3] sm:$0xff] %vm5626_vm8, %v479_v30  ;;  %v589_v30 = vmul.bf16 %v5645_v21, %v5874_v61  ;;  %v7431_v12 = vmul.bf16 %v5877_v62, %v5901_v15 }
  0xbd   :  { %4086 = vmatprep.subr.bf16.mxu0 %v4936_v38  ;;  %v5963_v38 = vsel %vm1579_vm11, %v1578_v6, %v1577_v2  ;;  %v5979_v2 = vld [vmem:[#allocation2 + $0x58] sm:$0xff]  ;;  %v588_v6 = vmul.bf16 %v5645_v21, %v5907_v27 }
  0xbe   :  { %4087 = vmatpush1.bf16.msra.mxu0 %v4938_v40  ;;  %v5967_v40 = vld [vmem:[#allocation2 + $0x70] sm:$0xff] }
  0xbf   :  { %v4939_v59 = vld [vmem:[#allocation3 + $0x14] ss:$8 sps:$4 sm:$0xff]   ;;  %v4941_v0 = vld [vmem:[#allocation3 + $0x10] ss:$8 sps:$4 sm:$0xff]  }
  0xc0   :  { %643 = vrot.lane.b32.xlu1 %v591_v49, %s5313_s11  ;;  %645 = vrot.lane.b32.xlu0 %v592_v41, %s5313_s11  ;;  %v841_v49 = vmul.bf16 %v5794_v56, %v5799_v60  ;;  %v842_v41 = vmul.bf16 %v5794_v56, %v5822_v17 }
  0xc1   :  { %4088 = vmatprep.subr.bf16.mxu0 %v4939_v59  ;;  %v5973_v59 = vld [vmem:[#allocation2 + $0x78] sm:$0xff] }
  0xc2   :  { %4089 = vmatpush1.bf16.msra.mxu0 %v4941_v0  ;;  %v5975_v0 = vld [vmem:[#allocation2 + $0x60] sm:$0xff] }
  0xc3   :  { %v4942_v28 = vld [vmem:[#allocation3 + $0x4] ss:$8 sps:$4 sm:$0xff]   ;;  %v4944_v29 = vld [vmem:[#allocation3] ss:$8 sps:$4 sm:$0xff]  }
  0xc4   :  { %899 = vrot.lane.b32.xlu1 %v843_v4, %s5314_s19  ;;  %901 = vrot.lane.b32.xlu0 %v844_v5, %s5314_s19  ;;  %v5977_v4 = vld [vmem:[#allocation2 + $0x68] sm:$0xff] }
  0xc5   :  { %4090 = vmatprep.subr.bf16.mxu0 %v4942_v28  ;;  %v587_v28 = vmul.bf16 %v5645_v21, %v5901_v15  ;;  %v838_v21 = vmul.bf16 %v5794_v56, %v5881_v54 }
  0xc6   :  { %4091 = vmatpush1.bf16.msra.mxu0 %v4944_v29 }
  0xc8   :  { %639 = vrot.lane.b32.xlu1 %v589_v30, %s5313_s11  ;;  %641 = vrot.lane.b32.xlu0 %v590_v34, %s5313_s11  ;;  %v2047_v34 = vld [vmem:[%s7424_s2] sm:$0x88]  ;;  %v839_v30 = vmul.bf16 %v5794_v56, %v5852_v45 }
  0xc9   :  { %v4580_v29 = vcombine.high %v2047_v34, %v2047_v34 }
  0xcb   :  { %v2062_v43 = vshrl.u32 %v4580_v29, 16  ;;  %v835_v29 = vmul.bf16 %v5794_v56, %v5901_v15 }
  0xcc   :  { %895 = vrot.lane.b32.xlu1 %v841_v49, %s5314_s19  ;;  %897 = vrot.lane.b32.xlu0 %v842_v41, %s5314_s19  ;;  %v4579_v49 = vcombine.low %v2047_v34, %v2047_v34  ;;  %v840_v41 = vmul.bf16 %v5794_v56, %v5855_v47 }
  0xcd   :  { %v2063_v42 = vpack.i.b16 %v2062_v43, %v2062_v43 }
  0xce   :  { %v2054_v5 = vshrl.u32 %v4579_v49, 16 }
  0xd0   :  { %637 = vrot.lane.b32.xlu0 %v588_v6, %s5313_s11  ;;  %635 = vrot.lane.b32.xlu1 %v587_v28, %s5313_s11  ;;  %v837_v6 = vmul.bf16 %v5794_v56, %v5874_v61  ;;  %v1810_v28 = vsub.s32 3, %v5442_v31  ;;  %v2055_v34 = vpack.i.b16 %v2054_v5, %v2054_v5 }
  0xd2   :  { %v2060_v49 = vrot.slane %v2055_v34, %v1810_v28  ;;  %v2068_v1 = vrot.slane %v2063_v42, %v1810_v28 }
  0xd4   :  { %893 = vrot.lane.b32.xlu0 %v840_v41, %s5314_s19  ;;  %891 = vrot.lane.b32.xlu1 %v839_v30, %s5314_s19  ;;  %v836_v41 = vmul.bf16 %v5794_v56, %v5907_v27  ;;  %v1080_v30 = vpop.permute.xlu1 %1079  ;;  %v4581_v31 = vcombine.low %v2060_v49, %v2068_v1 }
  0xd8   :  { %889 = vrot.lane.b32.xlu0 %v838_v21, %s5314_s19  ;;  %887 = vrot.lane.b32.xlu1 %v837_v6, %s5314_s19  ;;  %v1081_v21 = vrot.slane %v1080_v30, 4 }
  0xda   :  { %v6029_v43 = vsel %vm1082_vm12, %v1081_v21, %v1080_v30 }
  0xdb   :  { %v1091_v42 = vmul.bf16 %v6029_v43, %v5799_v60  ;;  %v1092_v63 = vmul.bf16 %v6029_v43, %v5822_v17  ;;  %v1089_v24 = vmul.bf16 %v6029_v43, %v5852_v45  ;;  %v1090_v26 = vmul.bf16 %v6029_v43, %v5855_v47 }
  0xdc   :  { %885 = vrot.lane.b32.xlu0 %v836_v41, %s5314_s19  ;;  %883 = vrot.lane.b32.xlu1 %v835_v29, %s5314_s19  ;;  %v1087_v39 = vmul.bf16 %v6029_v43, %v5874_v61  ;;  %v1088_v5 = vmul.bf16 %v6029_v43, %v5881_v54  ;;  %v1086_v6 = vmul.bf16 %v6029_v43, %v5907_v27 }
  0xe0   :  { %1410 = vrot.lane.b32.xlu0 %v1347_v10, %s5315_s22  ;;  %1408 = vrot.lane.b32.xlu1 %v1346_v13, %s5315_s22  ;;  %v5030_v10 = vld [vmem:[%s7425_s1 + $0x4] ss:$56 sps:$4 sm:$0xff]   ;;  %v4576_v13 = vcombine.low %v1799_v8, %v1799_v8 }
  0xe1   :  { %4108 = vmatprep.mubr.bf16.mxu0 %v5030_v10 }
  0xe4   :  { %2074 = vrot.lane.b32.xlu1 %v4581_v31, %s5316_s23  ;;  %1404 = vrot.lane.b32.xlu0 %v1344_v14, %s5315_s22  ;;  %v4577_v14 = vcombine.high %v1799_v8, %v1799_v8 }
  0xe8   :  { %1406 = vrot.lane.b32.xlu1 %v1345_v18, %s5315_s22  ;;  %1145 = vrot.lane.b32.xlu0 %v1091_v42, %s5317_s26  ;;  %v1806_v18 = vpack.i.b16 %v4576_v13, %v4576_v13 }
  0xec   :  { %1147 = vrot.lane.b32.xlu1 %v1092_v63, %s5317_s26  ;;  %1400 = vrot.lane.b32.xlu0 %v1342_v32, %s5315_s22  ;;  %v1813_v32 = vpack.i.b16 %v4577_v14, %v4577_v14 }
  0xee   :  { %v1818_v1 = vrot.slane %v1813_v32, %v1810_v28 }
  0xf0   :  { %1402 = vrot.lane.b32.xlu1 %v1343_v37, %s5315_s22  ;;  %1141 = vrot.lane.b32.xlu0 %v1089_v24, %s5317_s26  ;;  %v1811_v37 = vrot.slane %v1806_v18, %v1810_v28 }
  0xf2   :  { %v4578_v48 = vcombine.low %v1811_v37, %v1818_v1 }
  0xf4   :  { %1143 = vrot.lane.b32.xlu1 %v1090_v26, %s5317_s26  ;;  %1396 = vrot.lane.b32.xlu0 %v1340_v44, %s5315_s22 }
  0xf8   :  { %1398 = vrot.lane.b32.xlu1 %v1341_v3, %s5315_s22  ;;  %1137 = vrot.lane.b32.xlu0 %v1087_v39, %s5317_s26  ;;  %v1085_v3 = vmul.bf16 %v6029_v43, %v5901_v15 }
  0xfc   :  { %1139 = vrot.lane.b32.xlu1 %v1088_v5, %s5317_s26  ;;  %1392 = vrot.lane.b32.xlu0 %v1338_v46, %s5315_s22 }
 0x100   :  { %1394 = vrot.lane.b32.xlu1 %v1339_v50, %s5315_s22  ;;  %1824 = vrot.lane.b32.xlu0 %v4578_v48, %s5318_s4 }
 0x102   :  { %v682_v55 = vpop.permute.xlu1 %681  ;;  %v680_v44 = vpop.permute.xlu0 %679 }
 0x103   :  { %v706_v28 = vrot.slane %v682_v55, 4  ;;  %v705_v34 = vrot.slane %v680_v44, 4 }
 0x104   :  { %1133 = vrot.lane.b32.xlu1 %v1085_v3, %s5317_s26  ;;  %1135 = vrot.lane.b32.xlu0 %v1086_v6, %s5317_s26 }
 0x105   :  { %v731_v46 = vsel %vm707_vm13, %v682_v55, %v706_v28  ;;  %v730_v50 = vsel %vm707_vm13, %v680_v44, %v705_v34 }
 0x106   :  { %779 = vst.msk [vmem:[#allocation3 + $0x178] sm:$0xff] %vm5626_vm8, %v731_v46  ;;  %778 = vst.msk [vmem:[#allocation3 + $0x170] sm:$0xff] %vm5626_vm8, %v730_v50  ;;  %v676_v41 = vpop.permute.xlu1 %675  ;;  %v678_v29 = vpop.permute.xlu0 %677 }
 0x107   :  { %v703_v30 = vrot.slane %v676_v41, 4  ;;  %v704_v49 = vrot.slane %v678_v29, 4 }
 0x108   :  { %1390 = vrot.lane.b32.xlu0 %v1337_v51, %s5315_s22  ;;  %1388 = vrot.lane.b32.xlu1 %v1336_v52, %s5315_s22 }
 0x109   :  { %v728_v21 = vsel %vm707_vm13, %v676_v41, %v703_v30  ;;  %v729_v31 = vsel %vm707_vm13, %v678_v29, %v704_v49  ;;  %v7432_v41 = vmul.bf16 %v5794_v56, %v5671_v35  ;;  %v7433_v29 = vmul.bf16 %v5794_v56, %v5664_v33 }
 0x10a   :  { %776 = vst.msk [vmem:[#allocation3 + $0x160] sm:$0xff] %vm5626_vm8, %v728_v21  ;;  %777 = vst.msk [vmem:[#allocation3 + $0x168] sm:$0xff] %vm5626_vm8, %v729_v31  ;;  %v672_v7 = vpop.permute.xlu1 %671  ;;  %v674_v42 = vpop.permute.xlu0 %673  ;;  %v1588_v33 = vmul.bf16 %v5963_v38, %v5799_v60 }
 0x10b   :  { %v701_v63 = vrot.slane %v672_v7, 4  ;;  %v702_v8 = vrot.slane %v674_v42, 4 }
 0x10c   :  { %929 = vrot.lane.b32.xlu0 %v858_v16, %s5314_s19  ;;  %927 = vrot.lane.b32.xlu1 %v857_v19, %s5314_s19 }
 0x10d   :  { %v726_v51 = vsel %vm707_vm13, %v672_v7, %v701_v63  ;;  %v727_v52 = vsel %vm707_vm13, %v674_v42, %v702_v8  ;;  %v4949_v24 = vld [vmem:[#allocation3 + $0x174] ss:$8 sps:$4 sm:$0xff]   ;;  %v4951_v20 = vld [vmem:[#allocation3 + $0x170] ss:$8 sps:$4 sm:$0xff]   ;;  %v1589_v7 = vmul.bf16 %v5963_v38, %v5822_v17 }
 0x10e   :  { %774 = vst.msk [vmem:[#allocation3 + $0x150] sm:$0xff] %vm5626_vm8, %v726_v51  ;;  %775 = vst.msk [vmem:[#allocation3 + $0x158] sm:$0xff] %vm5626_vm8, %v727_v52  ;;  %v670_v10 = vpop.permute.xlu1 %669  ;;  %v668_v13 = vpop.permute.xlu0 %667  ;;  %4139 = vmatprep.subr.bf16.mxu1 %v4949_v24  ;;  %v6192_v51 = vld [vmem:[#allocation2 + $0x88] sm:$0xff]  ;;  %v6194_v52 = vld [vmem:[#allocation2 + $0x80] sm:$0xff] }
 0x10f   :  { %v700_v16 = vrot.slane %v670_v10, 4  ;;  %v699_v14 = vrot.slane %v668_v13, 4  ;;  %4140 = vmatpush1.bf16.msra.mxu1 %v4951_v20  ;;  %v852_v20 = vmul.bf16 %v5794_v56, %v6192_v51 }
 0x110   :  { %1386 = vrot.lane.b32.xlu0 %v1335_v53, %s5315_s22  ;;  %1384 = vrot.lane.b32.xlu1 %v1334_v57, %s5315_s22 }
 0x111   :  { %v725_v9 = vsel %vm707_vm13, %v670_v10, %v700_v16  ;;  %v724_v19 = vsel %vm707_vm13, %v668_v13, %v699_v14  ;;  %v4952_v26 = vld [vmem:[#allocation3 + $0x164] ss:$8 sps:$4 sm:$0xff]   ;;  %v4954_v53 = vld [vmem:[#allocation3 + $0x160] ss:$8 sps:$4 sm:$0xff]   ;;  %v851_v16 = vmul.bf16 %v5794_v56, %v6194_v52 }
 0x112   :  { %773 = vst.msk [vmem:[#allocation3 + $0x148] sm:$0xff] %vm5626_vm8, %v725_v9  ;;  %772 = vst.msk [vmem:[#allocation3 + $0x140] sm:$0xff] %vm5626_vm8, %v724_v19  ;;  %v666_v18 = vpop.permute.xlu1 %665  ;;  %v664_v32 = vpop.permute.xlu0 %663  ;;  %4141 = vmatprep.subr.bf16.mxu1 %v4952_v26 }
 0x113   :  { %v698_v39 = vrot.slane %v666_v18, 4  ;;  %v697_v37 = vrot.slane %v664_v32, 4  ;;  %4142 = vmatpush1.bf16.msra.mxu1 %v4954_v53 }
 0x114   :  { %925 = vrot.lane.b32.xlu0 %v856_v23, %s5314_s19  ;;  %923 = vrot.lane.b32.xlu1 %v855_v25, %s5314_s19 }
 0x115   :  { %v723_v57 = vsel %vm707_vm13, %v666_v18, %v698_v39  ;;  %v722_v1 = vsel %vm707_vm13, %v664_v32, %v697_v37  ;;  %v4955_v5 = vld [vmem:[#allocation3 + $0x154] ss:$8 sps:$4 sm:$0xff]   ;;  %v4957_v23 = vld [vmem:[#allocation3 + $0x150] ss:$8 sps:$4 sm:$0xff]   ;;  %v1587_v39 = vmul.bf16 %v5963_v38, %v5855_v47  ;;  %v1586_v37 = vmul.bf16 %v5963_v38, %v5852_v45 }
 0x116   :  { %771 = vst.msk [vmem:[#allocation3 + $0x138] sm:$0xff] %vm5626_vm8, %v723_v57  ;;  %770 = vst.msk [vmem:[#allocation3 + $0x130] sm:$0xff] %vm5626_vm8, %v722_v1  ;;  %v662_v48 = vpop.permute.xlu1 %661  ;;  %v660_v22 = vpop.permute.xlu0 %659  ;;  %4143 = vmatprep.subr.bf16.mxu1 %v4955_v5 }
 0x117   :  { %v696_v55 = vrot.slane %v662_v48, 4  ;;  %v695_v44 = vrot.slane %v660_v22, 4  ;;  %4144 = vmatpush1.bf16.msra.mxu1 %v4957_v23 }
 0x118   :  { %1382 = vrot.lane.b32.xlu0 %v1333_v58, %s5315_s22  ;;  %1380 = vrot.lane.b32.xlu1 %v7431_v12, %s5315_s22 }
 0x119   :  { %v721_v25 = vsel %vm707_vm13, %v662_v48, %v696_v55  ;;  %v720_v3 = vsel %vm707_vm13, %v660_v22, %v695_v44  ;;  %v4958_v6 = vld [vmem:[#allocation3 + $0x144] ss:$8 sps:$4 sm:$0xff]   ;;  %v4960_v58 = vld [vmem:[#allocation3 + $0x140] ss:$8 sps:$4 sm:$0xff]   ;;  %v6220_v48 = vld [vmem:[#allocation2 + $0xb8] sm:$0xff] }
 0x11a   :  { %769 = vst.msk [vmem:[#allocation3 + $0x128] sm:$0xff] %vm5626_vm8, %v721_v25  ;;  %768 = vst.msk [vmem:[#allocation3 + $0x120] sm:$0xff] %vm5626_vm8, %v720_v3  ;;  %v658_v28 = vpop.permute.xlu1 %657  ;;  %v656_v34 = vpop.permute.xlu0 %655  ;;  %4145 = vmatprep.subr.bf16.mxu1 %v4958_v6  ;;  %v6222_v22 = vld [vmem:[#allocation2 + $0xb0] sm:$0xff]  ;;  %v1108_v12 = vmul.bf16 %v6029_v43, %v6220_v48 }
 0x11b   :  { %v694_v46 = vrot.slane %v658_v28, 4  ;;  %v693_v50 = vrot.slane %v656_v34, 4  ;;  %4146 = vmatpush1.bf16.msra.mxu1 %v4960_v58  ;;  %v1107_v25 = vmul.bf16 %v6029_v43, %v6222_v22 }
 0x11c   :  { %921 = vrot.lane.b32.xlu0 %v7432_v41, %s5314_s19  ;;  %919 = vrot.lane.b32.xlu1 %v7433_v29, %s5314_s19  ;;  %v1585_v29 = vmul.bf16 %v5963_v38, %v5881_v54 }
 0x11d   :  { %v719_v30 = vsel %vm707_vm13, %v658_v28, %v694_v46  ;;  %v718_v49 = vsel %vm707_vm13, %v656_v34, %v693_v50  ;;  %v4961_v21 = vld [vmem:[#allocation3 + $0x134] ss:$8 sps:$4 sm:$0xff]   ;;  %v4963_v42 = vld [vmem:[#allocation3 + $0x130] ss:$8 sps:$4 sm:$0xff]  }
 0x11e   :  { %767 = vst.msk [vmem:[#allocation3 + $0x118] sm:$0xff] %vm5626_vm8, %v719_v30  ;;  %766 = vst.msk [vmem:[#allocation3 + $0x110] sm:$0xff] %vm5626_vm8, %v718_v49  ;;  %v654_v31 = vpop.permute.xlu1 %653  ;;  %v652_v35 = vpop.permute.xlu0 %651  ;;  %4147 = vmatprep.subr.bf16.mxu1 %v4961_v21  ;;  %v1584_v30 = vmul.bf16 %v5963_v38, %v5874_v61 }
 0x11f   :  { %v692_v63 = vrot.slane %v654_v31, 4  ;;  %v691_v8 = vrot.slane %v652_v35, 4  ;;  %4148 = vmatpush1.bf16.msra.mxu1 %v4963_v42 }
 0x120   :  { %1644 = vrot.lane.b32.xlu0 %v1589_v7, %s5319_s5  ;;  %1642 = vrot.lane.b32.xlu1 %v1588_v33, %s5319_s5  ;;  %v6250_v7 = vld [vmem:[#allocation2 + $0xa0] sm:$0xff] }
 0x121   :  { %v717_v24 = vsel %vm707_vm13, %v654_v31, %v692_v63  ;;  %v716_v17 = vsel %vm707_vm13, %v652_v35, %v691_v8  ;;  %v4964_v10 = vld [vmem:[#allocation3 + $0x124] ss:$8 sps:$4 sm:$0xff]   ;;  %v4966_v14 = vld [vmem:[#allocation3 + $0x120] ss:$8 sps:$4 sm:$0xff]  }
 0x122   :  { %765 = vst.msk [vmem:[#allocation3 + $0x108] sm:$0xff] %vm5626_vm8, %v717_v24  ;;  %764 = vst.msk [vmem:[#allocation3 + $0x100] sm:$0xff] %vm5626_vm8, %v716_v17  ;;  %v914_v60 = vpop.permute.xlu1 %913  ;;  %v912_v13 = vpop.permute.xlu0 %911  ;;  %4149 = vmatprep.subr.bf16.mxu1 %v4964_v10  ;;  %v6248_v35 = vld [vmem:[#allocation2 + $0xa8] sm:$0xff]  ;;  %v1105_v24 = vmul.bf16 %v6029_v43, %v6250_v7 }
 0x123   :  { %v946_v9 = vrot.slane %v914_v60, 4  ;;  %v945_v19 = vrot.slane %v912_v13, 4  ;;  %4150 = vmatpush1.bf16.msra.mxu1 %v4966_v14  ;;  %v1106_v8 = vmul.bf16 %v6029_v43, %v6248_v35 }
 0x124   :  { %917 = vrot.lane.b32.xlu0 %v852_v20, %s5314_s19  ;;  %915 = vrot.lane.b32.xlu1 %v851_v16, %s5314_s19 }
 0x125   :  { %v971_v26 = vsel %vm955_vm14, %v914_v60, %v946_v9  ;;  %v970_v18 = vsel %vm955_vm14, %v912_v13, %v945_v19  ;;  %v4967_v32 = vld [vmem:[#allocation3 + $0x114] ss:$8 sps:$4 sm:$0xff]   ;;  %v4969_v57 = vld [vmem:[#allocation3 + $0x110] ss:$8 sps:$4 sm:$0xff]   ;;  %v1583_v19 = vmul.bf16 %v5963_v38, %v5907_v27 }
 0x126   :  { %1019 = vst.msk [vmem:[#allocation3 + $0x1f8] sm:$0xff] %vm5626_vm8, %v971_v26  ;;  %1018 = vst.msk [vmem:[#allocation3 + $0x1f0] sm:$0xff] %vm5626_vm8, %v970_v18  ;;  %v908_v56 = vpop.permute.xlu1 %907  ;;  %v910_v53 = vpop.permute.xlu0 %909  ;;  %4151 = vmatprep.subr.bf16.mxu1 %v4967_v32  ;;  %v1582_v26 = vmul.bf16 %v5963_v38, %v5901_v15 }
 0x127   :  { %v943_v1 = vrot.slane %v908_v56, 4  ;;  %v944_v5 = vrot.slane %v910_v53, 4  ;;  %4152 = vmatpush1.bf16.msra.mxu1 %v4969_v57 }
 0x128   :  { %1640 = vrot.lane.b32.xlu0 %v1587_v39, %s5319_s5  ;;  %1638 = vrot.lane.b32.xlu1 %v1586_v37, %s5319_s5  ;;  %v6278_v39 = vld [vmem:[#allocation2 + $0x90] sm:$0xff] }
 0x129   :  { %v968_v23 = vsel %vm955_vm14, %v908_v56, %v943_v1  ;;  %v969_v55 = vsel %vm955_vm14, %v910_v53, %v944_v5  ;;  %v4970_v47 = vld [vmem:[#allocation3 + $0x104] ss:$8 sps:$4 sm:$0xff]   ;;  %v4972_v3 = vld [vmem:[#allocation3 + $0x100] ss:$8 sps:$4 sm:$0xff]   ;;  %v6276_v53 = vld [vmem:[#allocation2 + $0x98] sm:$0xff] }
 0x12a   :  { %1016 = vst.msk [vmem:[#allocation3 + $0x1e0] sm:$0xff] %vm5626_vm8, %v968_v23  ;;  %1017 = vst.msk [vmem:[#allocation3 + $0x1e8] sm:$0xff] %vm5626_vm8, %v969_v55  ;;  %v648_v45 = vpop.permute.xlu1 %647  ;;  %v650_v44 = vpop.permute.xlu0 %649  ;;  %4153 = vmatprep.subr.bf16.mxu1 %v4970_v47  ;;  %v1104_v5 = vmul.bf16 %v6029_v43, %v6276_v53  ;;  %v1103_v23 = vmul.bf16 %v6029_v43, %v6278_v39 }
 0x12b   :  { %v689_v6 = vrot.slane %v648_v45, 4  ;;  %v690_v28 = vrot.slane %v650_v44, 4  ;;  %4154 = vmatpush1.bf16.msra.mxu1 %v4972_v3 }
 0x12c   :  { %1179 = vrot.lane.b32.xlu0 %v1108_v12, %s5317_s26  ;;  %1177 = vrot.lane.b32.xlu1 %v1107_v25, %s5317_s26 }
 0x12d   :  { %v714_v34 = vsel %vm707_vm13, %v648_v45, %v689_v6  ;;  %v715_v58 = vsel %vm707_vm13, %v650_v44, %v690_v28  ;;  %v4973_v46 = vld [vmem:[#allocation3 + $0x1f4] ss:$8 sps:$4 sm:$0xff]   ;;  %v4975_v49 = vld [vmem:[#allocation3 + $0x1f0] ss:$8 sps:$4 sm:$0xff]   ;;  %v1355_v28 = vmul.bf16 %v5877_v62, %v6220_v48 }
 0x12e   :  { %762 = vst.msk [vmem:[#allocation3 + $0xf0] sm:$0xff] %vm5626_vm8, %v714_v34  ;;  %763 = vst.msk [vmem:[#allocation3 + $0xf8] sm:$0xff] %vm5626_vm8, %v715_v58  ;;  %v904_v50 = vpop.permute.xlu1 %903  ;;  %v906_v41 = vpop.permute.xlu0 %905  ;;  %4155 = vmatprep.subr.bf16.mxu1 %v4973_v46  ;;  %v1354_v34 = vmul.bf16 %v5877_v62, %v6222_v22 }
 0x12f   :  { %v941_v21 = vrot.slane %v904_v50, 4  ;;  %v942_v31 = vrot.slane %v906_v41, 4  ;;  %4156 = vmatpush2.bf16.msra.mxu1 %v4975_v49 }
 0x130   :  { %1636 = vrot.lane.b32.xlu0 %v1585_v29, %s5319_s5  ;;  %1634 = vrot.lane.b32.xlu1 %v1584_v30, %s5319_s5 }
 0x131   :  { %v966_v33 = vsel %vm955_vm14, %v904_v50, %v941_v21  ;;  %v967_v42 = vsel %vm955_vm14, %v906_v41, %v942_v31  ;;  %v4976_v54 = vld [vmem:[#allocation3 + $0x1e4] ss:$8 sps:$4 sm:$0xff]   ;;  %v4978_v17 = vld [vmem:[#allocation3 + $0x1e0] ss:$8 sps:$4 sm:$0xff]   ;;  %v1102_v31 = vmul.bf16 %v6029_v43, %v6192_v51 }
 0x132   :  { %1014 = vst.msk [vmem:[#allocation3 + $0x1d0] sm:$0xff] %vm5626_vm8, %v966_v33  ;;  %1015 = vst.msk [vmem:[#allocation3 + $0x1d8] sm:$0xff] %vm5626_vm8, %v967_v42  ;;  %v644_v61 = vpop.permute.xlu1 %643  ;;  %v646_v63 = vpop.permute.xlu0 %645  ;;  %4157 = vmatprep.subr.bf16.mxu1 %v4976_v54  ;;  %v1101_v33 = vmul.bf16 %v6029_v43, %v6194_v52 }
 0x133   :  { %v687_v10 = vrot.slane %v644_v61, 4  ;;  %v688_v60 = vrot.slane %v646_v63, 4  ;;  %4158 = vmatpush2.bf16.msra.mxu1 %v4978_v17 }
 0x134   :  { %1175 = vrot.lane.b32.xlu0 %v1106_v8, %s5317_s26  ;;  %1173 = vrot.lane.b32.xlu1 %v1105_v24, %s5317_s26 }
 0x135   :  { %v712_v13 = vsel %vm707_vm13, %v644_v61, %v687_v10  ;;  %v713_v20 = vsel %vm707_vm13, %v646_v63, %v688_v60  ;;  %v4979_v16 = vld [vmem:[#allocation3 + $0xf4] ss:$8 sps:$4 sm:$0xff]   ;;  %v4981_v18 = vld [vmem:[#allocation3 + $0xf0] ss:$8 sps:$4 sm:$0xff]   ;;  %v1353_v60 = vmul.bf16 %v5877_v62, %v6248_v35 }
 0x136   :  { %760 = vst.msk [vmem:[#allocation3 + $0xe0] sm:$0xff] %vm5626_vm8, %v712_v13  ;;  %761 = vst.msk [vmem:[#allocation3 + $0xe8] sm:$0xff] %vm5626_vm8, %v713_v20  ;;  %v900_v14 = vpop.permute.xlu1 %899  ;;  %v902_v9 = vpop.permute.xlu0 %901  ;;  %4092 = vmatprep.subr.bf16.mxu0 %v4979_v16  ;;  %v1352_v13 = vmul.bf16 %v5877_v62, %v6250_v7 }
 0x137   :  { %v939_v32 = vrot.slane %v900_v14, 4  ;;  %v940_v56 = vrot.slane %v902_v9, 4  ;;  %4093 = vmatpush2.bf16.msra.mxu0 %v4981_v18 }
 0x138   :  { %1632 = vrot.lane.b32.xlu0 %v1583_v19, %s5319_s5  ;;  %1630 = vrot.lane.b32.xlu1 %v1582_v26, %s5319_s5 }
 0x139   :  { %v964_v37 = vsel %vm955_vm14, %v900_v14, %v939_v32  ;;  %v965_v57 = vsel %vm955_vm14, %v902_v9, %v940_v56  ;;  %v4982_v27 = vld [vmem:[#allocation3 + $0x1d4] ss:$8 sps:$4 sm:$0xff]   ;;  %v4984_v55 = vld [vmem:[#allocation3 + $0x1d0] ss:$8 sps:$4 sm:$0xff]   ;;  %v1100_v56 = vmul.bf16 %v6029_v43, %v5973_v59 }
 0x13a   :  { %1012 = vst.msk [vmem:[#allocation3 + $0x1c0] sm:$0xff] %vm5626_vm8, %v964_v37  ;;  %1013 = vst.msk [vmem:[#allocation3 + $0x1c8] sm:$0xff] %vm5626_vm8, %v965_v57  ;;  %v640_v15 = vpop.permute.xlu1 %639  ;;  %v642_v1 = vpop.permute.xlu0 %641  ;;  %4159 = vmatprep.subr.bf16.mxu1 %v4982_v27  ;;  %v1099_v37 = vmul.bf16 %v6029_v43, %v5967_v40 }
 0x13b   :  { %v685_v47 = vrot.slane %v640_v15, 4  ;;  %v686_v45 = vrot.slane %v642_v1, 4  ;;  %4160 = vmatpush2.bf16.msra.mxu1 %v4984_v55 }
 0x13c   :  { %1171 = vrot.lane.b32.xlu0 %v1104_v5, %s5317_s26  ;;  %1169 = vrot.lane.b32.xlu1 %v1103_v23, %s5317_s26 }
 0x13d   :  { %v710_v44 = vsel %vm707_vm13, %v640_v15, %v685_v47  ;;  %v711_v12 = vsel %vm707_vm13, %v642_v1, %v686_v45  ;;  %v4985_v25 = vld [vmem:[#allocation3 + $0xe4] ss:$8 sps:$4 sm:$0xff]   ;;  %v4987_v58 = vld [vmem:[#allocation3 + $0xe0] ss:$8 sps:$4 sm:$0xff]   ;;  %v1351_v45 = vmul.bf16 %v5877_v62, %v6276_v53 }
 0x13e   :  { %758 = vst.msk [vmem:[#allocation3 + $0xd0] sm:$0xff] %vm5626_vm8, %v710_v44  ;;  %759 = vst.msk [vmem:[#allocation3 + $0xd8] sm:$0xff] %vm5626_vm8, %v711_v12  ;;  %v896_v3 = vpop.permute.xlu1 %895  ;;  %v898_v6 = vpop.permute.xlu0 %897  ;;  %4094 = vmatprep.subr.bf16.mxu0 %v4985_v25  ;;  %v1350_v44 = vmul.bf16 %v5877_v62, %v6278_v39 }
 0x13f   :  { %v937_v46 = vrot.slane %v896_v3, 4  ;;  %v938_v50 = vrot.slane %v898_v6, 4  ;;  %4095 = vmatpush2.bf16.msra.mxu0 %v4987_v58 }
 0x140   :  { %1426 = vrot.lane.b32.xlu0 %v1355_v28, %s5315_s22  ;;  %1424 = vrot.lane.b32.xlu1 %v1354_v34, %s5315_s22  ;;  %v5000_v28 = vld [vmem:[#allocation3 + $0xb4] ss:$8 sps:$4 sm:$0xff]   ;;  %v2297_v34 = vld [vmem:[%s7424_s2 + $0x8] sm:$0x11] }
 0x141   :  { %v962_v41 = vsel %vm955_vm14, %v896_v3, %v937_v46  ;;  %v963_v29 = vsel %vm955_vm14, %v898_v6, %v938_v50  ;;  %v4988_v30 = vld [vmem:[#allocation3 + $0x1c4] ss:$8 sps:$4 sm:$0xff]   ;;  %v4990_v42 = vld [vmem:[#allocation3 + $0x1c0] ss:$8 sps:$4 sm:$0xff]   ;;  %v2586_v6 = vld [vmem:[#allocation3 + $0xb8] sm:$0xff] }
 0x142   :  { %1010 = vst.msk [vmem:[#allocation3 + $0x1b0] sm:$0xff] %vm5626_vm8, %v962_v41  ;;  %1011 = vst.msk [vmem:[#allocation3 + $0x1b8] sm:$0xff] %vm5626_vm8, %v963_v29  ;;  %v636_v49 = vpop.permute.xlu1 %635  ;;  %v638_v21 = vpop.permute.xlu0 %637  ;;  %4161 = vmatprep.subr.bf16.mxu1 %v4988_v30  ;;  %v2585_v29 = vld [vmem:[#allocation3 + $0xb0] sm:$0xff] }
 0x143   :  { %v683_v54 = vrot.slane %v636_v49, 4  ;;  %v684_v61 = vrot.slane %v638_v21, 4  ;;  %4162 = vmatpush2.bf16.msra.mxu1 %v4990_v42 }
 0x144   :  { %1167 = vrot.lane.b32.xlu0 %v1102_v31, %s5317_s26  ;;  %1165 = vrot.lane.b32.xlu1 %v1101_v33, %s5317_s26 }
 0x145   :  { %v708_v63 = vsel %vm707_vm13, %v636_v49, %v683_v54  ;;  %v709_v8 = vsel %vm707_vm13, %v638_v21, %v684_v61  ;;  %v4991_v24 = vld [vmem:[#allocation3 + $0xd4] ss:$8 sps:$4 sm:$0xff]   ;;  %v4993_v20 = vld [vmem:[#allocation3 + $0xd0] ss:$8 sps:$4 sm:$0xff]   ;;  %v1097_v49 = vmul.bf16 %v6029_v43, %v5975_v0  ;;  %v1098_v21 = vmul.bf16 %v6029_v43, %v5977_v4  ;;  %v2583_v61 = vld [vmem:[#allocation3 + $0xa0] sm:$0xff] }
 0x146   :  { %756 = vst.msk [vmem:[#allocation3 + $0xc0] sm:$0xff] %vm5626_vm8, %v708_v63  ;;  %757 = vst.msk [vmem:[#allocation3 + $0xc8] sm:$0xff] %vm5626_vm8, %v709_v8  ;;  %v892_v17 = vpop.permute.xlu1 %891  ;;  %v894_v10 = vpop.permute.xlu0 %893  ;;  %4096 = vmatprep.subr.bf16.mxu0 %v4991_v24  ;;  %v4649_v54 = vcombine.low %v2585_v29, %v2586_v6  ;;  %v2584_v63 = vld [vmem:[#allocation3 + $0xa8] sm:$0xff]  ;;  %v4582_v24 = vcombine.low %v2297_v34, %v2297_v34  ;;  %v2579_v6 = vld [vmem:[#allocation3 + $0x80] sm:$0xff] }
 0x147   :  { %v935_v16 = vrot.slane %v892_v17, 4  ;;  %v936_v14 = vrot.slane %v894_v10, 4  ;;  %4097 = vmatpush2.bf16.msra.mxu0 %v4993_v20  ;;  %v5005_v8 = vld [vmem:[#allocation3 + $0xa4] ss:$8 sps:$4 sm:$0xff]  }
 0x148   :  { %1422 = vrot.lane.b32.xlu0 %v1353_v60, %s5315_s22  ;;  %1420 = vrot.lane.b32.xlu1 %v1352_v13, %s5315_s22 }
 0x149   :  { %v960_v9 = vsel %vm955_vm14, %v892_v17, %v935_v16  ;;  %v961_v19 = vsel %vm955_vm14, %v894_v10, %v936_v14  ;;  %v4994_v26 = vld [vmem:[#allocation3 + $0x1b4] ss:$8 sps:$4 sm:$0xff]   ;;  %v4996_v57 = vld [vmem:[#allocation3 + $0x1b0] ss:$8 sps:$4 sm:$0xff]   ;;  %v4583_v17 = vcombine.high %v2297_v34, %v2297_v34  ;;  %v1348_v14 = vmul.bf16 %v5877_v62, %v6194_v52  ;;  %v5015_v34 = vld [vmem:[#allocation3 + $0x84] ss:$8 sps:$4 sm:$0xff]  }
 0x14a   :  { %1008 = vst.msk [vmem:[#allocation3 + $0x1a0] sm:$0xff] %vm5626_vm8, %v960_v9  ;;  %1009 = vst.msk [vmem:[#allocation3 + $0x1a8] sm:$0xff] %vm5626_vm8, %v961_v19  ;;  %v888_v18 = vpop.permute.xlu1 %887  ;;  %v890_v32 = vpop.permute.xlu0 %889  ;;  %4163 = vmatprep.subr.bf16.mxu1 %v4994_v26  ;;  %v1349_v9 = vmul.bf16 %v5877_v62, %v6192_v51 }
 0x14b   :  { %v933_v27 = vrot.slane %v888_v18, 4  ;;  %v934_v15 = vrot.slane %v890_v32, 4  ;;  %4164 = vmatpush2.bf16.msra.mxu1 %v4996_v57  ;;  %v5010_v57 = vld [vmem:[#allocation3 + $0x94] ss:$8 sps:$4 sm:$0xff]   ;;  %v2311_v52 = vpack.i.b16 %v4583_v17, %v4583_v17 }
 0x14c   :  { %1163 = vrot.lane.b32.xlu0 %v1100_v56, %s5317_s26  ;;  %1161 = vrot.lane.b32.xlu1 %v1099_v37, %s5317_s26  ;;  %v2581_v56 = vld [vmem:[#allocation3 + $0x90] sm:$0xff]  ;;  %v2582_v37 = vld [vmem:[#allocation3 + $0x98] sm:$0xff] }
 0x14d   :  { %v958_v1 = vsel %vm955_vm14, %v888_v18, %v933_v27  ;;  %v959_v5 = vsel %vm955_vm14, %v890_v32, %v934_v15  ;;  %v4997_v23 = vld [vmem:[#allocation3 + $0xc4] ss:$8 sps:$4 sm:$0xff]   ;;  %v4999_v12 = vld [vmem:[#allocation3 + $0xc0] ss:$8 sps:$4 sm:$0xff]   ;;  %v4647_v32 = vcombine.low %v2583_v61, %v2584_v63  ;;  %v6379_v27 = vld [vmem:[#allocation2 + $0x50] sm:$0xff]  ;;  %v2304_v15 = vpack.i.b16 %v4582_v24, %v4582_v24 }
 0x14e   :  { %1006 = vst.msk [vmem:[#allocation3 + $0x190] sm:$0xff] %vm5626_vm8, %v958_v1  ;;  %1007 = vst.msk [vmem:[#allocation3 + $0x198] sm:$0xff] %vm5626_vm8, %v959_v5  ;;  %v884_v55 = vpop.permute.xlu1 %883  ;;  %v886_v47 = vpop.permute.xlu0 %885  ;;  %4098 = vmatprep.subr.bf16.mxu0 %v4997_v23  ;;  %v1095_v23 = vmul.bf16 %v6029_v43, %v6379_v27  ;;  %v5106_v24 = vld [vmem:[%s7425_s1 + $0x7c] ss:$56 sps:$4 sm:$0xff]  }
 0x14f   :  { %v931_v25 = vrot.slane %v884_v55, 4  ;;  %v932_v3 = vrot.slane %v886_v47, 4  ;;  %4099 = vmatpush2.bf16.msra.mxu0 %v4999_v12 }
 0x150   :  { %1418 = vrot.lane.b32.xlu0 %v1351_v45, %s5315_s22  ;;  %1416 = vrot.lane.b32.xlu1 %v1350_v44, %s5315_s22 }
 0x151   :  { %v956_v58 = vsel %vm955_vm14, %v884_v55, %v931_v25  ;;  %v957_v46 = vsel %vm955_vm14, %v886_v47, %v932_v3  ;;  %v5002_v50 = vld [vmem:[#allocation3 + $0x1a4] ss:$8 sps:$4 sm:$0xff]   ;;  %4100 = vmatprep.subr.bf16.mxu0 %v5000_v28  ;;  %v5004_v31 = vld [vmem:[#allocation3 + $0x1a0] ss:$8 sps:$4 sm:$0xff]   ;;  %v5306_v55 = vld [vmem:[#allocation2 + $0x58] sm:$0xff]  ;;  %v4645_v3 = vcombine.low %v2581_v56, %v2582_v37 }
 0x152   :  { %1004 = vst.msk [vmem:[#allocation3 + $0x180] sm:$0xff] %vm5626_vm8, %v956_v58  ;;  %1005 = vst.msk [vmem:[#allocation3 + $0x188] sm:$0xff] %vm5626_vm8, %v957_v46  ;;  %v1409_v41 = vpop.permute.xlu1 %1408  ;;  %v1411_v30 = vpop.permute.xlu0 %1410  ;;  %4165 = vmatprep.subr.bf16.mxu1 %v5002_v50  ;;  %v1096_v47 = vmul.bf16 %v5306_v55, %v6029_v43  ;;  %v2580_v28 = vld [vmem:[#allocation3 + $0x88] sm:$0xff]  ;;  %v2029_v58 = vld [vmem:[#allocation2 + $0x30] sm:$0xff]  ;;  %v2309_v46 = vrot.slane %v2304_v15, %v5451_v36  ;;  %v2316_v50 = vrot.slane %v2311_v52, %v5451_v36 }
 0x153   :  { %v1442_v33 = vrot.slane %v1409_v41, 4  ;;  %v1443_v42 = vrot.slane %v1411_v30, 4  ;;  %4101 = vmatpush2.bf16.msra.mxu0 %v4649_v54  ;;  %4166 = vmatpush2.bf16.msra.mxu1 %v5004_v31  ;;  %v5017_v36 = vld [vmem:[%s7425_s1 + $0x8] ss:$56 sps:$4 sm:$0xff]  }
 0x154   :  { %1157 = vrot.lane.b32.xlu1 %v1097_v49, %s5317_s26  ;;  %1159 = vrot.lane.b32.xlu0 %v1098_v21, %s5317_s26  ;;  %v4584_v17 = vcombine.low %v2309_v46, %v2316_v50  ;;  %v2027_v56 = vld [vmem:[#allocation2 + $0x20] sm:$0xff]  ;;  %v1604_v46 = vmul.bf16 %v5963_v38, %v6222_v22  ;;  %v5123_v50 = vld [vmem:[%s7425_s1 + $0x70] ss:$56 sps:$4 sm:$0xff]  }
 0x155   :  { %v1467_v10 = vsel %vm1452_vm15, %v1409_v41, %v1442_v33  ;;  %v1468_v60 = vsel %vm1452_vm15, %v1411_v30, %v1443_v42  ;;  %v5007_v13 = vld [vmem:[#allocation3 + $0x194] ss:$8 sps:$4 sm:$0xff]   ;;  %4102 = vmatprep.subr.bf16.mxu0 %v5005_v8  ;;  %v5009_v19 = vld [vmem:[#allocation3 + $0x190] ss:$8 sps:$4 sm:$0xff]   ;;  %v4643_v8 = vcombine.low %v2579_v6, %v2580_v28 }
 0x156   :  { %1515 = vst.msk [vmem:[#allocation3 + $0x370] sm:$0xff] %vm5626_vm8, %v1467_v10  ;;  %1516 = vst.msk [vmem:[#allocation3 + $0x378] sm:$0xff] %vm5626_vm8, %v1468_v60  ;;  %v2075_v20 = vpop.permute.xlu1 %2074  ;;  %v1405_v16 = vpop.permute.xlu0 %1404  ;;  %4167 = vmatprep.subr.bf16.mxu1 %v5007_v13  ;;  %v2030_v30 = vld [vmem:[#allocation2 + $0x38] sm:$0xff]  ;;  %v6412_v13 = vld [vmem:[#allocation2 + $0x40] sm:$0xff] }
 0x157   :  { %v2076_v26 = vrot.slane %v2075_v20, 4  ;;  %v1440_v18 = vrot.slane %v1405_v16, 4  ;;  %4103 = vmatpush2.bf16.msra.mxu0 %v4647_v32  ;;  %4168 = vmatpush2.bf16.msra.mxu1 %v5009_v19  ;;  %v5121_v19 = vld [vmem:[%s7425_s1 + $0x74] ss:$56 sps:$4 sm:$0xff]  }
 0x158   :  { %1412 = vrot.lane.b32.xlu1 %v1348_v14, %s5315_s22  ;;  %1414 = vrot.lane.b32.xlu0 %v1349_v9, %s5315_s22  ;;  %v1093_v9 = vmul.bf16 %v6029_v43, %v6412_v13  ;;  %v6427_v32 = vld [vmem:[#allocation2 + $0x48] sm:$0xff] }
 0x159   :  { %v1465_v1 = vsel %vm1452_vm15, %v1405_v16, %v1440_v18  ;;  %v5012_v62 = vld [vmem:[#allocation3 + $0x184] ss:$8 sps:$4 sm:$0xff]   ;;  %4104 = vmatprep.subr.bf16.mxu0 %v5010_v57  ;;  %v5014_v45 = vld [vmem:[#allocation3 + $0x180] ss:$8 sps:$4 sm:$0xff]   ;;  %v6388_v44 = vsel %vm2077_vm0, %v2076_v26, %v2075_v20 }
 0x15a   :  { %1513 = vst.msk [vmem:[#allocation3 + $0x360] sm:$0xff] %vm5626_vm8, %v1465_v1  ;;  %v1407_v51 = vpop.permute.xlu1 %1406  ;;  %v1146_v5 = vpop.permute.xlu0 %1145  ;;  %4169 = vmatprep.subr.bf16.mxu1 %v5012_v62  ;;  %v2086_v31 = vmul.bf16 %v6388_v44, %v2029_v58  ;;  %v2087_v33 = vmul.bf16 %v6388_v44, %v2030_v30  ;;  %v5028_v20 = vld [vmem:[%s7425_s1] ss:$56 sps:$4 sm:$0xff]   ;;  %v5133_v30 = vld [vmem:[%s7425_s1 + $0xe4] ss:$56 sps:$4 sm:$0xff]  }
 0x15b   :  { %v1441_v12 = vrot.slane %v1407_v51, 4  ;;  %v1187_v25 = vrot.slane %v1146_v5, 4  ;;  %4105 = vmatpush2.bf16.msra.mxu0 %v4645_v3  ;;  %4170 = vmatpush2.bf16.msra.mxu1 %v5014_v45  ;;  %v5115_v45 = vld [vmem:[%s7425_s1 + $0xec] ss:$56 sps:$4 sm:$0xff]  }
 0x15c   :  { %1153 = vrot.lane.b32.xlu1 %v1095_v23, %s5317_s26  ;;  %1155 = vrot.lane.b32.xlu0 %v1096_v47, %s5317_s26  ;;  %v5111_v23 = vld [vmem:[%s7425_s1 + $0x78] ss:$56 sps:$4 sm:$0xff]  }
 0x15d   :  { %v1466_v41 = vsel %vm1452_vm15, %v1407_v51, %v1441_v12  ;;  %v1212_v29 = vsel %vm1205_vm1, %v1146_v5, %v1187_v25  ;;  %4106 = vmatprep.subr.bf16.mxu0 %v5015_v34  ;;  %v5022_v42 = vld [vmem:[#allocation3 + $0x374] ss:$8 sps:$4 sm:$0xff]   ;;  %v5020_v63 = vld [vmem:[#allocation3 + $0x370] ss:$8 sps:$4 sm:$0xff]   ;;  %v1094_v51 = vmul.bf16 %v6029_v43, %v6427_v32  ;;  %v2084_v5 = vmul.bf16 %v6388_v44, %v2027_v56  ;;  %v2028_v12 = vld [vmem:[#allocation2 + $0x28] sm:$0xff] }
 0x15e   :  { %1514 = vst.msk [vmem:[#allocation3 + $0x368] sm:$0xff] %vm5626_vm8, %v1466_v41  ;;  %1260 = vst.msk [vmem:[#allocation3 + $0x270] sm:$0xff] %vm5626_vm8, %v1212_v29  ;;  %v1148_v49 = vpop.permute.xlu1 %1147  ;;  %v1401_v21 = vpop.permute.xlu0 %1400  ;;  %4265 = vmatprep.subr.bf16.mxu1 %v5022_v42  ;;  %4172 = vmatmul.mubr.bf16.vlgmr.msra.gmra.mxu1 %v5017_v36  ;;  %v2085_v58 = vmul.bf16 %v6388_v44, %v2028_v12  ;;  %v1602_v56 = vmul.bf16 %v5963_v38, %v6250_v7 }
 0x15f   :  { %v1188_v54 = vrot.slane %v1148_v49, 4  ;;  %v1438_v61 = vrot.slane %v1401_v21, 4  ;;  %4107 = vmatpush2.bf16.msra.mxu0 %v4643_v8  ;;  %4266 = vmatpush1.bf16.msra.mxu1 %v5020_v63  ;;  %v5120_v8 = vld [vmem:[%s7425_s1 + $0xe8] ss:$56 sps:$4 sm:$0xff]  }
 0x160   :  { %2140 = vrot.lane.b32.xlu1 %v2086_v31, %s5320_s12  ;;  %2142 = vrot.lane.b32.xlu0 %v2087_v33, %s5320_s12 }
 0x161   :  { %v1213_v10 = vsel %vm1205_vm1, %v1148_v49, %v1188_v54  ;;  %v1463_v60 = vsel %vm1452_vm15, %v1401_v21, %v1438_v61  ;;  %4181 = vmatprep.mubr.bf16.mxu1 %v5106_v24  ;;  %v2025_v49 = vld [vmem:[#allocation2 + $0x10] sm:$0xff]  ;;  %v1605_v61 = vmul.bf16 %v5963_v38, %v6220_v48 }
 0x162   :  { %1261 = vst.msk [vmem:[#allocation3 + $0x278] sm:$0xff] %vm5626_vm8, %v1213_v10  ;;  %1511 = vst.msk [vmem:[#allocation3 + $0x350] sm:$0xff] %vm5626_vm8, %v1463_v60  ;;  %v1403_v16 = vpop.permute.xlu1 %1402  ;;  %v1142_v14 = vpop.permute.xlu0 %1141  ;;  %4109 = vmatmul.mubr.bf16.vlgmr.msra.gmra.mxu0 %v5028_v20  ;;  %v2082_v63 = vmul.bf16 %v6388_v44, %v2025_v49  ;;  %v5129_v10 = vld [vmem:[%s7425_s1 + $0x1c] ss:$56 sps:$4 sm:$0xff]  }
 0x163   :  { %v1439_v26 = vrot.slane %v1403_v16, 4  ;;  %v1185_v18 = vrot.slane %v1142_v14, 4  ;;  %4118 = vmatprep.mubr.bf16.mxu0 %v5121_v19  ;;  %v2026_v60 = vld [vmem:[#allocation2 + $0x18] sm:$0xff] }
 0x164   :  { %2322 = vrot.lane.b32.xlu1 %v4584_v17, %s5321_s16  ;;  %1149 = vrot.lane.b32.xlu0 %v1093_v9, %s5317_s26 }
 0x165   :  { %v1464_v37 = vsel %vm1452_vm15, %v1403_v16, %v1439_v26  ;;  %v1210_v57 = vsel %vm1205_vm1, %v1142_v14, %v1185_v18  ;;  %v5025_v15 = vld [vmem:[#allocation3 + $0x360] ss:$8 sps:$4 sm:$0xff]   ;;  %v5027_v52 = vld [vmem:[#allocation3 + $0x364] ss:$8 sps:$4 sm:$0xff]   ;;  %v2083_v18 = vmul.bf16 %v6388_v44, %v2026_v60 }
 0x166   :  { %1512 = vst.msk [vmem:[#allocation3 + $0x358] sm:$0xff] %vm5626_vm8, %v1464_v37  ;;  %1258 = vst.msk [vmem:[#allocation3 + $0x260] sm:$0xff] %vm5626_vm8, %v1210_v57  ;;  %v1144_v1 = vpop.permute.xlu1 %1143  ;;  %v1397_v62 = vpop.permute.xlu0 %1396  ;;  %4267 = vmatprep.subr.bf16.mxu1 %v5027_v52  ;;  %4182 = vmatmul.mubr.bf16.gmra.mxu1 %v5111_v23  ;;  %v5135_v37 = vld [vmem:[%s7425_s1 + $0xe0] ss:$56 sps:$4 sm:$0xff]  }
 0x167   :  { %v1186_v55 = vrot.slane %v1144_v1, 4  ;;  %v1436_v47 = vrot.slane %v1397_v62, 4  ;;  %4268 = vmatpush1.bf16.msra.mxu1 %v5025_v15  ;;  %4191 = vmatprep.mubr.bf16.mxu1 %v5115_v45  ;;  %v5141_v15 = vld [vmem:[%s7425_s1 + $0x14] ss:$56 sps:$4 sm:$0xff]   ;;  %v2023_v52 = vld [vmem:[#allocation2] sm:$0xff] }
 0x168   :  { %1151 = vrot.lane.b32.xlu1 %v1094_v51, %s5317_s26  ;;  %2136 = vrot.lane.b32.xlu0 %v2084_v5, %s5320_s12  ;;  %v6532_v60 = vld [vmem:[#allocation2 + $0x80] sm:$0xff] }
 0x169   :  { %v1211_v43 = vsel %vm1205_vm1, %v1144_v1, %v1186_v55  ;;  %v1461_v25 = vsel %vm1452_vm15, %v1397_v62, %v1436_v47  ;;  %v5031_v3 = vld [vmem:[#allocation3 + $0x270] ss:$8 sps:$4 sm:$0xff]   ;;  %v5033_v6 = vld [vmem:[#allocation3 + $0x274] ss:$8 sps:$4 sm:$0xff]   ;;  %v1603_v55 = vmul.bf16 %v5963_v38, %v6248_v35  ;;  %v2080_v47 = vmul.bf16 %v6388_v44, %v2023_v52 }
 0x16a   :  { %1259 = vst.msk [vmem:[#allocation3 + $0x268] sm:$0xff] %vm5626_vm8, %v1211_v43  ;;  %1509 = vst.msk [vmem:[#allocation3 + $0x340] sm:$0xff] %vm5626_vm8, %v1461_v25  ;;  %v1399_v28 = vpop.permute.xlu1 %1398  ;;  %v1138_v34 = vpop.permute.xlu0 %1137  ;;  %4202 = vmatprep.subr.bf16.mxu0 %v5033_v6  ;;  %4119 = vmatmul.mubr.bf16.gmra.mxu0 %v5123_v50  ;;  %v2024_v25 = vld [vmem:[#allocation2 + $0x8] sm:$0xff] }
 0x16b   :  { %v1437_v41 = vrot.slane %v1399_v28, 4  ;;  %v1183_v29 = vrot.slane %v1138_v34, 4  ;;  %4203 = vmatpush1.bf16.msra.mxu0 %v5031_v3  ;;  %4128 = vmatprep.mubr.bf16.mxu0 %v5133_v30  ;;  %v2081_v50 = vmul.bf16 %v6388_v44, %v2024_v25 }
 0x16c   :  { %2138 = vrot.lane.b32.xlu1 %v2085_v58, %s5320_s12  ;;  %1674 = vrot.lane.b32.xlu0 %v1604_v46, %s5319_s5 }
 0x16d   :  { %v1462_v21 = vsel %vm1452_vm15, %v1399_v28, %v1437_v41  ;;  %v1208_v36 = vsel %vm1205_vm1, %v1138_v34, %v1183_v29  ;;  %v5034_v31 = vld [vmem:[#allocation3 + $0x350] ss:$8 sps:$4 sm:$0xff]   ;;  %v5036_v33 = vld [vmem:[#allocation3 + $0x354] ss:$8 sps:$4 sm:$0xff]   ;;  %v1600_v41 = vmul.bf16 %v5963_v38, %v6278_v39 }
 0x16e   :  { %1510 = vst.msk [vmem:[#allocation3 + $0x348] sm:$0xff] %vm5626_vm8, %v1462_v21  ;;  %1256 = vst.msk [vmem:[#allocation3 + $0x250] sm:$0xff] %vm5626_vm8, %v1208_v36  ;;  %v1140_v42 = vpop.permute.xlu1 %1139  ;;  %v1393_v54 = vpop.permute.xlu0 %1392  ;;  %4269 = vmatprep.subr.bf16.mxu1 %v5036_v33  ;;  %4192 = vmatmul.mubr.bf16.gmra.mxu1 %v5120_v8 }
 0x16f   :  { %v1184_v24 = vrot.slane %v1140_v42, 4  ;;  %v1434_v17 = vrot.slane %v1393_v54, 4  ;;  %4270 = vmatpush1.bf16.msra.mxu1 %v5034_v31  ;;  %4297 = vmatprep.mubr.bf16.mxu1 %v5129_v10 }
 0x170   :  { %1676 = vrot.lane.b32.xlu1 %v1605_v61, %s5319_s5  ;;  %2132 = vrot.lane.b32.xlu0 %v2082_v63, %s5320_s12  ;;  %v1601_v61 = vmul.bf16 %v5963_v38, %v6276_v53 }
 0x171   :  { %v1209_v20 = vsel %vm1205_vm1, %v1140_v42, %v1184_v24  ;;  %v1459_v16 = vsel %vm1452_vm15, %v1393_v54, %v1434_v17  ;;  %v5037_v14 = vld [vmem:[#allocation3 + $0x260] ss:$8 sps:$4 sm:$0xff]   ;;  %v5039_v9 = vld [vmem:[#allocation3 + $0x264] ss:$8 sps:$4 sm:$0xff]  }
 0x172   :  { %1257 = vst.msk [vmem:[#allocation3 + $0x258] sm:$0xff] %vm5626_vm8, %v1209_v20  ;;  %1507 = vst.msk [vmem:[#allocation3 + $0x330] sm:$0xff] %vm5626_vm8, %v1459_v16  ;;  %v1395_v19 = vpop.permute.xlu1 %1394  ;;  %v1825_v26 = vpop.permute.xlu0 %1824  ;;  %4204 = vmatprep.subr.bf16.mxu0 %v5039_v9  ;;  %4129 = vmatmul.mubr.bf16.gmra.mxu0 %v5135_v37 }
 0x173   :  { %v1435_v57 = vrot.slane %v1395_v19, 4  ;;  %4205 = vmatpush1.bf16.msra.mxu0 %v5037_v14  ;;  %v1826_v45 = vrot.slane %v1825_v26, 4  ;;  %4234 = vmatprep.mubr.bf16.mxu0 %v5141_v15  ;;  %v1598_v14 = vmul.bf16 %v5963_v38, %v6532_v60 }
 0x174   :  { %2134 = vrot.lane.b32.xlu1 %v2083_v18, %s5320_s12  ;;  %1670 = vrot.lane.b32.xlu0 %v1602_v56, %s5319_s5 }
 0x175   :  { %v1460_v1 = vsel %vm1452_vm15, %v1395_v19, %v1435_v57  ;;  %v5040_v62 = vld [vmem:[#allocation3 + $0x340] ss:$8 sps:$4 sm:$0xff]   ;;  %v5042_v51 = vld [vmem:[#allocation3 + $0x344] ss:$8 sps:$4 sm:$0xff]   ;;  %v6514_v29 = vsel %vm1827_vm2, %v1826_v45, %v1825_v26 }
 0x176   :  { %1508 = vst.msk [vmem:[#allocation3 + $0x338] sm:$0xff] %vm5626_vm8, %v1460_v1  ;;  %v1134_v5 = vpop.permute.xlu1 %1133  ;;  %v1136_v23 = vpop.permute.xlu0 %1135  ;;  %4271 = vmatprep.subr.bf16.mxu1 %v5042_v51  ;;  %v1852_v63 = vmul.bf16 %v6514_v29, %v6222_v22  ;;  %v1853_v16 = vmul.bf16 %v6514_v29, %v6220_v48  ;;  %v6546_v57 = vld [vmem:[#allocation2 + $0x88] sm:$0xff]  ;;  %v1850_v1 = vmul.bf16 %v6514_v29, %v6250_v7 }
 0x177   :  { %v1181_v12 = vrot.slane %v1134_v5, 4  ;;  %v1182_v43 = vrot.slane %v1136_v23, 4  ;;  %4272 = vmatpush1.bf16.msra.mxu1 %v5040_v62  ;;  %v1599_v52 = vmul.bf16 %v5963_v38, %v6546_v57 }
 0x178   :  { %1672 = vrot.lane.b32.xlu1 %v1603_v55, %s5319_s5  ;;  %2128 = vrot.lane.b32.xlu0 %v2080_v47, %s5320_s12 }
 0x179   :  { %v1206_v3 = vsel %vm1205_vm1, %v1134_v5, %v1181_v12  ;;  %v1207_v6 = vsel %vm1205_vm1, %v1136_v23, %v1182_v43  ;;  %v5043_v28 = vld [vmem:[#allocation3 + $0x250] ss:$8 sps:$4 sm:$0xff]   ;;  %v5045_v34 = vld [vmem:[#allocation3 + $0x254] ss:$8 sps:$4 sm:$0xff]   ;;  %v1851_v12 = vmul.bf16 %v6514_v29, %v6248_v35 }
 0x17a   :  { %1254 = vst.msk [vmem:[#allocation3 + $0x240] sm:$0xff] %vm5626_vm8, %v1206_v3  ;;  %1255 = vst.msk [vmem:[#allocation3 + $0x248] sm:$0xff] %vm5626_vm8, %v1207_v6  ;;  %v1389_v58 = vpop.permute.xlu1 %1388  ;;  %v1391_v46 = vpop.permute.xlu0 %1390  ;;  %4206 = vmatprep.subr.bf16.mxu0 %v5045_v34 }
 0x17b   :  { %v1432_v30 = vrot.slane %v1389_v58, 4  ;;  %v1433_v49 = vrot.slane %v1391_v46, 4  ;;  %4207 = vmatpush1.bf16.msra.mxu0 %v5043_v28  ;;  %v7434_v28 = vmul.bf16 %v5963_v38, %v5967_v40 }
 0x17c   :  { %2130 = vrot.lane.b32.xlu1 %v2081_v50, %s5320_s12  ;;  %1666 = vrot.lane.b32.xlu0 %v1600_v41, %s5319_s5  ;;  %v1848_v50 = vmul.bf16 %v6514_v29, %v6278_v39 }
 0x17d   :  { %v1457_v21 = vsel %vm1452_vm15, %v1389_v58, %v1432_v30  ;;  %v1458_v36 = vsel %vm1452_vm15, %v1391_v46, %v1433_v49  ;;  %v5046_v31 = vld [vmem:[#allocation3 + $0x330] ss:$8 sps:$4 sm:$0xff]   ;;  %v5048_v33 = vld [vmem:[#allocation3 + $0x334] ss:$8 sps:$4 sm:$0xff]  }
 0x17e   :  { %1505 = vst.msk [vmem:[#allocation3 + $0x320] sm:$0xff] %vm5626_vm8, %v1457_v21  ;;  %1506 = vst.msk [vmem:[#allocation3 + $0x328] sm:$0xff] %vm5626_vm8, %v1458_v36  ;;  %v928_v42 = vpop.permute.xlu1 %927  ;;  %v930_v54 = vpop.permute.xlu0 %929  ;;  %4273 = vmatprep.subr.bf16.mxu1 %v5048_v33  ;;  %v7435_v21 = vmul.bf16 %v5963_v38, %v5973_v59  ;;  %v1849_v59 = vmul.bf16 %v6514_v29, %v6276_v53 }
 0x17f   :  { %v953_v8 = vrot.slane %v928_v42, 4  ;;  %v954_v24 = vrot.slane %v930_v54, 4  ;;  %4274 = vmatpush1.bf16.msra.mxu1 %v5046_v31 }
 0x180   :  { %1668 = vrot.lane.b32.xlu1 %v1601_v61, %s5319_s5  ;;  %1922 = vrot.lane.b32.xlu0 %v1852_v63, %s5322_s6 }
 0x181   :  { %v978_v17 = vsel %vm955_vm14, %v928_v42, %v953_v8  ;;  %v979_v10 = vsel %vm955_vm14, %v930_v54, %v954_v24  ;;  %v5049_v9 = vld [vmem:[#allocation3 + $0x240] ss:$8 sps:$4 sm:$0xff]   ;;  %v5051_v19 = vld [vmem:[#allocation3 + $0x244] ss:$8 sps:$4 sm:$0xff]   ;;  %v7436_v8 = vmul.bf16 %v5963_v38, %v5975_v0 }
 0x182   :  { %1026 = vst.msk [vmem:[#allocation3 + $0x230] sm:$0xff] %vm5626_vm8, %v978_v17  ;;  %1027 = vst.msk [vmem:[#allocation3 + $0x238] sm:$0xff] %vm5626_vm8, %v979_v10  ;;  %v1385_v22 = vpop.permute.xlu1 %1384  ;;  %v1387_v20 = vpop.permute.xlu0 %1386  ;;  %4208 = vmatprep.subr.bf16.mxu0 %v5051_v19 }
 0x183   :  { %v1430_v26 = vrot.slane %v1385_v22, 4  ;;  %v1431_v18 = vrot.slane %v1387_v20, 4  ;;  %4209 = vmatpush1.bf16.msra.mxu0 %v5049_v9  ;;  %v7437_v9 = vmul.bf16 %v5963_v38, %v5977_v4  ;;  %v1847_v4 = vmul.bf16 %v6514_v29, %v6546_v57 }
 0x184   :  { %1924 = vrot.lane.b32.xlu1 %v1853_v16, %s5322_s6  ;;  %1662 = vrot.lane.b32.xlu0 %v1598_v14, %s5319_s5 }
 0x185   :  { %v1455_v56 = vsel %vm1452_vm15, %v1385_v22, %v1430_v26  ;;  %v1456_v37 = vsel %vm1452_vm15, %v1387_v20, %v1431_v18  ;;  %v5052_v62 = vld [vmem:[#allocation3 + $0x320] ss:$8 sps:$4 sm:$0xff]   ;;  %v5054_v51 = vld [vmem:[#allocation3 + $0x324] ss:$8 sps:$4 sm:$0xff]   ;;  %v1846_v22 = vmul.bf16 %v6514_v29, %v6532_v60 }
 0x186   :  { %1503 = vst.msk [vmem:[#allocation3 + $0x310] sm:$0xff] %vm5626_vm8, %v1455_v56  ;;  %1504 = vst.msk [vmem:[#allocation3 + $0x318] sm:$0xff] %vm5626_vm8, %v1456_v37  ;;  %v924_v48 = vpop.permute.xlu1 %923  ;;  %v926_v15 = vpop.permute.xlu0 %925  ;;  %4275 = vmatprep.subr.bf16.mxu1 %v5054_v51  ;;  %v1592_v37 = vmul.bf16 %v5963_v38, %v6379_v27 }
 0x187   :  { %v951_v5 = vrot.slane %v924_v48, 4  ;;  %v952_v23 = vrot.slane %v926_v15, 4  ;;  %4276 = vmatpush1.bf16.msra.mxu1 %v5052_v62 }
 0x188   :  { %1664 = vrot.lane.b32.xlu1 %v1599_v52, %s5319_s5  ;;  %1918 = vrot.lane.b32.xlu0 %v1850_v1, %s5322_s6 }
 0x189   :  { %v976_v55 = vsel %vm955_vm14, %v924_v48, %v951_v5  ;;  %v977_v47 = vsel %vm955_vm14, %v926_v15, %v952_v23  ;;  %v5055_v43 = vld [vmem:[#allocation3 + $0x230] ss:$8 sps:$4 sm:$0xff]   ;;  %v5057_v25 = vld [vmem:[#allocation3 + $0x234] ss:$8 sps:$4 sm:$0xff]  }
 0x18a   :  { %1024 = vst.msk [vmem:[#allocation3 + $0x220] sm:$0xff] %vm5626_vm8, %v976_v55  ;;  %1025 = vst.msk [vmem:[#allocation3 + $0x228] sm:$0xff] %vm5626_vm8, %v977_v47  ;;  %v1381_v7 = vpop.permute.xlu1 %1380  ;;  %v1383_v45 = vpop.permute.xlu0 %1382  ;;  %4210 = vmatprep.subr.bf16.mxu0 %v5057_v25  ;;  %v2045_v5 = vld [vmem:[#allocation2 + $0xb0] sm:$0xff]  ;;  %v7438_v25 = vmul.bf16 %v5963_v38, %v5979_v2 }
 0x18b   :  { %v1428_v3 = vrot.slane %v1381_v7, 4  ;;  %v1429_v6 = vrot.slane %v1383_v45, 4  ;;  %4211 = vmatpush1.bf16.msra.mxu0 %v5055_v43  ;;  %v2102_v47 = vmul.bf16 %v6388_v44, %v2045_v5 }
 0x18c   :  { %1920 = vrot.lane.b32.xlu1 %v1851_v12, %s5322_s6  ;;  %1658 = vrot.lane.b32.xlu0 %v7434_v28, %s5319_s5  ;;  %v2046_v28 = vld [vmem:[#allocation2 + $0xb8] sm:$0xff] }
 0x18d   :  { %v1453_v34 = vsel %vm1452_vm15, %v1381_v7, %v1428_v3  ;;  %v1454_v58 = vsel %vm1452_vm15, %v1383_v45, %v1429_v6  ;;  %v5058_v41 = vld [vmem:[#allocation3 + $0x310] ss:$8 sps:$4 sm:$0xff]   ;;  %v5060_v40 = vld [vmem:[#allocation3 + $0x314] ss:$8 sps:$4 sm:$0xff]   ;;  %v2103_v2 = vmul.bf16 %v6388_v44, %v2046_v28 }
 0x18e   :  { %1501 = vst.msk [vmem:[#allocation3 + $0x300] sm:$0xff] %vm5626_vm8, %v1453_v34  ;;  %1502 = vst.msk [vmem:[#allocation3 + $0x308] sm:$0xff] %vm5626_vm8, %v1454_v58  ;;  %v920_v35 = vpop.permute.xlu1 %919  ;;  %v922_v46 = vpop.permute.xlu0 %921  ;;  %4277 = vmatprep.subr.bf16.mxu1 %v5060_v40 }
 0x18f   :  { %v949_v30 = vrot.slane %v920_v35, 4  ;;  %v950_v49 = vrot.slane %v922_v46, 4  ;;  %4278 = vmatpush1.bf16.msra.mxu1 %v5058_v41 }
 0x190   :  { %1660 = vrot.lane.b32.xlu1 %v7435_v21, %s5319_s5  ;;  %1914 = vrot.lane.b32.xlu0 %v1848_v50, %s5322_s6  ;;  %v2043_v21 = vld [vmem:[#allocation2 + $0xa0] sm:$0xff] }
 0x191   :  { %v974_v36 = vsel %vm955_vm14, %v920_v35, %v949_v30  ;;  %v975_v31 = vsel %vm955_vm14, %v922_v46, %v950_v49  ;;  %v5061_v42 = vld [vmem:[#allocation3 + $0x220] ss:$8 sps:$4 sm:$0xff]   ;;  %v5063_v54 = vld [vmem:[#allocation3 + $0x224] ss:$8 sps:$4 sm:$0xff]   ;;  %v1590_v35 = vmul.bf16 %v5963_v38, %v6412_v13 }
 0x192   :  { %1022 = vst.msk [vmem:[#allocation3 + $0x210] sm:$0xff] %vm5626_vm8, %v974_v36  ;;  %1023 = vst.msk [vmem:[#allocation3 + $0x218] sm:$0xff] %vm5626_vm8, %v975_v31  ;;  %v1643_v39 = vpop.permute.xlu1 %1642  ;;  %v1645_v33 = vpop.permute.xlu0 %1644  ;;  %4212 = vmatprep.subr.bf16.mxu0 %v5063_v54 }
 0x193   :  { %v1684_v61 = vrot.slane %v1643_v39, 4  ;;  %v1685_v63 = vrot.slane %v1645_v33, 4  ;;  %4213 = vmatpush1.bf16.msra.mxu0 %v5061_v42 }
 0x194   :  { %1916 = vrot.lane.b32.xlu1 %v1849_v59, %s5322_s6  ;;  %1654 = vrot.lane.b32.xlu0 %v7436_v8, %s5319_s5 }
 0x195   :  { %v1709_v24 = vsel %vm1702_vm3, %v1643_v39, %v1684_v61  ;;  %v1710_v17 = vsel %vm1702_vm3, %v1645_v33, %v1685_v63  ;;  %v5064_v20 = vld [vmem:[#allocation3 + $0x300] ss:$8 sps:$4 sm:$0xff]   ;;  %v5066_v0 = vld [vmem:[#allocation3 + $0x304] ss:$8 sps:$4 sm:$0xff]   ;;  %v1591_v39 = vmul.bf16 %v5963_v38, %v6427_v32  ;;  %v2100_v33 = vmul.bf16 %v6388_v44, %v2043_v21 }
 0x196   :  { %1757 = vst.msk [vmem:[#allocation3 + $0x3f0] sm:$0xff] %vm5626_vm8, %v1709_v24  ;;  %1758 = vst.msk [vmem:[#allocation3 + $0x3f8] sm:$0xff] %vm5626_vm8, %v1710_v17  ;;  %v916_v53 = vpop.permute.xlu1 %915  ;;  %v918_v10 = vpop.permute.xlu0 %917  ;;  %4279 = vmatprep.subr.bf16.mxu1 %v5066_v0  ;;  %v2044_v63 = vld [vmem:[#allocation2 + $0xa8] sm:$0xff]  ;;  %v6658_v17 = vld [vmem:[#allocation2 + $0x70] sm:$0xff] }
 0x197   :  { %v947_v16 = vrot.slane %v916_v53, 4  ;;  %v948_v14 = vrot.slane %v918_v10, 4  ;;  %4280 = vmatpush1.bf16.msra.mxu1 %v5064_v20 }
 0x198   :  { %1656 = vrot.lane.b32.xlu1 %v7437_v9, %s5319_s5  ;;  %1910 = vrot.lane.b32.xlu0 %v1846_v22, %s5322_s6  ;;  %v1844_v22 = vmul.bf16 %v6514_v29, %v6658_v17  ;;  %v6669_v9 = vld [vmem:[#allocation2 + $0x90] sm:$0xff] }
 0x199   :  { %v972_v19 = vsel %vm955_vm14, %v916_v53, %v947_v16  ;;  %v973_v26 = vsel %vm955_vm14, %v918_v10, %v948_v14  ;;  %v5067_v48 = vld [vmem:[#allocation3 + $0x210] ss:$8 sps:$4 sm:$0xff]   ;;  %v5069_v15 = vld [vmem:[#allocation3 + $0x214] ss:$8 sps:$4 sm:$0xff]   ;;  %v2101_v10 = vmul.bf16 %v6388_v44, %v2044_v63 }
 0x19a   :  { %1020 = vst.msk [vmem:[#allocation3 + $0x200] sm:$0xff] %vm5626_vm8, %v972_v19  ;;  %1021 = vst.msk [vmem:[#allocation3 + $0x208] sm:$0xff] %vm5626_vm8, %v973_v26  ;;  %v1639_v18 = vpop.permute.xlu1 %1638  ;;  %v1641_v56 = vpop.permute.xlu0 %1640  ;;  %4214 = vmatprep.subr.bf16.mxu0 %v5069_v15 }
 0x19b   :  { %v1682_v52 = vrot.slane %v1639_v18, 4  ;;  %v1683_v1 = vrot.slane %v1641_v56, 4  ;;  %4215 = vmatpush1.bf16.msra.mxu0 %v5067_v48  ;;  %v2098_v48 = vmul.bf16 %v6388_v44, %v6669_v9 }
 0x19c   :  { %1912 = vrot.lane.b32.xlu1 %v1847_v4, %s5322_s6  ;;  %1650 = vrot.lane.b32.xlu0 %v1592_v37, %s5319_s5 }
 0x19d   :  { %v1707_v62 = vsel %vm1702_vm3, %v1639_v18, %v1682_v52  ;;  %v1708_v51 = vsel %vm1702_vm3, %v1641_v56, %v1683_v1  ;;  %v5070_v7 = vld [vmem:[#allocation3 + $0x3f0] ss:$8 sps:$4 sm:$0xff]   ;;  %v5072_v45 = vld [vmem:[#allocation3 + $0x3f4] ss:$8 sps:$4 sm:$0xff]  }
 0x19e   :  { %1755 = vst.msk [vmem:[#allocation3 + $0x3e0] sm:$0xff] %vm5626_vm8, %v1707_v62  ;;  %1756 = vst.msk [vmem:[#allocation3 + $0x3e8] sm:$0xff] %vm5626_vm8, %v1708_v51  ;;  %v1178_v23 = vpop.permute.xlu1 %1177  ;;  %v1180_v55 = vpop.permute.xlu0 %1179  ;;  %4281 = vmatprep.subr.bf16.mxu1 %v5072_v45  ;;  %v6673_v18 = vld [vmem:[#allocation2 + $0x78] sm:$0xff] }
 0x19f   :  { %v1203_v12 = vrot.slane %v1178_v23, 4  ;;  %v1204_v43 = vrot.slane %v1180_v55, 4  ;;  %4282 = vmatpush2.bf16.msra.mxu1 %v5070_v7  ;;  %v1845_v37 = vmul.bf16 %v6514_v29, %v6673_v18  ;;  %v6685_v51 = vld [vmem:[#allocation2 + $0x98] sm:$0xff] }
 0x1a0   :  { %1652 = vrot.lane.b32.xlu1 %v7438_v25, %s5319_s5  ;;  %2172 = vrot.lane.b32.xlu0 %v2102_v47, %s5320_s12  ;;  %v2099_v45 = vmul.bf16 %v6388_v44, %v6685_v51 }
 0x1a1   :  { %v1228_v3 = vsel %vm1205_vm1, %v1178_v23, %v1203_v12  ;;  %v1229_v6 = vsel %vm1205_vm1, %v1180_v55, %v1204_v43  ;;  %v5073_v46 = vld [vmem:[#allocation3 + $0x200] ss:$8 sps:$4 sm:$0xff]   ;;  %v5075_v50 = vld [vmem:[#allocation3 + $0x204] ss:$8 sps:$4 sm:$0xff]  }
 0x1a2   :  { %1276 = vst.msk [vmem:[#allocation3 + $0x2f0] sm:$0xff] %vm5626_vm8, %v1228_v3  ;;  %1277 = vst.msk [vmem:[#allocation3 + $0x2f8] sm:$0xff] %vm5626_vm8, %v1229_v6  ;;  %v1635_v34 = vpop.permute.xlu1 %1634  ;;  %v1637_v58 = vpop.permute.xlu0 %1636  ;;  %4216 = vmatprep.subr.bf16.mxu0 %v5075_v50  ;;  %v6689_v55 = vld [vmem:[#allocation2 + $0x60] sm:$0xff]  ;;  %v2096_v50 = vmul.bf16 %v6388_v44, %v6532_v60 }
 0x1a3   :  { %v1680_v41 = vrot.slane %v1635_v34, 4  ;;  %v1681_v40 = vrot.slane %v1637_v58, 4  ;;  %4217 = vmatpush1.bf16.msra.mxu0 %v5073_v46  ;;  %v1842_v12 = vmul.bf16 %v6514_v29, %v6689_v55 }
 0x1a4   :  { %2174 = vrot.lane.b32.xlu1 %v2103_v2, %s5320_s12  ;;  %1646 = vrot.lane.b32.xlu0 %v1590_v35, %s5319_s5 }
 0x1a5   :  { %v1705_v30 = vsel %vm1702_vm3, %v1635_v34, %v1680_v41  ;;  %v1706_v49 = vsel %vm1702_vm3, %v1637_v58, %v1681_v40  ;;  %v5076_v59 = vld [vmem:[#allocation3 + $0x3e0] ss:$8 sps:$4 sm:$0xff]   ;;  %v5078_v42 = vld [vmem:[#allocation3 + $0x3e4] ss:$8 sps:$4 sm:$0xff]  }
 0x1a6   :  { %1753 = vst.msk [vmem:[#allocation3 + $0x3d0] sm:$0xff] %vm5626_vm8, %v1705_v30  ;;  %1754 = vst.msk [vmem:[#allocation3 + $0x3d8] sm:$0xff] %vm5626_vm8, %v1706_v49  ;;  %v1174_v36 = vpop.permute.xlu1 %1173  ;;  %v1176_v31 = vpop.permute.xlu0 %1175  ;;  %4283 = vmatprep.subr.bf16.mxu1 %v5078_v42  ;;  %v6703_v58 = vld [vmem:[#allocation2 + $0x68] sm:$0xff] }
 0x1a7   :  { %v1201_v54 = vrot.slane %v1174_v36, 4  ;;  %v1202_v61 = vrot.slane %v1176_v31, 4  ;;  %4284 = vmatpush2.bf16.msra.mxu1 %v5076_v59  ;;  %v1843_v46 = vmul.bf16 %v6514_v29, %v6703_v58 }
 0x1a8   :  { %1648 = vrot.lane.b32.xlu1 %v1591_v39, %s5319_s5  ;;  %2168 = vrot.lane.b32.xlu0 %v2100_v33, %s5320_s12  ;;  %v2097_v39 = vmul.bf16 %v6388_v44, %v6546_v57  ;;  %v1840_v33 = vmul.bf16 %v6514_v29, %v6379_v27 }
 0x1a9   :  { %v1226_v8 = vsel %vm1205_vm1, %v1174_v36, %v1201_v54  ;;  %v1227_v24 = vsel %vm1205_vm1, %v1176_v31, %v1202_v61  ;;  %v5079_v20 = vld [vmem:[#allocation3 + $0x2f0] ss:$8 sps:$4 sm:$0xff]   ;;  %v5081_v0 = vld [vmem:[#allocation3 + $0x2f4] ss:$8 sps:$4 sm:$0xff]  }
 0x1aa   :  { %1274 = vst.msk [vmem:[#allocation3 + $0x2e0] sm:$0xff] %vm5626_vm8, %v1226_v8  ;;  %1275 = vst.msk [vmem:[#allocation3 + $0x2e8] sm:$0xff] %vm5626_vm8, %v1227_v24  ;;  %v1631_v38 = vpop.permute.xlu1 %1630  ;;  %v1633_v53 = vpop.permute.xlu0 %1632  ;;  %4218 = vmatprep.subr.bf16.mxu0 %v5081_v0  ;;  %v6729_v24 = vld [vmem:[#allocation2 + $0x58] sm:$0xff] }
 0x1ab   :  { %v1678_v16 = vrot.slane %v1631_v38, 4  ;;  %v1679_v14 = vrot.slane %v1633_v53, 4  ;;  %4219 = vmatpush2.bf16.msra.mxu0 %v5079_v20 }
 0x1ac   :  { %2170 = vrot.lane.b32.xlu1 %v2101_v10, %s5320_s12  ;;  %1906 = vrot.lane.b32.xlu0 %v1844_v22, %s5322_s6 }
 0x1ad   :  { %v1703_v19 = vsel %vm1702_vm3, %v1631_v38, %v1678_v16  ;;  %v1704_v26 = vsel %vm1702_vm3, %v1633_v53, %v1679_v14  ;;  %v5082_v15 = vld [vmem:[#allocation3 + $0x3d0] ss:$8 sps:$4 sm:$0xff]   ;;  %v5084_v52 = vld [vmem:[#allocation3 + $0x3d4] ss:$8 sps:$4 sm:$0xff]   ;;  %v1841_v38 = vmul.bf16 %v6514_v29, %v6729_v24  ;;  %v2094_v53 = vmul.bf16 %v6388_v44, %v6658_v17 }
 0x1ae   :  { %1751 = vst.msk [vmem:[#allocation3 + $0x3c0] sm:$0xff] %vm5626_vm8, %v1703_v19  ;;  %1752 = vst.msk [vmem:[#allocation3 + $0x3c8] sm:$0xff] %vm5626_vm8, %v1704_v26  ;;  %v1170_v56 = vpop.permute.xlu1 %1169  ;;  %v1172_v4 = vpop.permute.xlu0 %1171  ;;  %4285 = vmatprep.subr.bf16.mxu1 %v5084_v52 }
 0x1af   :  { %v1199_v1 = vrot.slane %v1170_v56, 4  ;;  %v1200_v62 = vrot.slane %v1172_v4, 4  ;;  %4286 = vmatpush2.bf16.msra.mxu1 %v5082_v15 }
 0x1b0   :  { %1908 = vrot.lane.b32.xlu1 %v1845_v37, %s5322_s6  ;;  %2164 = vrot.lane.b32.xlu0 %v2098_v48, %s5320_s12 }
 0x1b1   :  { %v1224_v5 = vsel %vm1205_vm1, %v1170_v56, %v1199_v1  ;;  %v1225_v23 = vsel %vm1205_vm1, %v1172_v4, %v1200_v62  ;;  %v5085_v43 = vld [vmem:[#allocation3 + $0x2e0] ss:$8 sps:$4 sm:$0xff]   ;;  %v5087_v25 = vld [vmem:[#allocation3 + $0x2e4] ss:$8 sps:$4 sm:$0xff]   ;;  %v2095_v56 = vmul.bf16 %v6388_v44, %v6673_v18  ;;  %v1838_v4 = vmul.bf16 %v6514_v29, %v6412_v13 }
 0x1b2   :  { %1272 = vst.msk [vmem:[#allocation3 + $0x2d0] sm:$0xff] %vm5626_vm8, %v1224_v5  ;;  %1273 = vst.msk [vmem:[#allocation3 + $0x2d8] sm:$0xff] %vm5626_vm8, %v1225_v23  ;;  %v1425_v47 = vpop.permute.xlu1 %1424  ;;  %v1427_v7 = vpop.permute.xlu0 %1426  ;;  %4220 = vmatprep.subr.bf16.mxu0 %v5087_v25  ;;  %v1839_v23 = vmul.bf16 %v6514_v29, %v6427_v32 }
 0x1b3   :  { %v1450_v3 = vrot.slane %v1425_v47, 4  ;;  %v1451_v6 = vrot.slane %v1427_v7, 4  ;;  %4221 = vmatpush2.bf16.msra.mxu0 %v5085_v43 }
 0x1b4   :  { %2166 = vrot.lane.b32.xlu1 %v2099_v45, %s5320_s12  ;;  %1902 = vrot.lane.b32.xlu0 %v1842_v12, %s5322_s6 }
 0x1b5   :  { %v1475_v28 = vsel %vm1452_vm15, %v1425_v47, %v1450_v3  ;;  %v1476_v34 = vsel %vm1452_vm15, %v1427_v7, %v1451_v6  ;;  %v5088_v41 = vld [vmem:[#allocation3 + $0x3c0] ss:$8 sps:$4 sm:$0xff]   ;;  %v5090_v40 = vld [vmem:[#allocation3 + $0x3c4] ss:$8 sps:$4 sm:$0xff]   ;;  %v2092_v47 = vmul.bf16 %v6388_v44, %v6689_v55  ;;  %v6767_v6 = vld [vmem:[#allocation2 + $0x30] sm:$0xff] }
 0x1b6   :  { %1523 = vst.msk [vmem:[#allocation3 + $0x3b0] sm:$0xff] %vm5626_vm8, %v1475_v28  ;;  %1524 = vst.msk [vmem:[#allocation3 + $0x3b8] sm:$0xff] %vm5626_vm8, %v1476_v34  ;;  %v1166_v2 = vpop.permute.xlu1 %1165  ;;  %v1168_v35 = vpop.permute.xlu0 %1167  ;;  %4287 = vmatprep.subr.bf16.mxu1 %v5090_v40  ;;  %v2093_v34 = vmul.bf16 %v6388_v44, %v6703_v58  ;;  %v6779_v40 = vld [vmem:[#allocation2 + $0x50] sm:$0xff] }
 0x1b7   :  { %v1197_v30 = vrot.slane %v1166_v2, 4  ;;  %v1198_v49 = vrot.slane %v1168_v35, 4  ;;  %4288 = vmatpush2.bf16.msra.mxu1 %v5088_v41 }
 0x1b8   :  { %1904 = vrot.lane.b32.xlu1 %v1843_v46, %s5322_s6  ;;  %2160 = vrot.lane.b32.xlu0 %v2096_v50, %s5320_s12 }
 0x1b9   :  { %v1222_v21 = vsel %vm1205_vm1, %v1166_v2, %v1197_v30  ;;  %v1223_v36 = vsel %vm1205_vm1, %v1168_v35, %v1198_v49  ;;  %v5091_v59 = vld [vmem:[#allocation3 + $0x2d0] ss:$8 sps:$4 sm:$0xff]   ;;  %v5093_v42 = vld [vmem:[#allocation3 + $0x2d4] ss:$8 sps:$4 sm:$0xff]   ;;  %v1836_v2 = vmul.bf16 %v6514_v29, %v6767_v6 }
 0x1ba   :  { %1270 = vst.msk [vmem:[#allocation3 + $0x2c0] sm:$0xff] %vm5626_vm8, %v1222_v21  ;;  %1271 = vst.msk [vmem:[#allocation3 + $0x2c8] sm:$0xff] %vm5626_vm8, %v1223_v36  ;;  %v1421_v60 = vpop.permute.xlu1 %1420  ;;  %v1423_v31 = vpop.permute.xlu0 %1422  ;;  %4222 = vmatprep.subr.bf16.mxu0 %v5093_v42  ;;  %v6783_v21 = vld [vmem:[#allocation2 + $0x38] sm:$0xff] }
 0x1bb   :  { %v1448_v54 = vrot.slane %v1421_v60, 4  ;;  %v1449_v61 = vrot.slane %v1423_v31, 4  ;;  %4223 = vmatpush2.bf16.msra.mxu0 %v5091_v59 }
 0x1bc   :  { %2162 = vrot.lane.b32.xlu1 %v2097_v39, %s5320_s12  ;;  %1898 = vrot.lane.b32.xlu0 %v1840_v33, %s5322_s6  ;;  %v2090_v39 = vmul.bf16 %v6388_v44, %v6779_v40 }
 0x1bd   :  { %v1473_v63 = vsel %vm1452_vm15, %v1421_v60, %v1448_v54  ;;  %v1474_v8 = vsel %vm1452_vm15, %v1423_v31, %v1449_v61  ;;  %v5094_v10 = vld [vmem:[#allocation3 + $0x3b0] ss:$8 sps:$4 sm:$0xff]   ;;  %v5096_v22 = vld [vmem:[#allocation3 + $0x3b4] ss:$8 sps:$4 sm:$0xff]   ;;  %v1837_v31 = vmul.bf16 %v6514_v29, %v6783_v21 }
 0x1be   :  { %1521 = vst.msk [vmem:[#allocation3 + $0x3a0] sm:$0xff] %vm5626_vm8, %v1473_v63  ;;  %1522 = vst.msk [vmem:[#allocation3 + $0x3a8] sm:$0xff] %vm5626_vm8, %v1474_v8  ;;  %v1162_v27 = vpop.permute.xlu1 %1161  ;;  %v1164_v57 = vpop.permute.xlu0 %1163  ;;  %4289 = vmatprep.subr.bf16.mxu1 %v5096_v22  ;;  %v6797_v8 = vld [vmem:[#allocation2 + $0x20] sm:$0xff] }
 0x1bf   :  { %v1195_v20 = vrot.slane %v1162_v27, 4  ;;  %v1196_v0 = vrot.slane %v1164_v57, 4  ;;  %4290 = vmatpush2.bf16.msra.mxu1 %v5094_v10 }
 0x1c0   :  { %1900 = vrot.lane.b32.xlu1 %v1841_v38, %s5322_s6  ;;  %2156 = vrot.lane.b32.xlu0 %v2094_v53, %s5320_s12  ;;  %v2091_v38 = vmul.bf16 %v6388_v44, %v6729_v24  ;;  %v1834_v53 = vmul.bf16 %v6514_v29, %v6797_v8 }
 0x1c1   :  { %v1220_v16 = vsel %vm1205_vm1, %v1162_v27, %v1195_v20  ;;  %v1221_v14 = vsel %vm1205_vm1, %v1164_v57, %v1196_v0  ;;  %v5097_v37 = vld [vmem:[#allocation3 + $0x2c0] ss:$8 sps:$4 sm:$0xff]   ;;  %v5099_v48 = vld [vmem:[#allocation3 + $0x2c4] ss:$8 sps:$4 sm:$0xff]  }
 0x1c2   :  { %1268 = vst.msk [vmem:[#allocation3 + $0x2b0] sm:$0xff] %vm5626_vm8, %v1220_v16  ;;  %1269 = vst.msk [vmem:[#allocation3 + $0x2b8] sm:$0xff] %vm5626_vm8, %v1221_v14  ;;  %v1417_v19 = vpop.permute.xlu1 %1416  ;;  %v1419_v26 = vpop.permute.xlu0 %1418  ;;  %4224 = vmatprep.subr.bf16.mxu0 %v5099_v48  ;;  %v6809_v16 = vld [vmem:[#allocation2 + $0x40] sm:$0xff] }
 0x1c3   :  { %v1446_v15 = vrot.slane %v1417_v19, 4  ;;  %v1447_v52 = vrot.slane %v1419_v26, 4  ;;  %4225 = vmatpush2.bf16.msra.mxu0 %v5097_v37  ;;  %v2088_v48 = vmul.bf16 %v6388_v44, %v6809_v16 }
 0x1c4   :  { %2158 = vrot.lane.b32.xlu1 %v2095_v56, %s5320_s12  ;;  %1894 = vrot.lane.b32.xlu0 %v1838_v4, %s5322_s6 }
 0x1c5   :  { %v1471_v1 = vsel %vm1452_vm15, %v1417_v19, %v1446_v15  ;;  %v1472_v62 = vsel %vm1452_vm15, %v1419_v26, %v1447_v52  ;;  %v5100_v7 = vld [vmem:[#allocation3 + $0x3a0] ss:$8 sps:$4 sm:$0xff]   ;;  %v5102_v45 = vld [vmem:[#allocation3 + $0x3a4] ss:$8 sps:$4 sm:$0xff]  }
 0x1c6   :  { %1519 = vst.msk [vmem:[#allocation3 + $0x390] sm:$0xff] %vm5626_vm8, %v1471_v1  ;;  %1520 = vst.msk [vmem:[#allocation3 + $0x398] sm:$0xff] %vm5626_vm8, %v1472_v62  ;;  %v1158_v13 = vpop.permute.xlu1 %1157  ;;  %v1160_v5 = vpop.permute.xlu0 %1159  ;;  %4291 = vmatprep.subr.bf16.mxu1 %v5102_v45  ;;  %v6813_v26 = vld [vmem:[#allocation2 + $0x28] sm:$0xff] }
 0x1c7   :  { %v1193_v12 = vrot.slane %v1158_v13, 4  ;;  %v1194_v43 = vrot.slane %v1160_v5, 4  ;;  %4292 = vmatpush2.bf16.msra.mxu1 %v5100_v7  ;;  %v1835_v37 = vmul.bf16 %v6514_v29, %v6813_v26 }
 0x1c8   :  { %1896 = vrot.lane.b32.xlu1 %v1839_v23, %s5322_s6  ;;  %2152 = vrot.lane.b32.xlu0 %v2092_v47, %s5320_s12  ;;  %v5127_v47 = vld [vmem:[%s7425_s1 + $0x18] ss:$56 sps:$4 sm:$0xff]  }
 0x1c9   :  { %v1218_v25 = vsel %vm1205_vm1, %v1158_v13, %v1193_v12  ;;  %v1219_v3 = vsel %vm1205_vm1, %v1160_v5, %v1194_v43  ;;  %v5103_v35 = vld [vmem:[#allocation3 + $0x2b0] ss:$8 sps:$4 sm:$0xff]   ;;  %v5105_v46 = vld [vmem:[#allocation3 + $0x2b4] ss:$8 sps:$4 sm:$0xff]   ;;  %v6825_v13 = vld [vmem:[#allocation2 + $0x48] sm:$0xff] }
 0x1ca   :  { %1266 = vst.msk [vmem:[#allocation3 + $0x2a0] sm:$0xff] %vm5626_vm8, %v1218_v25  ;;  %1267 = vst.msk [vmem:[#allocation3 + $0x2a8] sm:$0xff] %vm5626_vm8, %v1219_v3  ;;  %v1413_v32 = vpop.permute.xlu1 %1412  ;;  %v1415_v28 = vpop.permute.xlu0 %1414  ;;  %4226 = vmatprep.subr.bf16.mxu0 %v5105_v46  ;;  %v6827_v5 = vld [vmem:[#allocation2 + $0x10] sm:$0xff]  ;;  %v2089_v12 = vmul.bf16 %v6388_v44, %v6825_v13 }
 0x1cb   :  { %v1444_v50 = vrot.slane %v1413_v32, 4  ;;  %v1445_v41 = vrot.slane %v1415_v28, 4  ;;  %4227 = vmatpush2.bf16.msra.mxu0 %v5103_v35  ;;  %v1832_v43 = vmul.bf16 %v6514_v29, %v6827_v5  ;;  %v6847_v35 = vld [vmem:[#allocation2 + $0x18] sm:$0xff] }
 0x1cc   :  { %2154 = vrot.lane.b32.xlu1 %v2093_v34, %s5320_s12  ;;  %1890 = vrot.lane.b32.xlu0 %v1836_v2, %s5322_s6  ;;  %v5178_v2 = vld [vmem:[%s7425_s1 + $0x8c] ss:$56 sps:$4 sm:$0xff]  }
 0x1cd   :  { %v1469_v30 = vsel %vm1452_vm15, %v1413_v32, %v1444_v50  ;;  %v1470_v49 = vsel %vm1452_vm15, %v1415_v28, %v1445_v41  ;;  %v5108_v33 = vld [vmem:[#allocation3 + $0x390] ss:$8 sps:$4 sm:$0xff]   ;;  %v5110_v59 = vld [vmem:[#allocation3 + $0x394] ss:$8 sps:$4 sm:$0xff]   ;;  %v2538_v50 = vld [vmem:[%s7425_s1 + $0x88] sm:$0xff] }
 0x1ce   :  { %1517 = vst.msk [vmem:[#allocation3 + $0x380] sm:$0xff] %vm5626_vm8, %v1469_v30  ;;  %1518 = vst.msk [vmem:[#allocation3 + $0x388] sm:$0xff] %vm5626_vm8, %v1470_v49  ;;  %v1154_v36 = vpop.permute.xlu1 %1153  ;;  %v1156_v60 = vpop.permute.xlu0 %1155  ;;  %4293 = vmatprep.subr.bf16.mxu1 %v5110_v59  ;;  %v1833_v49 = vmul.bf16 %v6514_v29, %v6847_v35 }
 0x1cf   :  { %v1191_v42 = vrot.slane %v1154_v36, 4  ;;  %v1192_v54 = vrot.slane %v1156_v60, 4  ;;  %4294 = vmatpush2.bf16.msra.mxu1 %v5108_v33 }
 0x1d0   :  { %1892 = vrot.lane.b32.xlu1 %v1837_v31, %s5322_s6  ;;  %2148 = vrot.lane.b32.xlu0 %v2090_v39, %s5320_s12  ;;  %v2545_v39 = vld [vmem:[%s7425_s1 + $0xc0] sm:$0xff] }
 0x1d1   :  { %v1216_v61 = vsel %vm1205_vm1, %v1154_v36, %v1191_v42  ;;  %v1217_v63 = vsel %vm1205_vm1, %v1156_v60, %v1192_v54  ;;  %v5112_v10 = vld [vmem:[#allocation3 + $0x2a0] ss:$8 sps:$4 sm:$0xff]   ;;  %v5114_v22 = vld [vmem:[#allocation3 + $0x2a4] ss:$8 sps:$4 sm:$0xff]  }
 0x1d2   :  { %1264 = vst.msk [vmem:[#allocation3 + $0x290] sm:$0xff] %vm5626_vm8, %v1216_v61  ;;  %1265 = vst.msk [vmem:[#allocation3 + $0x298] sm:$0xff] %vm5626_vm8, %v1217_v63  ;;  %v2141_v27 = vpop.permute.xlu1 %2140  ;;  %v2143_v57 = vpop.permute.xlu0 %2142  ;;  %4228 = vmatprep.subr.bf16.mxu0 %v5114_v22  ;;  %v4605_v61 = vcombine.low %v2538_v50, %v2545_v39  ;;  %v5177_v39 = vld [vmem:[%s7425_s1 + $0x80] ss:$56 sps:$4 sm:$0xff]  }
 0x1d3   :  { %v2182_v20 = vrot.slane %v2141_v27, 4  ;;  %v2183_v0 = vrot.slane %v2143_v57, 4  ;;  %4229 = vmatpush2.bf16.msra.mxu0 %v5112_v10 }
 0x1d4   :  { %2150 = vrot.lane.b32.xlu1 %v2091_v38, %s5320_s12  ;;  %1886 = vrot.lane.b32.xlu0 %v1834_v53, %s5322_s6  ;;  %v5189_v53 = vld [vmem:[%s7425_s1 + $0xfc] ss:$56 sps:$4 sm:$0xff]  }
 0x1d5   :  { %v2207_v14 = vsel %vm2200_vm4, %v2141_v27, %v2182_v20  ;;  %v2208_v19 = vsel %vm2200_vm4, %v2143_v57, %v2183_v0  ;;  %v5117_v15 = vld [vmem:[#allocation3 + $0x380] ss:$8 sps:$4 sm:$0xff]   ;;  %v5119_v52 = vld [vmem:[#allocation3 + $0x384] ss:$8 sps:$4 sm:$0xff]  }
 0x1d6   :  { %2255 = vst.msk [vmem:[#allocation3 + $0x570] sm:$0xff] %vm5626_vm8, %v2207_v14  ;;  %2256 = vst.msk [vmem:[#allocation3 + $0x578] sm:$0xff] %vm5626_vm8, %v2208_v19  ;;  %v2323_v56 = vpop.permute.xlu1 %2322  ;;  %v1150_v4 = vpop.permute.xlu0 %1149  ;;  %4295 = vmatprep.subr.bf16.mxu1 %v5119_v52  ;;  %v6884_v20 = vld [vmem:[#allocation2 + $0x8] sm:$0xff] }
 0x1d7   :  { %v2324_v1 = vrot.slane %v2323_v56, 4  ;;  %v1189_v62 = vrot.slane %v1150_v4, 4  ;;  %4296 = vmatpush2.bf16.msra.mxu1 %v5117_v15 }
 0x1d8   :  { %1888 = vrot.lane.b32.xlu1 %v1835_v37, %s5322_s6  ;;  %2144 = vrot.lane.b32.xlu0 %v2088_v48, %s5320_s12  ;;  %v1831_v37 = vmul.bf16 %v6514_v29, %v6884_v20 }
 0x1d9   :  { %v1214_v23 = vsel %vm1205_vm1, %v1150_v4, %v1189_v62  ;;  %v5124_v25 = vld [vmem:[#allocation3 + $0x290] ss:$8 sps:$4 sm:$0xff]   ;;  %v5126_v3 = vld [vmem:[#allocation3 + $0x294] ss:$8 sps:$4 sm:$0xff]   ;;  %v6840_v32 = vsel %vm2325_vm5, %v2324_v1, %v2323_v56 }
 0x1da   :  { %1262 = vst.msk [vmem:[#allocation3 + $0x280] sm:$0xff] %vm5626_vm8, %v1214_v23  ;;  %v1152_v7 = vpop.permute.xlu1 %1151  ;;  %v2137_v45 = vpop.permute.xlu0 %2136  ;;  %4230 = vmatprep.subr.bf16.mxu0 %v5126_v3  ;;  %4298 = vmatmul.mubr.bf16.vlgmr.msra.gmra.mxu1 %v5127_v47  ;;  %v2342_v36 = vmul.bf16 %v6840_v32, %v6658_v17  ;;  %v6869_v17 = vld [vmem:[#allocation2] sm:$0xff]  ;;  %v2343_v57 = vmul.bf16 %v6840_v32, %v6673_v18  ;;  %v2552_v1 = vld [vmem:[%s7425_s1 + $0xf8] sm:$0xff]  ;;  %v2559_v62 = vld [vmem:[%s7425_s1 + $0x130] sm:$0xff] }
 0x1db   :  { %v1190_v28 = vrot.slane %v1152_v7, 4  ;;  %v2180_v34 = vrot.slane %v2137_v45, 4  ;;  %4231 = vmatpush2.bf16.msra.mxu0 %v5124_v25  ;;  %4307 = vmatprep.mubr.bf16.mxu1 %v5178_v2  ;;  %v1830_v38 = vmul.bf16 %v6514_v29, %v6869_v17  ;;  %v2340_v48 = vmul.bf16 %v6840_v32, %v6689_v55  ;;  %v5139_v29 = vld [vmem:[%s7425_s1 + $0x10] ss:$56 sps:$4 sm:$0xff]   ;;  %v5172_v3 = vld [vmem:[%s7425_s1 + $0x84] ss:$56 sps:$4 sm:$0xff]  }
 0x1dc   :  { %2146 = vrot.lane.b32.xlu1 %v2089_v12, %s5320_s12  ;;  %1882 = vrot.lane.b32.xlu0 %v1832_v43, %s5322_s6  ;;  %v2341_v43 = vmul.bf16 %v6840_v32, %v6703_v58  ;;  %v2338_v25 = vmul.bf16 %v6840_v32, %v6779_v40 }
 0x1dd   :  { %v1215_v44 = vsel %vm1205_vm1, %v1152_v7, %v1190_v28  ;;  %v2205_v46 = vsel %vm2200_vm4, %v2137_v45, %v2180_v34  ;;  %v5130_v60 = vld [vmem:[#allocation3 + $0x570] ss:$8 sps:$4 sm:$0xff]   ;;  %v5132_v31 = vld [vmem:[#allocation3 + $0x574] ss:$8 sps:$4 sm:$0xff]   ;;  %v4619_v28 = vcombine.low %v2552_v1, %v2559_v62  ;;  %v2333_v1 = vmul.bf16 %v6840_v32, %v6813_v26 }
 0x1de   :  { %1263 = vst.msk [vmem:[#allocation3 + $0x288] sm:$0xff] %vm5626_vm8, %v1215_v44  ;;  %2253 = vst.msk [vmem:[#allocation3 + $0x560] sm:$0xff] %vm5626_vm8, %v2205_v46  ;;  %v2139_v41 = vpop.permute.xlu1 %2138  ;;  %v1675_v30 = vpop.permute.xlu0 %1674  ;;  %4391 = vmatprep.subr.bf16.mxu1 %v5132_v31  ;;  %v5244_v44 = vld [vmem:[%s7425_s1 + $0x2c] ss:$56 sps:$4 sm:$0xff]   ;;  %v2330_v62 = vmul.bf16 %v6840_v32, %v6827_v5 }
 0x1df   :  { %v2181_v33 = vrot.slane %v2139_v41, 4  ;;  %v1700_v59 = vrot.slane %v1675_v30, 4  ;;  %4392 = vmatpush1.bf16.msra.mxu1 %v5130_v60 }
 0x1e0   :  { %1884 = vrot.lane.b32.xlu1 %v1833_v49, %s5322_s6  ;;  %2404 = vrot.lane.b32.xlu0 %v2342_v36, %s5323_s14  ;;  %v2339_v49 = vmul.bf16 %v6840_v32, %v6729_v24  ;;  %v2336_v36 = vmul.bf16 %v6840_v32, %v6809_v16 }
 0x1e1   :  { %v2206_v42 = vsel %vm2200_vm4, %v2139_v41, %v2181_v33  ;;  %v1725_v54 = vsel %vm1702_vm3, %v1675_v30, %v1700_v59 }
 0x1e2   :  { %2254 = vst.msk [vmem:[#allocation3 + $0x568] sm:$0xff] %vm5626_vm8, %v2206_v42  ;;  %1773 = vst.msk [vmem:[#allocation3 + $0x470] sm:$0xff] %vm5626_vm8, %v1725_v54  ;;  %v1677_v63 = vpop.permute.xlu1 %1676  ;;  %v2133_v27 = vpop.permute.xlu0 %2132  ;;  %4308 = vmatmul.mubr.bf16.gmra.mxu1 %v4605_v61  ;;  %v2337_v61 = vmul.bf16 %v6840_v32, %v6825_v13 }
 0x1e3   :  { %v1701_v10 = vrot.slane %v1677_v63, 4  ;;  %v2178_v22 = vrot.slane %v2133_v27, 4  ;;  %4317 = vmatprep.mubr.bf16.mxu1 %v5189_v53 }
 0x1e4   :  { %2406 = vrot.lane.b32.xlu1 %v2343_v57, %s5323_s14  ;;  %1878 = vrot.lane.b32.xlu0 %v1830_v38, %s5322_s6 }
 0x1e5   :  { %v1726_v0 = vsel %vm1702_vm3, %v1677_v63, %v1701_v10  ;;  %v2203_v14 = vsel %vm2200_vm4, %v2133_v27, %v2178_v22  ;;  %v5136_v18 = vld [vmem:[#allocation3 + $0x280] ss:$8 sps:$4 sm:$0xff]   ;;  %v5138_v19 = vld [vmem:[#allocation3 + $0x284] ss:$8 sps:$4 sm:$0xff]   ;;  %v2334_v63 = vmul.bf16 %v6840_v32, %v6767_v6 }
 0x1e6   :  { %1774 = vst.msk [vmem:[#allocation3 + $0x478] sm:$0xff] %vm5626_vm8, %v1726_v0  ;;  %2251 = vst.msk [vmem:[#allocation3 + $0x550] sm:$0xff] %vm5626_vm8, %v2203_v14  ;;  %v2135_v56 = vpop.permute.xlu1 %2134  ;;  %v1671_v4 = vpop.permute.xlu0 %1670  ;;  %4232 = vmatprep.subr.bf16.mxu0 %v5138_v19  ;;  %v5183_v27 = vld [vmem:[%s7425_s1 + $0xf4] ss:$56 sps:$4 sm:$0xff]   ;;  %v2335_v14 = vmul.bf16 %v6840_v32, %v6783_v21 }
 0x1e7   :  { %v2179_v15 = vrot.slane %v2135_v56, 4  ;;  %v1698_v52 = vrot.slane %v1671_v4, 4  ;;  %4233 = vmatpush2.bf16.msra.mxu0 %v5136_v18  ;;  %v2332_v18 = vmul.bf16 %v6840_v32, %v6797_v8 }
 0x1e8   :  { %1880 = vrot.lane.b32.xlu1 %v1831_v37, %s5322_s6  ;;  %2400 = vrot.lane.b32.xlu0 %v2340_v48, %s5323_s14 }
 0x1e9   :  { %v2204_v55 = vsel %vm2200_vm4, %v2135_v56, %v2179_v15  ;;  %v1723_v23 = vsel %vm1702_vm3, %v1671_v4, %v1698_v52  ;;  %v5142_v47 = vld [vmem:[#allocation3 + $0x560] ss:$8 sps:$4 sm:$0xff]   ;;  %v5144_v7 = vld [vmem:[#allocation3 + $0x564] ss:$8 sps:$4 sm:$0xff]  }
 0x1ea   :  { %2252 = vst.msk [vmem:[#allocation3 + $0x558] sm:$0xff] %vm5626_vm8, %v2204_v55  ;;  %1771 = vst.msk [vmem:[#allocation3 + $0x460] sm:$0xff] %vm5626_vm8, %v1723_v23  ;;  %v1673_v45 = vpop.permute.xlu1 %1672  ;;  %v2129_v12 = vpop.permute.xlu0 %2128  ;;  %4393 = vmatprep.subr.bf16.mxu1 %v5144_v7  ;;  %4235 = vmatmul.mubr.bf16.vlgmr.msra.gmra.mxu0 %v5139_v29  ;;  %v5188_v4 = vld [vmem:[%s7425_s1 + $0xf0] ss:$56 sps:$4 sm:$0xff]   ;;  %v5253_v29 = vld [vmem:[%s7425_s1 + $0x24] ss:$56 sps:$4 sm:$0xff]  }
 0x1eb   :  { %v1699_v34 = vrot.slane %v1673_v45, 4  ;;  %v2176_v2 = vrot.slane %v2129_v12, 4  ;;  %4394 = vmatpush1.bf16.msra.mxu1 %v5142_v47  ;;  %4244 = vmatprep.mubr.bf16.mxu0 %v5172_v3 }
 0x1ec   :  { %2402 = vrot.lane.b32.xlu1 %v2341_v43, %s5323_s14  ;;  %2396 = vrot.lane.b32.xlu0 %v2338_v25, %s5323_s14  ;;  %v2331_v43 = vmul.bf16 %v6840_v32, %v6847_v35  ;;  %v2328_v25 = vmul.bf16 %v6840_v32, %v6869_v17 }
 0x1ed   :  { %v1724_v58 = vsel %vm1702_vm3, %v1673_v45, %v1699_v34  ;;  %v2201_v40 = vsel %vm2200_vm4, %v2129_v12, %v2176_v2  ;;  %v5145_v46 = vld [vmem:[#allocation3 + $0x470] ss:$8 sps:$4 sm:$0xff]   ;;  %v5147_v50 = vld [vmem:[#allocation3 + $0x474] ss:$8 sps:$4 sm:$0xff]   ;;  %4318 = vmatmul.mubr.bf16.gmra.mxu1 %v4619_v28 }
 0x1ee   :  { %1772 = vst.msk [vmem:[#allocation3 + $0x468] sm:$0xff] %vm5626_vm8, %v1724_v58  ;;  %2249 = vst.msk [vmem:[#allocation3 + $0x540] sm:$0xff] %vm5626_vm8, %v2201_v40  ;;  %v2131_v41 = vpop.permute.xlu1 %2130  ;;  %v1667_v30 = vpop.permute.xlu0 %1666  ;;  %4328 = vmatprep.subr.bf16.mxu0 %v5147_v50  ;;  %4423 = vmatprep.mubr.bf16.mxu1 %v5244_v44  ;;  %v2295_v34 = vld [vmem:[#allocation2 + $0xb0] sm:$0xff] }
 0x1ef   :  { %v2177_v60 = vrot.slane %v2131_v41, 4  ;;  %v1696_v31 = vrot.slane %v1667_v30, 4  ;;  %4329 = vmatpush1.bf16.msra.mxu0 %v5145_v46  ;;  %v2329_v46 = vmul.bf16 %v6840_v32, %v6884_v20  ;;  %v2350_v50 = vmul.bf16 %v6840_v32, %v2295_v34 }
 0x1f0   :  { %2398 = vrot.lane.b32.xlu1 %v2339_v49, %s5323_s14  ;;  %2392 = vrot.lane.b32.xlu0 %v2336_v36, %s5323_s14  ;;  %v2296_v49 = vld [vmem:[#allocation2 + $0xb8] sm:$0xff]  ;;  %v2293_v36 = vld [vmem:[#allocation2 + $0xa0] sm:$0xff] }
 0x1f1   :  { %v2202_v33 = vsel %vm2200_vm4, %v2131_v41, %v2177_v60  ;;  %v1721_v24 = vsel %vm1702_vm3, %v1667_v30, %v1696_v31  ;;  %v5148_v16 = vld [vmem:[#allocation3 + $0x550] ss:$8 sps:$4 sm:$0xff]   ;;  %v5150_v59 = vld [vmem:[#allocation3 + $0x554] ss:$8 sps:$4 sm:$0xff]  }
 0x1f2   :  { %2250 = vst.msk [vmem:[#allocation3 + $0x548] sm:$0xff] %vm5626_vm8, %v2202_v33  ;;  %1769 = vst.msk [vmem:[#allocation3 + $0x450] sm:$0xff] %vm5626_vm8, %v1721_v24  ;;  %v1669_v42 = vpop.permute.xlu1 %1668  ;;  %v1923_v54 = vpop.permute.xlu0 %1922  ;;  %4395 = vmatprep.subr.bf16.mxu1 %v5150_v59  ;;  %4245 = vmatmul.mubr.bf16.gmra.mxu0 %v5177_v39  ;;  %v2348_v59 = vmul.bf16 %v6840_v32, %v2293_v36 }
 0x1f3   :  { %v1697_v57 = vrot.slane %v1669_v42, 4  ;;  %v1948_v38 = vrot.slane %v1923_v54, 4  ;;  %4396 = vmatpush1.bf16.msra.mxu1 %v5148_v16  ;;  %4254 = vmatprep.mubr.bf16.mxu0 %v5183_v27  ;;  %v2351_v16 = vmul.bf16 %v6840_v32, %v2296_v49 }
 0x1f4   :  { %2394 = vrot.lane.b32.xlu1 %v2337_v61, %s5323_s14  ;;  %2388 = vrot.lane.b32.xlu0 %v2334_v63, %s5323_s14  ;;  %v2294_v61 = vld [vmem:[#allocation2 + $0xa8] sm:$0xff] }
 0x1f5   :  { %v1722_v53 = vsel %vm1702_vm3, %v1669_v42, %v1697_v57  ;;  %v1973_v10 = vsel %vm1950_vm6, %v1923_v54, %v1948_v38  ;;  %v5151_v13 = vld [vmem:[#allocation3 + $0x460] ss:$8 sps:$4 sm:$0xff]   ;;  %v5153_v22 = vld [vmem:[#allocation3 + $0x464] ss:$8 sps:$4 sm:$0xff]  }
 0x1f6   :  { %1770 = vst.msk [vmem:[#allocation3 + $0x458] sm:$0xff] %vm5626_vm8, %v1722_v53  ;;  %2021 = vst.msk [vmem:[#allocation3 + $0x530] sm:$0xff] %vm5626_vm8, %v1973_v10  ;;  %v1925_v6 = vpop.permute.xlu1 %1924  ;;  %v1663_v0 = vpop.permute.xlu0 %1662  ;;  %4330 = vmatprep.subr.bf16.mxu0 %v5153_v22  ;;  %v2346_v22 = vmul.bf16 %v6840_v32, %v6669_v9 }
 0x1f7   :  { %v1949_v19 = vrot.slane %v1925_v6, 4  ;;  %v1694_v56 = vrot.slane %v1663_v0, 4  ;;  %4331 = vmatpush1.bf16.msra.mxu0 %v5151_v13  ;;  %v2349_v13 = vmul.bf16 %v6840_v32, %v2294_v61 }
 0x1f8   :  { %2390 = vrot.lane.b32.xlu1 %v2335_v14, %s5323_s14  ;;  %2384 = vrot.lane.b32.xlu0 %v2332_v18, %s5323_s14  ;;  %v2289_v14 = vld [vmem:[#allocation2 + $0x80] sm:$0xff] }
 0x1f9   :  { %v1974_v37 = vsel %vm1950_vm6, %v1925_v6, %v1949_v19  ;;  %v1719_v48 = vsel %vm1702_vm3, %v1663_v0, %v1694_v56  ;;  %v5154_v21 = vld [vmem:[#allocation3 + $0x540] ss:$8 sps:$4 sm:$0xff]   ;;  %v5156_v15 = vld [vmem:[#allocation3 + $0x544] ss:$8 sps:$4 sm:$0xff]  }
 0x1fa   :  { %2022 = vst.msk [vmem:[#allocation3 + $0x538] sm:$0xff] %vm5626_vm8, %v1974_v37  ;;  %1767 = vst.msk [vmem:[#allocation3 + $0x440] sm:$0xff] %vm5626_vm8, %v1719_v48  ;;  %v1665_v8 = vpop.permute.xlu1 %1664  ;;  %v1919_v52 = vpop.permute.xlu0 %1918  ;;  %4397 = vmatprep.subr.bf16.mxu1 %v5156_v15  ;;  %4255 = vmatmul.mubr.bf16.gmra.mxu0 %v5188_v4  ;;  %v2347_v48 = vmul.bf16 %v6840_v32, %v6685_v51 }
 0x1fb   :  { %v1695_v55 = vrot.slane %v1665_v8, 4  ;;  %v1946_v23 = vrot.slane %v1919_v52, 4  ;;  %4398 = vmatpush1.bf16.msra.mxu1 %v5154_v21  ;;  %4360 = vmatprep.mubr.bf16.mxu0 %v5253_v29  ;;  %v2344_v21 = vmul.bf16 %v6840_v32, %v2289_v14 }
 0x1fc   :  { %2386 = vrot.lane.b32.xlu1 %v2333_v1, %s5323_s14  ;;  %2380 = vrot.lane.b32.xlu0 %v2330_v62, %s5323_s14 }
 0x1fd   :  { %v1720_v47 = vsel %vm1702_vm3, %v1665_v8, %v1695_v55  ;;  %v1971_v7 = vsel %vm1950_vm6, %v1919_v52, %v1946_v23  ;;  %v5157_v26 = vld [vmem:[#allocation3 + $0x450] ss:$8 sps:$4 sm:$0xff]   ;;  %v5159_v45 = vld [vmem:[#allocation3 + $0x454] ss:$8 sps:$4 sm:$0xff]   ;;  %v2290_v52 = vld [vmem:[#allocation2 + $0x88] sm:$0xff] }
 0x1fe   :  { %1768 = vst.msk [vmem:[#allocation3 + $0x448] sm:$0xff] %vm5626_vm8, %v1720_v47  ;;  %2019 = vst.msk [vmem:[#allocation3 + $0x520] sm:$0xff] %vm5626_vm8, %v1971_v7  ;;  %v1921_v5 = vpop.permute.xlu1 %1920  ;;  %v1659_v12 = vpop.permute.xlu0 %1658  ;;  %4332 = vmatprep.subr.bf16.mxu0 %v5159_v45  ;;  %v2345_v47 = vmul.bf16 %v6840_v32, %v2290_v52 }
 0x1ff   :  { %v1947_v3 = vrot.slane %v1921_v5, 4  ;;  %v1692_v28 = vrot.slane %v1659_v12, 4  ;;  %4333 = vmatpush1.bf16.msra.mxu0 %v5157_v26 }
 0x200   :  { %2382 = vrot.lane.b32.xlu1 %v2331_v43, %s5323_s14  ;;  %2376 = vrot.lane.b32.xlu0 %v2328_v25, %s5323_s14 }
 0x201   :  { %v1972_v2 = vsel %vm1950_vm6, %v1921_v5, %v1947_v3  ;;  %v1717_v44 = vsel %vm1702_vm3, %v1659_v12, %v1692_v28  ;;  %v5160_v58 = vld [vmem:[#allocation3 + $0x530] ss:$8 sps:$4 sm:$0xff]   ;;  %v5162_v40 = vld [vmem:[#allocation3 + $0x534] ss:$8 sps:$4 sm:$0xff]  }
 0x202   :  { %2020 = vst.msk [vmem:[#allocation3 + $0x528] sm:$0xff] %vm5626_vm8, %v1972_v2  ;;  %1765 = vst.msk [vmem:[#allocation3 + $0x430] sm:$0xff] %vm5626_vm8, %v1717_v44  ;;  %v1661_v35 = vpop.permute.xlu1 %1660  ;;  %v1915_v17 = vpop.permute.xlu0 %1914  ;;  %4399 = vmatprep.subr.bf16.mxu1 %v5162_v40 }
 0x203   :  { %v1693_v41 = vrot.slane %v1661_v35, 4  ;;  %v1944_v30 = vrot.slane %v1915_v17, 4  ;;  %4400 = vmatpush1.bf16.msra.mxu1 %v5160_v58 }
 0x204   :  { %2378 = vrot.lane.b32.xlu1 %v2329_v46, %s5323_s14  ;;  %2420 = vrot.lane.b32.xlu0 %v2350_v50, %s5323_s14 }
 0x205   :  { %v1718_v60 = vsel %vm1702_vm3, %v1661_v35, %v1693_v41  ;;  %v1969_v31 = vsel %vm1950_vm6, %v1915_v17, %v1944_v30  ;;  %v5163_v39 = vld [vmem:[#allocation3 + $0x440] ss:$8 sps:$4 sm:$0xff]   ;;  %v5165_v33 = vld [vmem:[#allocation3 + $0x444] ss:$8 sps:$4 sm:$0xff]  }
 0x206   :  { %1766 = vst.msk [vmem:[#allocation3 + $0x438] sm:$0xff] %vm5626_vm8, %v1718_v60  ;;  %2017 = vst.msk [vmem:[#allocation3 + $0x510] sm:$0xff] %vm5626_vm8, %v1969_v31  ;;  %v1917_v20 = vpop.permute.xlu1 %1916  ;;  %v1655_v24 = vpop.permute.xlu0 %1654  ;;  %4334 = vmatprep.subr.bf16.mxu0 %v5165_v33 }
 0x207   :  { %v1945_v42 = vrot.slane %v1917_v20, 4  ;;  %v1690_v54 = vrot.slane %v1655_v24, 4  ;;  %4335 = vmatpush1.bf16.msra.mxu0 %v5163_v39 }
 0x208   :  { %2422 = vrot.lane.b32.xlu1 %v2351_v16, %s5323_s14  ;;  %2416 = vrot.lane.b32.xlu0 %v2348_v59, %s5323_s14 }
 0x209   :  { %v1970_v63 = vsel %vm1950_vm6, %v1917_v20, %v1945_v42  ;;  %v1715_v27 = vsel %vm1702_vm3, %v1655_v24, %v1690_v54  ;;  %v5166_v57 = vld [vmem:[#allocation3 + $0x520] ss:$8 sps:$4 sm:$0xff]   ;;  %v5168_v38 = vld [vmem:[#allocation3 + $0x524] ss:$8 sps:$4 sm:$0xff]  }
 0x20a   :  { %2018 = vst.msk [vmem:[#allocation3 + $0x518] sm:$0xff] %vm5626_vm8, %v1970_v63  ;;  %1763 = vst.msk [vmem:[#allocation3 + $0x420] sm:$0xff] %vm5626_vm8, %v1715_v27  ;;  %v1657_v53 = vpop.permute.xlu1 %1656  ;;  %v1911_v10 = vpop.permute.xlu0 %1910  ;;  %4401 = vmatprep.subr.bf16.mxu1 %v5168_v38 }
 0x20b   :  { %v1691_v6 = vrot.slane %v1657_v53, 4  ;;  %v1942_v0 = vrot.slane %v1911_v10, 4  ;;  %4402 = vmatpush1.bf16.msra.mxu1 %v5166_v57 }
 0x20c   :  { %2418 = vrot.lane.b32.xlu1 %v2349_v13, %s5323_s14  ;;  %2412 = vrot.lane.b32.xlu0 %v2346_v22, %s5323_s14 }
 0x20d   :  { %v1716_v18 = vsel %vm1702_vm3, %v1657_v53, %v1691_v6  ;;  %v1967_v19 = vsel %vm1950_vm6, %v1911_v10, %v1942_v0  ;;  %v5169_v56 = vld [vmem:[#allocation3 + $0x430] ss:$8 sps:$4 sm:$0xff]   ;;  %v5171_v4 = vld [vmem:[#allocation3 + $0x434] ss:$8 sps:$4 sm:$0xff]  }
 0x20e   :  { %1764 = vst.msk [vmem:[#allocation3 + $0x428] sm:$0xff] %vm5626_vm8, %v1716_v18  ;;  %2015 = vst.msk [vmem:[#allocation3 + $0x500] sm:$0xff] %vm5626_vm8, %v1967_v19  ;;  %v1913_v9 = vpop.permute.xlu1 %1912  ;;  %v1651_v37 = vpop.permute.xlu0 %1650  ;;  %4336 = vmatprep.subr.bf16.mxu0 %v5171_v4 }
 0x20f   :  { %v1943_v15 = vrot.slane %v1913_v9, 4  ;;  %v1688_v8 = vrot.slane %v1651_v37, 4  ;;  %4337 = vmatpush1.bf16.msra.mxu0 %v5169_v56 }
 0x210   :  { %2414 = vrot.lane.b32.xlu1 %v2347_v48, %s5323_s14  ;;  %2408 = vrot.lane.b32.xlu0 %v2344_v21, %s5323_s14 }
 0x211   :  { %v1968_v1 = vsel %vm1950_vm6, %v1913_v9, %v1943_v15  ;;  %v1713_v62 = vsel %vm1702_vm3, %v1651_v37, %v1688_v8  ;;  %v5174_v29 = vld [vmem:[#allocation3 + $0x510] ss:$8 sps:$4 sm:$0xff]   ;;  %v5176_v55 = vld [vmem:[#allocation3 + $0x514] ss:$8 sps:$4 sm:$0xff]  }
 0x212   :  { %2016 = vst.msk [vmem:[#allocation3 + $0x508] sm:$0xff] %vm5626_vm8, %v1968_v1  ;;  %1761 = vst.msk [vmem:[#allocation3 + $0x410] sm:$0xff] %vm5626_vm8, %v1713_v62  ;;  %v1653_v51 = vpop.permute.xlu1 %1652  ;;  %v2173_v23 = vpop.permute.xlu0 %2172  ;;  %4403 = vmatprep.subr.bf16.mxu1 %v5176_v55 }
 0x213   :  { %v1689_v7 = vrot.slane %v1653_v51, 4  ;;  %v2198_v26 = vrot.slane %v2173_v23, 4  ;;  %4404 = vmatpush1.bf16.msra.mxu1 %v5174_v29 }
 0x214   :  { %2410 = vrot.lane.b32.xlu1 %v2345_v47, %s5323_s14 }
 0x215   :  { %v1714_v45 = vsel %vm1702_vm3, %v1653_v51, %v1689_v7  ;;  %v2223_v5 = vsel %vm2200_vm4, %v2173_v23, %v2198_v26  ;;  %v5180_v12 = vld [vmem:[#allocation3 + $0x420] ss:$8 sps:$4 sm:$0xff]   ;;  %v5182_v43 = vld [vmem:[#allocation3 + $0x424] ss:$8 sps:$4 sm:$0xff]  }
 0x216   :  { %1762 = vst.msk [vmem:[#allocation3 + $0x418] sm:$0xff] %vm5626_vm8, %v1714_v45  ;;  %2271 = vst.msk [vmem:[#allocation3 + $0x5f0] sm:$0xff] %vm5626_vm8, %v2223_v5  ;;  %v2175_v25 = vpop.permute.xlu1 %2174  ;;  %v1647_v32 = vpop.permute.xlu0 %1646  ;;  %4338 = vmatprep.subr.bf16.mxu0 %v5182_v43 }
 0x217   :  { %v2199_v3 = vrot.slane %v2175_v25, 4  ;;  %v1686_v28 = vrot.slane %v1647_v32, 4  ;;  %4339 = vmatpush1.bf16.msra.mxu0 %v5180_v12 }
 0x219   :  { %v2224_v34 = vsel %vm2200_vm4, %v2175_v25, %v2199_v3  ;;  %v1711_v2 = vsel %vm1702_vm3, %v1647_v32, %v1686_v28  ;;  %v5185_v44 = vld [vmem:[#allocation3 + $0x500] ss:$8 sps:$4 sm:$0xff]   ;;  %v5187_v58 = vld [vmem:[#allocation3 + $0x504] ss:$8 sps:$4 sm:$0xff]  }
 0x21a   :  { %2272 = vst.msk [vmem:[#allocation3 + $0x5f8] sm:$0xff] %vm5626_vm8, %v2224_v34  ;;  %1759 = vst.msk [vmem:[#allocation3 + $0x400] sm:$0xff] %vm5626_vm8, %v1711_v2  ;;  %v1649_v40 = vpop.permute.xlu1 %1648  ;;  %v2169_v35 = vpop.permute.xlu0 %2168  ;;  %4405 = vmatprep.subr.bf16.mxu1 %v5187_v58 }
 0x21b   :  { %v1687_v17 = vrot.slane %v1649_v40, 4  ;;  %v2196_v46 = vrot.slane %v2169_v35, 4  ;;  %4406 = vmatpush1.bf16.msra.mxu1 %v5185_v44 }
 0x21d   :  { %v1712_v50 = vsel %vm1702_vm3, %v1649_v40, %v1687_v17  ;;  %v2221_v41 = vsel %vm2200_vm4, %v2169_v35, %v2196_v46  ;;  %v5191_v30 = vld [vmem:[#allocation3 + $0x410] ss:$8 sps:$4 sm:$0xff]   ;;  %v5193_v49 = vld [vmem:[#allocation3 + $0x414] ss:$8 sps:$4 sm:$0xff]  }
 0x21e   :  { %1760 = vst.msk [vmem:[#allocation3 + $0x408] sm:$0xff] %vm5626_vm8, %v1712_v50  ;;  %2269 = vst.msk [vmem:[#allocation3 + $0x5e0] sm:$0xff] %vm5626_vm8, %v2221_v41  ;;  %v2171_v36 = vpop.permute.xlu1 %2170  ;;  %v1907_v60 = vpop.permute.xlu0 %1906  ;;  %4340 = vmatprep.subr.bf16.mxu0 %v5193_v49 }
 0x21f   :  { %v2197_v31 = vrot.slane %v2171_v36, 4  ;;  %v1940_v39 = vrot.slane %v1907_v60, 4  ;;  %4341 = vmatpush1.bf16.msra.mxu0 %v5191_v30 }
 0x221   :  { %v2222_v33 = vsel %vm2200_vm4, %v2171_v36, %v2197_v31  ;;  %v1965_v20 = vsel %vm1950_vm6, %v1907_v60, %v1940_v39  ;;  %v5194_v24 = vld [vmem:[#allocation3 + $0x5f0] ss:$8 sps:$4 sm:$0xff]   ;;  %v5196_v16 = vld [vmem:[#allocation3 + $0x5f4] ss:$8 sps:$4 sm:$0xff]  }
 0x222   :  { %2270 = vst.msk [vmem:[#allocation3 + $0x5e8] sm:$0xff] %vm5626_vm8, %v2222_v33  ;;  %2013 = vst.msk [vmem:[#allocation3 + $0x4f0] sm:$0xff] %vm5626_vm8, %v1965_v20  ;;  %v1909_v59 = vpop.permute.xlu1 %1908  ;;  %v2165_v42 = vpop.permute.xlu0 %2164  ;;  %4407 = vmatprep.subr.bf16.mxu1 %v5196_v16 }
 0x223   :  { %v1941_v54 = vrot.slane %v1909_v59, 4  ;;  %v2194_v61 = vrot.slane %v2165_v42, 4  ;;  %4408 = vmatpush2.bf16.msra.mxu1 %v5194_v24 }
 0x225   :  { %v1966_v63 = vsel %vm1950_vm6, %v1909_v59, %v1941_v54  ;;  %v2219_v27 = vsel %vm2200_vm4, %v2165_v42, %v2194_v61  ;;  %v5197_v57 = vld [vmem:[#allocation3 + $0x400] ss:$8 sps:$4 sm:$0xff]   ;;  %v5199_v38 = vld [vmem:[#allocation3 + $0x404] ss:$8 sps:$4 sm:$0xff]  }
 0x226   :  { %2014 = vst.msk [vmem:[#allocation3 + $0x4f8] sm:$0xff] %vm5626_vm8, %v1966_v63  ;;  %2267 = vst.msk [vmem:[#allocation3 + $0x5d0] sm:$0xff] %vm5626_vm8, %v2219_v27  ;;  %v2167_v53 = vpop.permute.xlu1 %2166  ;;  %v1903_v10 = vpop.permute.xlu0 %1902  ;;  %4342 = vmatprep.subr.bf16.mxu0 %v5199_v38 }
 0x227   :  { %v2195_v13 = vrot.slane %v2167_v53, 4  ;;  %v1938_v22 = vrot.slane %v1903_v10, 4  ;;  %4343 = vmatpush1.bf16.msra.mxu0 %v5197_v57 }
 0x229   :  { %v2220_v6 = vsel %vm2200_vm4, %v2167_v53, %v2195_v13  ;;  %v1963_v0 = vsel %vm1950_vm6, %v1903_v10, %v1938_v22  ;;  %v5200_v14 = vld [vmem:[#allocation3 + $0x5e0] ss:$8 sps:$4 sm:$0xff]   ;;  %v5202_v18 = vld [vmem:[#allocation3 + $0x5e4] ss:$8 sps:$4 sm:$0xff]  }
 0x22a   :  { %2268 = vst.msk [vmem:[#allocation3 + $0x5d8] sm:$0xff] %vm5626_vm8, %v2220_v6  ;;  %2011 = vst.msk [vmem:[#allocation3 + $0x4e0] sm:$0xff] %vm5626_vm8, %v1963_v0  ;;  %v1905_v19 = vpop.permute.xlu1 %1904  ;;  %v2161_v56 = vpop.permute.xlu0 %2160  ;;  %4409 = vmatprep.subr.bf16.mxu1 %v5202_v18 }
 0x22b   :  { %v1939_v4 = vrot.slane %v1905_v19, 4  ;;  %v2192_v9 = vrot.slane %v2161_v56, 4  ;;  %4410 = vmatpush2.bf16.msra.mxu1 %v5200_v14 }
 0x22d   :  { %v1964_v37 = vsel %vm1950_vm6, %v1905_v19, %v1939_v4  ;;  %v2217_v48 = vsel %vm2200_vm4, %v2161_v56, %v2192_v9  ;;  %v5203_v21 = vld [vmem:[#allocation3 + $0x4f0] ss:$8 sps:$4 sm:$0xff]   ;;  %v5205_v15 = vld [vmem:[#allocation3 + $0x4f4] ss:$8 sps:$4 sm:$0xff]  }
 0x22e   :  { %2012 = vst.msk [vmem:[#allocation3 + $0x4e8] sm:$0xff] %vm5626_vm8, %v1964_v37  ;;  %2265 = vst.msk [vmem:[#allocation3 + $0x5c0] sm:$0xff] %vm5626_vm8, %v2217_v48  ;;  %v2163_v8 = vpop.permute.xlu1 %2162  ;;  %v1899_v52 = vpop.permute.xlu0 %1898  ;;  %4344 = vmatprep.subr.bf16.mxu0 %v5205_v15 }
 0x22f   :  { %v2193_v1 = vrot.slane %v2163_v8, 4  ;;  %v1936_v62 = vrot.slane %v1899_v52, 4  ;;  %4345 = vmatpush2.bf16.msra.mxu0 %v5203_v21 }
 0x231   :  { %v2218_v29 = vsel %vm2200_vm4, %v2163_v8, %v2193_v1  ;;  %v1961_v55 = vsel %vm1950_vm6, %v1899_v52, %v1936_v62  ;;  %v5206_v51 = vld [vmem:[#allocation3 + $0x5d0] ss:$8 sps:$4 sm:$0xff]   ;;  %v5208_v23 = vld [vmem:[#allocation3 + $0x5d4] ss:$8 sps:$4 sm:$0xff]  }
 0x232   :  { %2266 = vst.msk [vmem:[#allocation3 + $0x5c8] sm:$0xff] %vm5626_vm8, %v2218_v29  ;;  %2009 = vst.msk [vmem:[#allocation3 + $0x4d0] sm:$0xff] %vm5626_vm8, %v1961_v55  ;;  %v1901_v47 = vpop.permute.xlu1 %1900  ;;  %v2157_v7 = vpop.permute.xlu0 %2156  ;;  %4411 = vmatprep.subr.bf16.mxu1 %v5208_v23 }
 0x233   :  { %v1937_v26 = vrot.slane %v1901_v47, 4  ;;  %v2190_v45 = vrot.slane %v2157_v7, 4  ;;  %4412 = vmatpush2.bf16.msra.mxu1 %v5206_v51 }
 0x235   :  { %v1962_v5 = vsel %vm1950_vm6, %v1901_v47, %v1937_v26  ;;  %v2215_v12 = vsel %vm2200_vm4, %v2157_v7, %v2190_v45  ;;  %v5209_v43 = vld [vmem:[#allocation3 + $0x4e0] ss:$8 sps:$4 sm:$0xff]   ;;  %v5211_v25 = vld [vmem:[#allocation3 + $0x4e4] ss:$8 sps:$4 sm:$0xff]  }
 0x236   :  { %2010 = vst.msk [vmem:[#allocation3 + $0x4d8] sm:$0xff] %vm5626_vm8, %v1962_v5  ;;  %2263 = vst.msk [vmem:[#allocation3 + $0x5b0] sm:$0xff] %vm5626_vm8, %v2215_v12  ;;  %v2159_v32 = vpop.permute.xlu1 %2158  ;;  %v1895_v3 = vpop.permute.xlu0 %1894  ;;  %4346 = vmatprep.subr.bf16.mxu0 %v5211_v25 }
 0x237   :  { %v2191_v28 = vrot.slane %v2159_v32, 4  ;;  %v1934_v34 = vrot.slane %v1895_v3, 4  ;;  %4347 = vmatpush2.bf16.msra.mxu0 %v5209_v43 }
 0x239   :  { %v2216_v2 = vsel %vm2200_vm4, %v2159_v32, %v2191_v28  ;;  %v1959_v44 = vsel %vm1950_vm6, %v1895_v3, %v1934_v34  ;;  %v5212_v58 = vld [vmem:[#allocation3 + $0x5c0] ss:$8 sps:$4 sm:$0xff]   ;;  %v5214_v40 = vld [vmem:[#allocation3 + $0x5c4] ss:$8 sps:$4 sm:$0xff]  }
 0x23a   :  { %2264 = vst.msk [vmem:[#allocation3 + $0x5b8] sm:$0xff] %vm5626_vm8, %v2216_v2  ;;  %2007 = vst.msk [vmem:[#allocation3 + $0x4c0] sm:$0xff] %vm5626_vm8, %v1959_v44  ;;  %v1897_v35 = vpop.permute.xlu1 %1896  ;;  %v2153_v17 = vpop.permute.xlu0 %2152  ;;  %4413 = vmatprep.subr.bf16.mxu1 %v5214_v40 }
 0x23b   :  { %v1935_v46 = vrot.slane %v1897_v35, 4  ;;  %v2188_v50 = vrot.slane %v2153_v17, 4  ;;  %4414 = vmatpush2.bf16.msra.mxu1 %v5212_v58 }
 0x23d   :  { %v1960_v41 = vsel %vm1950_vm6, %v1897_v35, %v1935_v46  ;;  %v2213_v30 = vsel %vm2200_vm4, %v2153_v17, %v2188_v50  ;;  %v5215_v49 = vld [vmem:[#allocation3 + $0x4d0] ss:$8 sps:$4 sm:$0xff]   ;;  %v5217_v36 = vld [vmem:[#allocation3 + $0x4d4] ss:$8 sps:$4 sm:$0xff]  }
 0x23e   :  { %2008 = vst.msk [vmem:[#allocation3 + $0x4c8] sm:$0xff] %vm5626_vm8, %v1960_v41  ;;  %2261 = vst.msk [vmem:[#allocation3 + $0x5a0] sm:$0xff] %vm5626_vm8, %v2213_v30  ;;  %v2155_v60 = vpop.permute.xlu1 %2154  ;;  %v1891_v31 = vpop.permute.xlu0 %1890  ;;  %4348 = vmatprep.subr.bf16.mxu0 %v5217_v36  ;;  %v5242_v30 = vld [vmem:[%s7425_s1 + $0x28] ss:$56 sps:$4 sm:$0xff]  }
 0x23f   :  { %v2189_v39 = vrot.slane %v2155_v60, 4  ;;  %v1932_v33 = vrot.slane %v1891_v31, 4  ;;  %4349 = vmatpush2.bf16.msra.mxu0 %v5215_v49  ;;  %v5266_v49 = vld [vmem:[%s7425_s1 + $0x9c] ss:$56 sps:$4 sm:$0xff]  }
 0x241   :  { %v2214_v20 = vsel %vm2200_vm4, %v2155_v60, %v2189_v39  ;;  %v1957_v24 = vsel %vm1950_vm6, %v1891_v31, %v1932_v33  ;;  %v5218_v16 = vld [vmem:[#allocation3 + $0x5b0] ss:$8 sps:$4 sm:$0xff]   ;;  %v5220_v59 = vld [vmem:[#allocation3 + $0x5b4] ss:$8 sps:$4 sm:$0xff]  }
 0x242   :  { %2262 = vst.msk [vmem:[#allocation3 + $0x5a8] sm:$0xff] %vm5626_vm8, %v2214_v20  ;;  %2005 = vst.msk [vmem:[#allocation3 + $0x4b0] sm:$0xff] %vm5626_vm8, %v1957_v24  ;;  %v1893_v42 = vpop.permute.xlu1 %1892  ;;  %v2149_v54 = vpop.permute.xlu0 %2148  ;;  %4415 = vmatprep.subr.bf16.mxu1 %v5220_v59  ;;  %v2540_v59 = vld [vmem:[%s7425_s1 + $0x98] sm:$0xff] }
 0x243   :  { %v1933_v61 = vrot.slane %v1893_v42, 4  ;;  %v2186_v63 = vrot.slane %v2149_v54, 4  ;;  %4416 = vmatpush2.bf16.msra.mxu1 %v5218_v16 }
 0x245   :  { %v1958_v27 = vsel %vm1950_vm6, %v1893_v42, %v1933_v61  ;;  %v2211_v57 = vsel %vm2200_vm4, %v2149_v54, %v2186_v63  ;;  %v5221_v38 = vld [vmem:[#allocation3 + $0x4c0] ss:$8 sps:$4 sm:$0xff]   ;;  %v5223_v53 = vld [vmem:[#allocation3 + $0x4c4] ss:$8 sps:$4 sm:$0xff]   ;;  %v2547_v42 = vld [vmem:[%s7425_s1 + $0xd0] sm:$0xff] }
 0x246   :  { %2006 = vst.msk [vmem:[#allocation3 + $0x4b8] sm:$0xff] %vm5626_vm8, %v1958_v27  ;;  %2259 = vst.msk [vmem:[#allocation3 + $0x590] sm:$0xff] %vm5626_vm8, %v2211_v57  ;;  %v2151_v10 = vpop.permute.xlu1 %2150  ;;  %v1887_v13 = vpop.permute.xlu0 %1886  ;;  %4350 = vmatprep.subr.bf16.mxu0 %v5223_v53 }
 0x247   :  { %v2187_v22 = vrot.slane %v2151_v10, 4  ;;  %v1930_v6 = vrot.slane %v1887_v13, 4  ;;  %4351 = vmatpush2.bf16.msra.mxu0 %v5221_v38 }
 0x249   :  { %v2212_v0 = vsel %vm2200_vm4, %v2151_v10, %v2187_v22  ;;  %v1955_v14 = vsel %vm1950_vm6, %v1887_v13, %v1930_v6  ;;  %v5224_v18 = vld [vmem:[#allocation3 + $0x5a0] ss:$8 sps:$4 sm:$0xff]   ;;  %v5226_v19 = vld [vmem:[#allocation3 + $0x5a4] ss:$8 sps:$4 sm:$0xff]   ;;  %v4609_v13 = vcombine.low %v2540_v59, %v2547_v42 }
 0x24a   :  { %2260 = vst.msk [vmem:[#allocation3 + $0x598] sm:$0xff] %vm5626_vm8, %v2212_v0  ;;  %2003 = vst.msk [vmem:[#allocation3 + $0x4a0] sm:$0xff] %vm5626_vm8, %v1955_v14  ;;  %v1889_v56 = vpop.permute.xlu1 %1888  ;;  %v2145_v4 = vpop.permute.xlu0 %2144  ;;  %4417 = vmatprep.subr.bf16.mxu1 %v5226_v19  ;;  %v5277_v22 = vld [vmem:[%s7425_s1 + $0x10c] ss:$56 sps:$4 sm:$0xff]  }
 0x24b   :  { %v1931_v9 = vrot.slane %v1889_v56, 4  ;;  %v2184_v37 = vrot.slane %v2145_v4, 4  ;;  %4418 = vmatpush2.bf16.msra.mxu1 %v5224_v18 }
 0x24d   :  { %v1956_v48 = vsel %vm1950_vm6, %v1889_v56, %v1931_v9  ;;  %v2209_v21 = vsel %vm2200_vm4, %v2145_v4, %v2184_v37  ;;  %v5227_v15 = vld [vmem:[#allocation3 + $0x4b0] ss:$8 sps:$4 sm:$0xff]   ;;  %v5229_v8 = vld [vmem:[#allocation3 + $0x4b4] ss:$8 sps:$4 sm:$0xff]  }
 0x24e   :  { %2004 = vst.msk [vmem:[#allocation3 + $0x4a8] sm:$0xff] %vm5626_vm8, %v1956_v48  ;;  %2257 = vst.msk [vmem:[#allocation3 + $0x580] sm:$0xff] %vm5626_vm8, %v2209_v21  ;;  %v2147_v52 = vpop.permute.xlu1 %2146  ;;  %v1883_v1 = vpop.permute.xlu0 %1882  ;;  %4352 = vmatprep.subr.bf16.mxu0 %v5229_v8  ;;  %v5251_v37 = vld [vmem:[%s7425_s1 + $0x20] ss:$56 sps:$4 sm:$0xff]   ;;  %v5260_v48 = vld [vmem:[%s7425_s1 + $0x94] ss:$56 sps:$4 sm:$0xff]  }
 0x24f   :  { %v2185_v62 = vrot.slane %v2147_v52, 4  ;;  %v1928_v29 = vrot.slane %v1883_v1, 4  ;;  %4353 = vmatpush2.bf16.msra.mxu0 %v5227_v15  ;;  %v2554_v21 = vld [vmem:[%s7425_s1 + $0x108] sm:$0xff]  ;;  %v2561_v15 = vld [vmem:[%s7425_s1 + $0x140] sm:$0xff] }
 0x251   :  { %v2210_v55 = vsel %vm2200_vm4, %v2147_v52, %v2185_v62  ;;  %v1953_v51 = vsel %vm1950_vm6, %v1883_v1, %v1928_v29  ;;  %v5230_v23 = vld [vmem:[#allocation3 + $0x590] ss:$8 sps:$4 sm:$0xff]   ;;  %v5232_v47 = vld [vmem:[#allocation3 + $0x594] ss:$8 sps:$4 sm:$0xff]  }
 0x252   :  { %2258 = vst.msk [vmem:[#allocation3 + $0x588] sm:$0xff] %vm5626_vm8, %v2210_v55  ;;  %2001 = vst.msk [vmem:[#allocation3 + $0x490] sm:$0xff] %vm5626_vm8, %v1953_v51  ;;  %v1885_v7 = vpop.permute.xlu1 %1884  ;;  %v2405_v26 = vpop.permute.xlu0 %2404  ;;  %4419 = vmatprep.subr.bf16.mxu1 %v5232_v47  ;;  %v4623_v47 = vcombine.low %v2554_v21, %v2561_v15 }
 0x253   :  { %v1929_v45 = vrot.slane %v1885_v7, 4  ;;  %v2438_v5 = vrot.slane %v2405_v26, 4  ;;  %4420 = vmatpush2.bf16.msra.mxu1 %v5230_v23 }
 0x255   :  { %v1954_v12 = vsel %vm1950_vm6, %v1885_v7, %v1929_v45  ;;  %v2463_v43 = vsel %vm2448_vm7, %v2405_v26, %v2438_v5  ;;  %v5233_v25 = vld [vmem:[#allocation3 + $0x4a0] ss:$8 sps:$4 sm:$0xff]   ;;  %v5235_v32 = vld [vmem:[#allocation3 + $0x4a4] ss:$8 sps:$4 sm:$0xff]  }
 0x256   :  { %2002 = vst.msk [vmem:[#allocation3 + $0x498] sm:$0xff] %vm5626_vm8, %v1954_v12  ;;  %2511 = vst.msk [vmem:[#allocation3 + $0x670] sm:$0xff] %vm5626_vm8, %v2463_v43  ;;  %v2407_v3 = vpop.permute.xlu1 %2406  ;;  %v1879_v28 = vpop.permute.xlu0 %1878  ;;  %4354 = vmatprep.subr.bf16.mxu0 %v5235_v32  ;;  %v5299_v7 = vld [vmem:[%s7425_s1 + $0xa4] ss:$56 sps:$4 sm:$0xff]  }
 0x257   :  { %v2439_v34 = vrot.slane %v2407_v3, 4  ;;  %v1926_v2 = vrot.slane %v1879_v28, 4  ;;  %4355 = vmatpush2.bf16.msra.mxu0 %v5233_v25 }
 0x259   :  { %v2464_v44 = vsel %vm2448_vm7, %v2407_v3, %v2439_v34  ;;  %v1951_v58 = vsel %vm1950_vm6, %v1879_v28, %v1926_v2  ;;  %v5236_v40 = vld [vmem:[#allocation3 + $0x580] ss:$8 sps:$4 sm:$0xff]   ;;  %v5238_v35 = vld [vmem:[#allocation3 + $0x584] ss:$8 sps:$4 sm:$0xff]  }
 0x25a   :  { %2512 = vst.msk [vmem:[#allocation3 + $0x678] sm:$0xff] %vm5626_vm8, %v2464_v44  ;;  %1999 = vst.msk [vmem:[#allocation3 + $0x480] sm:$0xff] %vm5626_vm8, %v1951_v58  ;;  %v1881_v17 = vpop.permute.xlu1 %1880  ;;  %v2401_v46 = vpop.permute.xlu0 %2400  ;;  %4421 = vmatprep.subr.bf16.mxu1 %v5238_v35  ;;  %v5262_v28 = vld [vmem:[%s7425_s1 + $0x90] ss:$56 sps:$4 sm:$0xff]   ;;  %v5271_v34 = vld [vmem:[%s7425_s1 + $0x104] ss:$56 sps:$4 sm:$0xff]  }
 0x25b   :  { %v1927_v50 = vrot.slane %v1881_v17, 4  ;;  %v2436_v41 = vrot.slane %v2401_v46, 4  ;;  %4422 = vmatpush2.bf16.msra.mxu1 %v5236_v40 }
 0x25d   :  { %v1952_v36 = vsel %vm1950_vm6, %v1881_v17, %v1927_v50  ;;  %v2461_v60 = vsel %vm2448_vm7, %v2401_v46, %v2436_v41  ;;  %v5239_v31 = vld [vmem:[#allocation3 + $0x490] ss:$8 sps:$4 sm:$0xff]   ;;  %v5241_v39 = vld [vmem:[#allocation3 + $0x494] ss:$8 sps:$4 sm:$0xff]  }
 0x25e   :  { %2000 = vst.msk [vmem:[#allocation3 + $0x488] sm:$0xff] %vm5626_vm8, %v1952_v36  ;;  %2509 = vst.msk [vmem:[#allocation3 + $0x660] sm:$0xff] %vm5626_vm8, %v2461_v60  ;;  %v2403_v33 = vpop.permute.xlu1 %2402  ;;  %v2397_v20 = vpop.permute.xlu0 %2396  ;;  %4356 = vmatprep.subr.bf16.mxu0 %v5241_v39  ;;  %4424 = vmatmul.mubr.bf16.vlgmr.msra.gmra.mxu1 %v5242_v30 }
 0x25f   :  { %v2437_v24 = vrot.slane %v2403_v33, 4  ;;  %v2434_v16 = vrot.slane %v2397_v20, 4  ;;  %4357 = vmatpush2.bf16.msra.mxu0 %v5239_v31  ;;  %4433 = vmatprep.mubr.bf16.mxu1 %v5266_v49 }
 0x261   :  { %v2462_v54 = vsel %vm2448_vm7, %v2403_v33, %v2437_v24  ;;  %v2459_v61 = vsel %vm2448_vm7, %v2397_v20, %v2434_v16  ;;  %v5245_v63 = vld [vmem:[#allocation3 + $0x670] ss:$8 sps:$4 sm:$0xff]   ;;  %v5247_v27 = vld [vmem:[#allocation3 + $0x674] ss:$8 sps:$4 sm:$0xff]  }
 0x262   :  { %2510 = vst.msk [vmem:[#allocation3 + $0x668] sm:$0xff] %vm5626_vm8, %v2462_v54  ;;  %2507 = vst.msk [vmem:[#allocation3 + $0x650] sm:$0xff] %vm5626_vm8, %v2459_v61  ;;  %v2399_v57 = vpop.permute.xlu1 %2398  ;;  %v2393_v38 = vpop.permute.xlu0 %2392  ;;  %4870 = vmatprep.subr.bf16.mxu1 %v5247_v27  ;;  %v5273_v20 = vld [vmem:[%s7425_s1 + $0x100] ss:$56 sps:$4 sm:$0xff]   ;;  %v5302_v24 = vld [vmem:[%s7425_s1 + $0x34] ss:$56 sps:$4 sm:$0xff]  }
 0x263   :  { %v2435_v53 = vrot.slane %v2399_v57, 4  ;;  %v2432_v10 = vrot.slane %v2393_v38, 4  ;;  %4882 = vmatpush1.bf16.msra.mxu1 %v5245_v63 }
 0x265   :  { %v2460_v6 = vsel %vm2448_vm7, %v2399_v57, %v2435_v53  ;;  %v2457_v0 = vsel %vm2448_vm7, %v2393_v38, %v2432_v10  ;;  %v5248_v14 = vld [vmem:[#allocation3 + $0x480] ss:$8 sps:$4 sm:$0xff]   ;;  %v5250_v18 = vld [vmem:[#allocation3 + $0x484] ss:$8 sps:$4 sm:$0xff]  }
 0x266   :  { %2508 = vst.msk [vmem:[#allocation3 + $0x658] sm:$0xff] %vm5626_vm8, %v2460_v6  ;;  %2505 = vst.msk [vmem:[#allocation3 + $0x640] sm:$0xff] %vm5626_vm8, %v2457_v0  ;;  %v2395_v19 = vpop.permute.xlu1 %2394  ;;  %v2389_v56 = vpop.permute.xlu0 %2388  ;;  %4358 = vmatprep.subr.bf16.mxu0 %v5250_v18  ;;  %4434 = vmatmul.mubr.bf16.gmra.mxu1 %v4609_v13 }
 0x267   :  { %v2433_v4 = vrot.slane %v2395_v19, 4  ;;  %v2430_v9 = vrot.slane %v2389_v56, 4  ;;  %4359 = vmatpush2.bf16.msra.mxu0 %v5248_v14  ;;  %4443 = vmatprep.mubr.bf16.mxu1 %v5277_v22 }
 0x268   :  { %4454 = vmatprep.subr.bf16.mxu0 %v5247_v27 }
 0x269   :  { %v2458_v8 = vsel %vm2448_vm7, %v2395_v19, %v2433_v4  ;;  %v2455_v52 = vsel %vm2448_vm7, %v2389_v56, %v2430_v9  ;;  %v5254_v1 = vld [vmem:[#allocation3 + $0x660] ss:$8 sps:$4 sm:$0xff]   ;;  %v5256_v62 = vld [vmem:[#allocation3 + $0x664] ss:$8 sps:$4 sm:$0xff]  }
 0x26a   :  { %2506 = vst.msk [vmem:[#allocation3 + $0x648] sm:$0xff] %vm5626_vm8, %v2458_v8  ;;  %2503 = vst.msk [vmem:[#allocation3 + $0x630] sm:$0xff] %vm5626_vm8, %v2455_v52  ;;  %v2391_v29 = vpop.permute.xlu1 %2390  ;;  %v2385_v55 = vpop.permute.xlu0 %2384  ;;  %4361 = vmatmul.mubr.bf16.vlgmr.msra.gmra.mxu0 %v5251_v37  ;;  %4871 = vmatprep.subr.bf16.mxu1 %v5256_v62 }
 0x26b   :  { %v2431_v51 = vrot.slane %v2391_v29, 4  ;;  %v2428_v23 = vrot.slane %v2385_v55, 4  ;;  %4455 = vmatpush1.bf16.msra.mxu0 %v5245_v63  ;;  %4883 = vmatpush1.bf16.msra.mxu1 %v5254_v1 }
 0x26c   :  { %4456 = vmatprep.subr.bf16.mxu0 %v5256_v62  ;;  %4370 = vmatprep.mubr.bf16.mxu0 %v5260_v48 }
 0x26d   :  { %v2456_v26 = vsel %vm2448_vm7, %v2391_v29, %v2431_v51  ;;  %v2453_v45 = vsel %vm2448_vm7, %v2385_v55, %v2428_v23  ;;  %v5257_v5 = vld [vmem:[#allocation3 + $0x650] ss:$8 sps:$4 sm:$0xff]   ;;  %v5259_v12 = vld [vmem:[#allocation3 + $0x654] ss:$8 sps:$4 sm:$0xff]  }
 0x26e   :  { %2504 = vst.msk [vmem:[#allocation3 + $0x638] sm:$0xff] %vm5626_vm8, %v2456_v26  ;;  %2501 = vst.msk [vmem:[#allocation3 + $0x620] sm:$0xff] %vm5626_vm8, %v2453_v45  ;;  %v2387_v43 = vpop.permute.xlu1 %2386  ;;  %v2381_v25 = vpop.permute.xlu0 %2380  ;;  %4872 = vmatprep.subr.bf16.mxu1 %v5259_v12  ;;  %4444 = vmatmul.mubr.bf16.gmra.mxu1 %v4623_v47 }
 0x26f   :  { %v2429_v32 = vrot.slane %v2387_v43, 4  ;;  %v2426_v3 = vrot.slane %v2381_v25, 4  ;;  %4457 = vmatpush1.bf16.msra.mxu0 %v5254_v1  ;;  %4884 = vmatpush1.bf16.msra.mxu1 %v5257_v5 }
 0x270   :  { %4458 = vmatprep.subr.bf16.mxu0 %v5259_v12  ;;  %4844 = vmatprep.mubr.msk.bf16.mxu1 %vm4066_vm9, %v5299_v7  ;;  %v5300_v12 = vld [vmem:[%s7425_s1 + $0x30] ss:$56 sps:$4 sm:$0xff]  }
 0x271   :  { %v2454_v2 = vsel %vm2448_vm7, %v2387_v43, %v2429_v32  ;;  %v2451_v44 = vsel %vm2448_vm7, %v2381_v25, %v2426_v3  ;;  %v5263_v58 = vld [vmem:[#allocation3 + $0x640] ss:$8 sps:$4 sm:$0xff]   ;;  %v5265_v40 = vld [vmem:[#allocation3 + $0x644] ss:$8 sps:$4 sm:$0xff]   ;;  %v7282_v25 = vpop.f32.mrf.mxu1  ;;  %v7284_v32 = vpop.f32.mrf.mxu0 }
 0x272   :  { %2502 = vst.msk [vmem:[#allocation3 + $0x628] sm:$0xff] %vm5626_vm8, %v2454_v2  ;;  %2499 = vst.msk [vmem:[#allocation3 + $0x610] sm:$0xff] %vm5626_vm8, %v2451_v44  ;;  %v2383_v35 = vpop.permute.xlu1 %2382  ;;  %v2377_v17 = vpop.permute.xlu0 %2376  ;;  %4371 = vmatmul.mubr.bf16.gmra.mxu0 %v5262_v28  ;;  %4873 = vmatprep.subr.bf16.mxu1 %v5265_v40  ;;  %v5305_v43 = vld [vmem:[%s7425_s1 + $0x110] ss:$56 sps:$4 sm:$0xff]  }
 0x273   :  { %v2427_v46 = vrot.slane %v2383_v35, 4  ;;  %v2424_v50 = vrot.slane %v2377_v17, 4  ;;  %4459 = vmatpush1.bf16.msra.mxu0 %v5257_v5  ;;  %4885 = vmatpush1.bf16.msra.mxu1 %v5263_v58  ;;  %v5297_v5 = vld [vmem:[%s7425_s1 + $0xa0] ss:$56 sps:$4 sm:$0xff]   ;;  %v7286_v3 = vpop.f32.mrf.mxu1  ;;  %v7288_v28 = vpop.f32.mrf.mxu0 }
 0x274   :  { %4460 = vmatprep.subr.bf16.mxu0 %v5265_v40  ;;  %4380 = vmatprep.mubr.bf16.mxu0 %v5271_v34 }
 0x275   :  { %v2452_v41 = vsel %vm2448_vm7, %v2383_v35, %v2427_v46  ;;  %v2449_v30 = vsel %vm2448_vm7, %v2377_v17, %v2424_v50  ;;  %v5268_v49 = vld [vmem:[#allocation3 + $0x630] ss:$8 sps:$4 sm:$0xff]   ;;  %v5270_v36 = vld [vmem:[#allocation3 + $0x634] ss:$8 sps:$4 sm:$0xff]   ;;  %v7290_v34 = vpop.f32.mrf.mxu1  ;;  %v7292_v2 = vpop.f32.mrf.mxu0 }
 0x276   :  { %2500 = vst.msk [vmem:[#allocation3 + $0x618] sm:$0xff] %vm5626_vm8, %v2452_v41  ;;  %2497 = vst.msk [vmem:[#allocation3 + $0x600] sm:$0xff] %vm5626_vm8, %v2449_v30  ;;  %v2379_v60 = vpop.permute.xlu1 %2378  ;;  %v2421_v31 = vpop.permute.xlu0 %2420  ;;  %4874 = vmatprep.subr.bf16.mxu1 %v5270_v36 }
 0x277   :  { %v2425_v39 = vrot.slane %v2379_v60, 4  ;;  %v2446_v33 = vrot.slane %v2421_v31, 4  ;;  %4461 = vmatpush1.bf16.msra.mxu0 %v5263_v58  ;;  %4886 = vmatpush1.bf16.msra.mxu1 %v5268_v49  ;;  %v7294_v44 = vpop.f32.mrf.mxu1  ;;  %v7296_v58 = vpop.f32.mrf.mxu0 }
 0x278   :  { %4462 = vmatprep.subr.bf16.mxu0 %v5270_v36 }
 0x279   :  { %v2450_v16 = vsel %vm2448_vm7, %v2379_v60, %v2425_v39  ;;  %v2471_v59 = vsel %vm2448_vm7, %v2421_v31, %v2446_v33  ;;  %v5274_v42 = vld [vmem:[#allocation3 + $0x620] ss:$8 sps:$4 sm:$0xff]   ;;  %v5276_v54 = vld [vmem:[#allocation3 + $0x624] ss:$8 sps:$4 sm:$0xff]   ;;  %v4183_v40 = vpop.f32.mrf.mxu1  ;;  %v4120_v35 = vpop.f32.mrf.mxu0 }
 0x27a   :  { %2498 = vst.msk [vmem:[#allocation3 + $0x608] sm:$0xff] %vm5626_vm8, %v2450_v16  ;;  %2519 = vst.msk [vmem:[#allocation3 + $0x6b0] sm:$0xff] %vm5626_vm8, %v2471_v59  ;;  %v2423_v61 = vpop.permute.xlu1 %2422  ;;  %v2417_v63 = vpop.permute.xlu0 %2416  ;;  %4381 = vmatmul.mubr.bf16.gmra.mxu0 %v5273_v20  ;;  %4875 = vmatprep.subr.bf16.mxu1 %v5276_v54 }
 0x27b   :  { %v2447_v27 = vrot.slane %v2423_v61, 4  ;;  %v2444_v57 = vrot.slane %v2417_v63, 4  ;;  %4463 = vmatpush1.bf16.msra.mxu0 %v5268_v49  ;;  %4887 = vmatpush1.bf16.msra.mxu1 %v5274_v42  ;;  %v4185_v17 = vpop.f32.mrf.mxu1  ;;  %v4122_v46 = vpop.f32.mrf.mxu0 }
 0x27c   :  { %4464 = vmatprep.subr.bf16.mxu0 %v5276_v54  ;;  %4843 = vmatprep.mubr.msk.bf16.mxu0 %vm4066_vm9, %v5302_v24 }
 0x27d   :  { %v2472_v38 = vsel %vm2448_vm7, %v2423_v61, %v2447_v27  ;;  %v2469_v53 = vsel %vm2448_vm7, %v2417_v63, %v2444_v57  ;;  %v5279_v10 = vld [vmem:[#allocation3 + $0x610] ss:$8 sps:$4 sm:$0xff]   ;;  %v5281_v13 = vld [vmem:[#allocation3 + $0x614] ss:$8 sps:$4 sm:$0xff]   ;;  %v4187_v50 = vpop.f32.mrf.mxu1  ;;  %v4124_v41 = vpop.f32.mrf.mxu0 }
 0x27e   :  { %2520 = vst.msk [vmem:[#allocation3 + $0x6b8] sm:$0xff] %vm5626_vm8, %v2472_v38  ;;  %2517 = vst.msk [vmem:[#allocation3 + $0x6a0] sm:$0xff] %vm5626_vm8, %v2469_v53  ;;  %v2419_v22 = vpop.permute.xlu1 %2418  ;;  %v2413_v6 = vpop.permute.xlu0 %2412  ;;  %4876 = vmatprep.subr.bf16.mxu1 %v5281_v13 }
 0x27f   :  { %v2445_v0 = vrot.slane %v2419_v22, 4  ;;  %v2442_v14 = vrot.slane %v2413_v6, 4  ;;  %4465 = vmatpush1.bf16.msra.mxu0 %v5274_v42  ;;  %4888 = vmatpush1.bf16.msra.mxu1 %v5279_v10  ;;  %v4189_v30 = vpop.f32.mrf.mxu1  ;;  %v4126_v49 = vpop.f32.mrf.mxu0 }
 0x280   :  { %4466 = vmatprep.subr.bf16.mxu0 %v5281_v13 }
 0x281   :  { %v2470_v18 = vsel %vm2448_vm7, %v2419_v22, %v2445_v0  ;;  %v2467_v19 = vsel %vm2448_vm7, %v2413_v6, %v2442_v14  ;;  %v5282_v56 = vld [vmem:[#allocation3 + $0x600] ss:$8 sps:$4 sm:$0xff]   ;;  %v5284_v4 = vld [vmem:[#allocation3 + $0x604] ss:$8 sps:$4 sm:$0xff]   ;;  %v4193_v36 = vpop.f32.mrf.mxu1  ;;  %v4130_v60 = vpop.f32.mrf.mxu0 }
 0x282   :  { %2518 = vst.msk [vmem:[#allocation3 + $0x6a8] sm:$0xff] %vm5626_vm8, %v2470_v18  ;;  %2515 = vst.msk [vmem:[#allocation3 + $0x690] sm:$0xff] %vm5626_vm8, %v2467_v19  ;;  %v2415_v9 = vpop.permute.xlu1 %2414  ;;  %v2409_v37 = vpop.permute.xlu0 %2408  ;;  %4877 = vmatprep.subr.bf16.mxu1 %v5284_v4 }
 0x283   :  { %v2443_v48 = vrot.slane %v2415_v9, 4  ;;  %v2440_v21 = vrot.slane %v2409_v37, 4  ;;  %4467 = vmatpush1.bf16.msra.mxu0 %v5279_v10  ;;  %4889 = vmatpush1.bf16.msra.mxu1 %v5282_v56  ;;  %v7298_v31 = vpop.f32.mrf.mxu1  ;;  %v4132_v39 = vpop.f32.mrf.mxu0 }
 0x284   :  { %4468 = vmatprep.subr.bf16.mxu0 %v5284_v4 }
 0x285   :  { %v2468_v15 = vsel %vm2448_vm7, %v2415_v9, %v2443_v48  ;;  %v2465_v8 = vsel %vm2448_vm7, %v2409_v37, %v2440_v21  ;;  %v5285_v52 = vld [vmem:[#allocation3 + $0x6b0] ss:$8 sps:$4 sm:$0xff]   ;;  %v5287_v1 = vld [vmem:[#allocation3 + $0x6b4] ss:$8 sps:$4 sm:$0xff]   ;;  %v7300_v33 = vpop.f32.mrf.mxu1  ;;  %v7302_v20 = vpop.f32.mrf.mxu0 }
 0x286   :  { %2516 = vst.msk [vmem:[#allocation3 + $0x698] sm:$0xff] %vm5626_vm8, %v2468_v15  ;;  %2513 = vst.msk [vmem:[#allocation3 + $0x680] sm:$0xff] %vm5626_vm8, %v2465_v8  ;;  %v2411_v62 = vpop.permute.xlu1 %2410  ;;  %4878 = vmatprep.subr.bf16.mxu1 %v5287_v1 }
 0x287   :  { %v2441_v29 = vrot.slane %v2411_v62, 4  ;;  %4469 = vmatpush1.bf16.msra.mxu0 %v5282_v56  ;;  %4890 = vmatpush2.bf16.msra.mxu1 %v5285_v52  ;;  %v7304_v24 = vpop.f32.mrf.mxu1  ;;  %v7306_v16 = vpop.f32.mrf.mxu0 }
 0x288   :  { %4478 = vmatprep.subr.bf16.mxu0 %v5287_v1 }
 0x289   :  { %v2466_v55 = vsel %vm2448_vm7, %v2411_v62, %v2441_v29  ;;  %v5288_v51 = vld [vmem:[#allocation3 + $0x6a0] ss:$8 sps:$4 sm:$0xff]   ;;  %v5290_v23 = vld [vmem:[#allocation3 + $0x6a4] ss:$8 sps:$4 sm:$0xff]  }
 0x28a   :  { %2514 = vst.msk [vmem:[#allocation3 + $0x688] sm:$0xff] %vm5626_vm8, %v2466_v55  ;;  %4879 = vmatprep.subr.bf16.mxu1 %v5290_v23  ;;  %vm4518_vm8 = vcmask 556032  }
 0x28b   :  { %4479 = vmatpush2.bf16.msra.mxu0 %v5285_v52  ;;  %4891 = vmatpush2.bf16.msra.mxu1 %v5288_v51 }
 0x28c   :  { %4480 = vmatprep.subr.bf16.mxu0 %v5290_v23 }
 0x28d   :  { %v5291_v47 = vld [vmem:[#allocation3 + $0x690] ss:$8 sps:$4 sm:$0xff]   ;;  %v5293_v7 = vld [vmem:[#allocation3 + $0x694] ss:$8 sps:$4 sm:$0xff]  }
 0x28e   :  { %4880 = vmatprep.subr.bf16.mxu1 %v5293_v7 }
 0x28f   :  { %4481 = vmatpush2.bf16.msra.mxu0 %v5288_v51  ;;  %4892 = vmatpush2.bf16.msra.mxu1 %v5291_v47 }
 0x290   :  { %4482 = vmatprep.subr.bf16.mxu0 %v5293_v7 }
 0x291   :  { %v5294_v26 = vld [vmem:[#allocation3 + $0x680] ss:$8 sps:$4 sm:$0xff]   ;;  %v5296_v45 = vld [vmem:[#allocation3 + $0x684] ss:$8 sps:$4 sm:$0xff]  }
 0x292   :  { %4881 = vmatprep.subr.bf16.mxu1 %v5296_v45 }
 0x293   :  { %4483 = vmatpush2.bf16.msra.mxu0 %v5291_v47  ;;  %4893 = vmatpush2.bf16.msra.mxu1 %v5294_v26 }
 0x294   :  { %4484 = vmatprep.subr.bf16.mxu0 %v5296_v45 }
 0x296   :  { %4497 = vmatmul.mubr.bf16.vlgmr.msra.gmra.mxu1 %v5297_v5 }
 0x297   :  { %4485 = vmatpush2.bf16.msra.mxu0 %v5294_v26  ;;  %4845 = vmatprep.mubr.msk.bf16.mxu1 %vm4066_vm9, %v5303_v11 }
 0x29a   :  { %4487 = vmatmul.mubr.bf16.vlgmr.msra.gmra.mxu0 %v5300_v12  ;;  %v7308_v59 = vpop.f32.mrf.mxu1 }
 0x29c   :  { %v7310_v54 = vpop.f32.mrf.mxu1 }
 0x29e   :  { %4507 = vmatmul.mubr.bf16.gmra.mxu1 %v5305_v43  ;;  %v7312_v63 = vpop.f32.mrf.mxu1  ;;  %v4184_v43 = vadd.f32 %v4183_v40, %v4120_v35 }
 0x2a0   :  { %v7314_v57 = vpop.f32.mrf.mxu1 }
 0x2a1   :  { %7439 = vst [vmem:[#allocation4_spill] sm:$0xff] %v7314_v57  ;;  %v4194_v57 = vadd.f32 %v4193_v36, %v4130_v60 }
 0x2a2   :  { %v4309_v53 = vpop.f32.mrf.mxu1 }
 0x2a4   :  { %v4311_v13 = vpop.f32.mrf.mxu1 }
 0x2a6   :  { %v4313_v6 = vpop.f32.mrf.mxu1 }
 0x2a8   :  { %v4315_v14 = vpop.f32.mrf.mxu1 }
 0x2aa   :  { %v4236_v42 = vpop.f32.mrf.mxu0 }
 0x2ac   :  { %v4238_v61 = vpop.f32.mrf.mxu0 }
 0x2ad   :  { %v7316_v19 = vpop.f32.mrf.mxu1 }
 0x2ae   :  { %v4240_v27 = vpop.f32.mrf.mxu0  ;;  %7440 = vst [vmem:[#allocation5_spill] sm:$0xff] %v7316_v19  ;;  %v4176_v19 = vadd.f32 %v7286_v3, %v7288_v28  ;;  %v4198_v3 = vadd.f32 %v7300_v33, %v7302_v20 }
 0x2af   :  { %v7318_v4 = vpop.f32.mrf.mxu1 }
 0x2b0   :  { %v4242_v38 = vpop.f32.mrf.mxu0  ;;  %7441 = vst [vmem:[#allocation6_spill] sm:$0xff] %v7318_v4 }
 0x2b1   :  { %v7320_v37 = vpop.f32.mrf.mxu1 }
 0x2b2   :  { %v4246_v10 = vpop.f32.mrf.mxu0  ;;  %7442 = vst [vmem:[#allocation7_spill] sm:$0xff] %v7320_v37  ;;  %v4186_v37 = vadd.f32 %v4185_v17, %v4122_v46  ;;  %v4178_v17 = vadd.f32 %v7290_v34, %v7292_v2  ;;  %v4239_v46 = vadd.f32 %v4238_v61, %v4176_v19 }
 0x2b3   :  { %v7322_v21 = vpop.f32.mrf.mxu1 }
 0x2b4   :  { %v4248_v22 = vpop.f32.mrf.mxu0  ;;  %7443 = vst [vmem:[#allocation8_spill] sm:$0xff] %v7322_v21  ;;  %v4241_v28 = vadd.f32 %v4240_v27, %v4178_v17  ;;  %v7452_v27 = vld [vmem:[#allocation4_spill] sm:$0xff] }
 0x2b5   :  { %v4249_v4 = vadd.f32 %v4248_v22, %v4186_v37 }
 0x2b6   :  { %v4250_v0 = vpop.f32.mrf.mxu0  ;;  %v4304_v20 = vadd.f32 %v7312_v63, %v4241_v28 }
 0x2b7   :  { %v7454_v19 = vld [vmem:[#allocation6_spill] sm:$0xff] }
 0x2b8   :  { %v4252_v18 = vpop.f32.mrf.mxu0 }
 0x2ba   :  { %v4256_v56 = vpop.f32.mrf.mxu0 }
 0x2bb   :  { %v4257_v2 = vadd.f32 %v4256_v56, %v4194_v57  ;;  %v7462_v17 = vld [vmem:[#allocation8_spill] sm:$0xff] }
 0x2bc   :  { %v4258_v9 = vpop.f32.mrf.mxu0 }
 0x2be   :  { %v4260_v48 = vpop.f32.mrf.mxu0 }
 0x2c0   :  { %v7324_v15 = vpop.f32.mrf.mxu0 }
 0x2c1   :  { %7444 = vst [vmem:[#allocation9_spill] sm:$0xff] %v7324_v15  ;;  %v4190_v15 = vadd.f32 %v4189_v30, %v4126_v49  ;;  %v4312_v30 = vadd.f32 %v4311_v13, %v4249_v4 }
 0x2c3   :  { %v4253_v49 = vadd.f32 %v4252_v18, %v4190_v15 }
 0x2c8   :  { %v7455_v4 = vld [vmem:[#allocation9_spill] sm:$0xff] }
 0x31e   :  { %v7326_v8 = vpop.f32.mrf.mxu1 }
 0x31f   :  { %7445 = vst [vmem:[#allocation10_spill] sm:$0xff] %v7326_v8  ;;  %v4188_v8 = vadd.f32 %v4187_v50, %v4124_v41 }
 0x320   :  { %v7328_v1 = vpop.f32.mrf.mxu1 }
 0x321   :  { %7446 = vst [vmem:[#allocation11_spill] sm:$0xff] %v7328_v1  ;;  %v4251_v35 = vadd.f32 %v4250_v0, %v4188_v8  ;;  %v7453_v0 = vld [vmem:[#allocation5_spill] sm:$0xff] }
 0x322   :  { %v7330_v29 = vpop.f32.mrf.mxu1  ;;  %v4320_v18 = vadd.f32 %v7453_v0, %v4257_v2 }
 0x323   :  { %7447 = vst [vmem:[#allocation12_spill] sm:$0xff] %v7330_v29  ;;  %v4174_v29 = vadd.f32 %v7282_v25, %v7284_v32  ;;  %v4180_v25 = vadd.f32 %v7294_v44, %v7296_v58  ;;  %v4196_v32 = vadd.f32 %v7298_v31, %v4132_v39  ;;  %v4314_v34 = vadd.f32 %v4313_v6, %v4251_v35 }
 0x324   :  { %v7334_v51 = vpop.f32.mrf.mxu1  ;;  %v4200_v44 = vadd.f32 %v7304_v24, %v7306_v16  ;;  %v4302_v58 = vadd.f32 %v7310_v54, %v4239_v46 }
 0x325   :  { %7449 = vst [vmem:[#allocation14_spill] sm:$0xff] %v7334_v51  ;;  %v4247_v51 = vadd.f32 %v4246_v10, %v4184_v43  ;;  %v4243_v36 = vadd.f32 %v4242_v38, %v4180_v25  ;;  %v4259_v31 = vadd.f32 %v4258_v9, %v4196_v32  ;;  %v4261_v38 = vadd.f32 %v4260_v48, %v4198_v3 }
 0x326   :  { %v4435_v47 = vpop.f32.mrf.mxu1  ;;  %v4263_v9 = vadd.f32 %v7455_v4, %v4200_v44 }
 0x327   :  { %v4310_v40 = vadd.f32 %v4309_v53, %v4247_v51  ;;  %v4316_v53 = vadd.f32 %v4315_v14, %v4253_v49  ;;  %v4322_v56 = vadd.f32 %v7454_v19, %v4259_v31 }
 0x328   :  { %v4437_v26 = vpop.f32.mrf.mxu1  ;;  %v4326_v25 = vadd.f32 %v7462_v17, %v4263_v9 }
 0x32a   :  { %v4362_v52 = vpop.f32.mrf.mxu0  ;;  %v4439_v5 = vpop.f32.mrf.mxu1 }
 0x32c   :  { %v4364_v62 = vpop.f32.mrf.mxu0  ;;  %v7338_v12 = vpop.f32.mrf.mxu1 }
 0x32d   :  { %7451 = vst [vmem:[#allocation16_spill] sm:$0xff] %v7338_v12  ;;  %v4237_v12 = vadd.f32 %v4236_v42, %v4174_v29  ;;  %v4365_v57 = vadd.f32 %v4364_v62, %v4302_v58  ;;  %v7457_v62 = vld [vmem:[#allocation10_spill] sm:$0xff] }
 0x32e   :  { %v7332_v55 = vpop.f32.mrf.mxu0  ;;  %v7340_v1 = vpop.f32.mrf.mxu1 }
 0x32f   :  { %7448 = vst [vmem:[#allocation13_spill] sm:$0xff] %v7332_v55  ;;  %v4300_v60 = vadd.f32 %v7308_v59, %v4237_v12  ;;  %v4306_v59 = vadd.f32 %v7452_v27, %v4243_v36 }
 0x330   :  { %v7336_v23 = vpop.f32.mrf.mxu0 }
 0x331   :  { %7450 = vst [vmem:[#allocation15_spill] sm:$0xff] %v7336_v23  ;;  %v7344_v23 = vpop.f32.mrf.mxu1  ;;  %v4363_v13 = vadd.f32 %v4362_v52, %v4300_v60 }
 0x332   :  { %v4372_v7 = vpop.f32.mrf.mxu0 }
 0x333   :  { %v7353_v41 = vpop.f32.mrf.mxu1  ;;  %v4373_v10 = vadd.f32 %v4372_v7, %v4310_v40  ;;  %v4426_v29 = vadd.f32 %v7457_v62, %v4363_v13 }
 0x334   :  { %v4374_v45 = vpop.f32.mrf.mxu0  ;;  %v7461_v43 = vld [vmem:[#allocation16_spill] sm:$0xff] }
 0x335   :  { %v4375_v42 = vadd.f32 %v4374_v45, %v4312_v30  ;;  %v7361_v61 = vpop.f32.mrf.mxu1  ;;  %v4436_v22 = vadd.f32 %v4435_v47, %v4373_v10  ;;  %v7463_v30 = vld [vmem:[#allocation12_spill] sm:$0xff] }
 0x336   :  { %v4376_v11 = vpop.f32.mrf.mxu0  ;;  %v7456_v14 = vld [vmem:[#allocation13_spill] sm:$0xff] }
 0x337   :  { %v4377_v33 = vadd.f32 %v4376_v11, %v4314_v34  ;;  %v4438_v24 = vadd.f32 %v4437_v26, %v4375_v42  ;;  %v4367_v37 = vadd.f32 %v7456_v14, %v4304_v20  ;;  %v7460_v11 = vld [vmem:[#allocation11_spill] sm:$0xff]  ;;  %v7464_v34 = vld [vmem:[#allocation14_spill] sm:$0xff] }
 0x338   :  { %v4378_v21 = vpop.f32.mrf.mxu0  ;;  %v7459_v47 = vld [vmem:[#allocation15_spill] sm:$0xff]  ;;  %v4428_v12 = vadd.f32 %v7460_v11, %v4365_v57 }
 0x339   :  { %v4379_v16 = vadd.f32 %v4378_v21, %v4316_v53  ;;  %v4440_v63 = vadd.f32 %v4439_v5, %v4377_v33  ;;  %v7458_v21 = vld [vmem:[#allocation7_spill] sm:$0xff]  ;;  %v4369_v7 = vadd.f32 %v7459_v47, %v4306_v59  ;;  %v4430_v49 = vadd.f32 %v7463_v30, %v4367_v37 }
 0x33a   :  { %v4382_v55 = vpop.f32.mrf.mxu0  ;;  %v4324_v51 = vadd.f32 %v7458_v21, %v4261_v38 }
 0x33b   :  { %v4383_v52 = vadd.f32 %v4382_v55, %v4320_v18  ;;  %v4442_v40 = vadd.f32 %v7461_v43, %v4379_v16  ;;  %v4432_v2 = vadd.f32 %v7464_v34, %v4369_v7 }
 0x33c   :  { %v4384_v50 = vpop.f32.mrf.mxu0 }
 0x33d   :  { %v4385_v35 = vadd.f32 %v4384_v50, %v4322_v56  ;;  %v4446_v10 = vadd.f32 %v7340_v1, %v4383_v52 }
 0x33e   :  { %v4386_v39 = vpop.f32.mrf.mxu0 }
 0x33f   :  { %v4387_v3 = vadd.f32 %v4386_v39, %v4324_v51  ;;  %v4448_v42 = vadd.f32 %v7344_v23, %v4385_v35 }
 0x340   :  { %v4388_v15 = vpop.f32.mrf.mxu0 }
 0x341   :  { %v4389_v44 = vadd.f32 %v4388_v15, %v4326_v25  ;;  %v4450_v53 = vadd.f32 %v7353_v41, %v4387_v3 }
 0x343   :  { %v4452_v33 = vadd.f32 %v7361_v61, %v4389_v44 }
 0x356   :  { %v4498_v6 = vpop.f32.mrf.mxu1 }
 0x357   :  { %v4499_v54 = vadd.f32 %v4498_v6, %v4436_v22 }
 0x358   :  { %v4500_v8 = vpop.f32.mrf.mxu1 }
 0x359   :  { %4522 = vst [vmem:[%s7426_s3 + $0x20] sm:$0xff] %v4499_v54  ;;  %v4501_v48 = vadd.f32 %v4500_v8, %v4438_v24 }
 0x35a   :  { %v4488_v26 = vpop.f32.mrf.mxu0  ;;  %v4502_v45 = vpop.f32.mrf.mxu1 }
 0x35b   :  { %4523 = vst.msk [vmem:[%s7426_s3 + $0x28] sm:$0xff] %vm4518_vm8, %v4501_v48  ;;  %v4489_v55 = vadd.f32 %v4488_v26, %v4426_v29  ;;  %v4503_v5 = vadd.f32 %v4502_v45, %v4440_v63 }
 0x35c   :  { %v4490_v32 = vpop.f32.mrf.mxu0  ;;  %v4504_v46 = vpop.f32.mrf.mxu1 }
 0x35d   :  { %4517 = vst [vmem:[%s7426_s3] sm:$0xff] %v4489_v55  ;;  %4524 = vst [vmem:[%s7426_s3 + $0x30] sm:$0xff] %v4503_v5  ;;  %v4491_v50 = vadd.f32 %v4490_v32, %v4428_v12  ;;  %v4505_v28 = vadd.f32 %v4504_v46, %v4442_v40 }
 0x35e   :  { %v4492_v36 = vpop.f32.mrf.mxu0  ;;  %v4508_v60 = vpop.f32.mrf.mxu1 }
 0x35f   :  { %4519 = vst.msk [vmem:[%s7426_s3 + $0x8] sm:$0xff] %vm4518_vm8, %v4491_v50  ;;  %4525 = vst.msk [vmem:[%s7426_s3 + $0x38] sm:$0xff] %vm4518_vm8, %v4505_v28  ;;  %v4493_v1 = vadd.f32 %v4492_v36, %v4430_v49  ;;  %v4509_v58 = vadd.f32 %v4508_v60, %v4446_v10 }
 0x360   :  { %v4494_v31 = vpop.f32.mrf.mxu0  ;;  %v4510_v39 = vpop.f32.mrf.mxu1 }
 0x361   :  { %4520 = vst [vmem:[%s7426_s3 + $0x10] sm:$0xff] %v4493_v1  ;;  %4526 = vst [vmem:[%s7426_s3 + $0x40] sm:$0xff] %v4509_v58  ;;  %v4495_v23 = vadd.f32 %v4494_v31, %v4432_v2  ;;  %v4511_v13 = vadd.f32 %v4510_v39, %v4448_v42 }
 0x362   :  { %v4512_v22 = vpop.f32.mrf.mxu1 }
 0x363   :  { %4521 = vst.msk [vmem:[%s7426_s3 + $0x18] sm:$0xff] %vm4518_vm8, %v4495_v23  ;;  %4527 = vst.msk [vmem:[%s7426_s3 + $0x48] sm:$0xff] %vm4518_vm8, %v4511_v13  ;;  %v4513_v41 = vadd.f32 %v4512_v22, %v4450_v53 }
 0x364   :  { %v4514_v20 = vpop.f32.mrf.mxu1 }
 0x365   :  { %4528 = vst [vmem:[%s7426_s3 + $0x50] sm:$0xff] %v4513_v41  ;;  %v4515_v27 = vadd.f32 %v4514_v20, %v4452_v33 }
 0x367   :  { %4529 = vst.msk [vmem:[%s7426_s3 + $0x58] sm:$0xff] %vm4518_vm8, %v4515_v27 }

</bundles_post_ra>
